<compile_context>
chip_gen: v7x
topology: tpu7x:2x2x1
jax: 0.10.0
libtpu: 0.0.40
codegen_flags: <defaults>
</compile_context>

<pallas_src>
import jax
import jax.numpy as jnp
from jax.experimental import pallas as pl
from jax.experimental.pallas import tpu as pltpu

EPS = 1e-5
C1, C2 = 12, 24      # real conv channel counts (from the PyTorch module)
C0, C0P = 3, 4       # input channels, padded 3->4 so conv1 K = W*4 = 128
C1P = 16             # pooled channels padded 12->16 so conv2 K = Wp*16 = 256


# ----------------------------- Pallas kernels ------------------------------

def make_fused_kernel(N, H, W):
    """conv1 + bn1 + relu + 2x2 maxpool + conv2 + bn2 + relu, all in VMEM."""
    Hp, Wp = H // 2, W // 2
    WC1 = W * C1            # 384: conv1 output lane width
    WC2 = Wp * C2           # 384: conv2 output lane width
    KP2 = Wp * C1P          # 256: conv2 contraction width
    SR1 = H + 2             # per-image row stride of the H-padded conv1 input
    SR2 = Hp + 16           # per-image row stride of the conv2 input slab (16-aligned, bf16)
    CNT1 = float(N * H * W)
    CNT2 = float(N * Hp * Wp)

    def kernel(x_ref, t1_ref, re_ref, ro_ref, ee_ref, eo_ref,
               s1_ref, s1t_ref, g1_ref, bt1_ref,
               t2_ref, s2_ref, s2t_ref, g2_ref, bt2_ref, o_ref):

        def batchnorm_relu(acc, s_ref, st_ref, g_ref, b_ref, cnt):
            # one-pass stats: [sum; sum_sq] gathered per channel with ONE tiny matmul
            rsum = jnp.sum(acc, axis=0, keepdims=True)
            rsq = jnp.sum(acc * acc, axis=0, keepdims=True)
            stats = jnp.dot(jnp.concatenate([rsum, rsq], axis=0), s_ref[...],
                            preferred_element_type=jnp.float32) / cnt          # (2, C)
            mean_c = stats[0:1, :]
            var_c = stats[1:2, :] - mean_c * mean_c
            scale_c = g_ref[...] * jax.lax.rsqrt(var_c + EPS)
            shift_c = b_ref[...] - mean_c * scale_c
            # broadcast [scale; shift] to lane layout with ONE tiny matmul
            bc = jnp.dot(jnp.concatenate([scale_c, shift_c], axis=0), st_ref[...],
                         preferred_element_type=jnp.float32)                   # (2, W*C)
            return jnp.maximum(acc * bc[0:1, :] + bc[1:2, :], 0.0)

        # ---- conv1: ONE bf16 matmul (M=N*(H+2), K=128, N=3*384) + row-shifted adds ----
        y1 = jnp.dot(x_ref[...], t1_ref[...], preferred_element_type=jnp.float32)
        acc1 = jnp.concatenate(
            [y1[n * SR1 + 0: n * SR1 + H, 0:WC1]
             + y1[n * SR1 + 1: n * SR1 + 1 + H, WC1:2 * WC1]
             + y1[n * SR1 + 2: n * SR1 + 2 + H, 2 * WC1:3 * WC1]
             for n in range(N)], axis=0)                                        # (N*H, 384) f32

        z1 = batchnorm_relu(acc1, s1_ref, s1t_ref, g1_ref, bt1_ref,
                            CNT1).astype(jnp.bfloat16)

        # ---- 2x2 / stride-2 max pool via 0/1 selection matmuls (bf16, exact) ----
        # NOTE: r_even/r_odd are O(N^2); fine at N=2, switch to strided reads for big batch.
        rmax = jnp.maximum(
            jnp.dot(re_ref[...], z1, preferred_element_type=jnp.float32),
            jnp.dot(ro_ref[...], z1, preferred_element_type=jnp.float32)
        ).astype(jnp.bfloat16)                                                  # (N*Hp, 384)
        pooled = jnp.maximum(
            jnp.dot(rmax, ee_ref[...], preferred_element_type=jnp.float32),
            jnp.dot(rmax, eo_ref[...], preferred_element_type=jnp.float32)
        ).astype(jnp.bfloat16)                                                  # (N*Hp, 256)

        # ---- conv2 input slab: pooled rows interleaved with 16-row zero pad blocks ----
        zpad = jnp.zeros((16, KP2), jnp.bfloat16)
        pieces = [zpad]
        for n in range(N):
            pieces.append(pooled[n * Hp:(n + 1) * Hp, :])
            pieces.append(zpad)
        xp2 = jnp.concatenate(pieces, axis=0)                                   # (16+N*32, 256)

        # ---- conv2: ONE bf16 matmul (K=256, N=3*384) + row-shifted adds ----
        y2 = jnp.dot(xp2, t2_ref[...], preferred_element_type=jnp.float32)
        acc2 = jnp.concatenate(
            [y2[n * SR2 + 15: n * SR2 + 15 + Hp, 0:WC2]
             + y2[n * SR2 + 16: n * SR2 + 16 + Hp, WC2:2 * WC2]
             + y2[n * SR2 + 17: n * SR2 + 17 + Hp, 2 * WC2:3 * WC2]
             for n in range(N)], axis=0)                                        # (N*Hp, 384) f32

        o_ref[...] = batchnorm_relu(acc2, s2_ref, s2t_ref, g2_ref, bt2_ref,
                                    CNT2).astype(o_ref.dtype)

    return kernel


def conv_blocks(x2, m, N, H, W):
    Hp, Wp = H // 2, W // 2
    kernel = make_fused_kernel(N, H, W)
    args = (x2, m["t1"], m["r_even"], m["r_odd"], m["e_even"], m["e_odd"],
            m["s1"], m["s1t"], m["gamma1"], m["beta1"],
            m["t2"], m["s2"], m["s2t"], m["gamma2"], m["beta2"])

    def full(a):
        return pl.BlockSpec(a.shape, lambda i: (0,) * a.ndim)

    return pl.pallas_call(
        kernel,
        out_shape=jax.ShapeDtypeStruct((N * Hp, Wp * C2), jnp.bfloat16),
        grid=(1,),
        in_specs=[full(a) for a in args],
        out_specs=pl.BlockSpec((N * Hp, Wp * C2), lambda i: (0, 0)),
        compiler_params=pltpu.CompilerParams(dimension_semantics=("arbitrary",)),
    )(*args)


def fc_kernel(x_ref, w_ref, b_ref, o_ref):
    # output last dim is 10 (<128): a single tiny masked store, negligible here.
    o_ref[...] = (jnp.dot(x_ref[...], w_ref[...], preferred_element_type=jnp.float32)
                  + b_ref[...])


def fc(x, w, b):
    M, K = x.shape
    _, Nout = w.shape
    return pl.pallas_call(
        fc_kernel,
        out_shape=jax.ShapeDtypeStruct((M, Nout), jnp.float32),
        grid=(1,),
        in_specs=[pl.BlockSpec((M, K), lambda i: (0, 0)),
                  pl.BlockSpec((K, Nout), lambda i: (0, 0)),
                  pl.BlockSpec((1, Nout), lambda i: (0, 0))],
        out_specs=pl.BlockSpec((M, Nout), lambda i: (0, 0)),
    )(x, w, b.reshape(1, Nout))


# -------------------- trace-time derived matrices (weights only) -----------

def _conv_to_toeplitz_cat(wconv, W, cin_pad):
    """(Cout, Cin, 3, 3) torch conv weight -> (W*cin_pad, 3*W*Cout) bf16 block-Toeplitz:
       padding=1 kw & Cin contraction folded in; the 3 kh taps concatenated on the lane axis."""
    Cout, Cin = wconv.shape[0], wconv.shape[1]
    if cin_pad > Cin:
        wconv = jnp.pad(wconv, ((0, 0), (0, cin_pad - Cin), (0, 0), (0, 0)))
    Cin = cin_pad
    wp = jnp.arange(W * Cin) // Cin
    ci = jnp.arange(W * Cin) % Cin
    w = jnp.arange(W * Cout) // Cout
    co = jnp.arange(W * Cout) % Cout
    kw = wp[:, None] - w[None, :] + 1
    valid = (kw >= 0) & (kw <= 2)
    kw_c = jnp.clip(kw, 0, 2)
    mats = []
    for kh in range(3):
        w_kh = wconv[:, :, kh, :]                         # (Cout, Cin, 3)
        vals = w_kh[co[None, :], ci[:, None], kw_c]       # (W*Cin, W*Cout)
        mats.append(jnp.where(valid, vals, 0.0))
    return jnp.concatenate(mats, axis=1).astype(jnp.bfloat16)


def _channel_indicators(W, C):
    col_c = jnp.arange(W * C) % C
    s = (col_c[:, None] == jnp.arange(C)[None, :]).astype(jnp.float32)   # (W*C, C)
    return s, s.T


def _pool_selectors(N, H, W, c_in, c_out):
    """Row (even/odd) and column (even/odd) 0/1 selectors for 2x2/stride-2 max pool.
       Column selectors also pad channels c_in -> c_out with zero columns."""
    Hp, Wp = H // 2, W // 2
    q = jnp.arange(N * Hp)
    src = jnp.arange(N * H)
    even_row = (q // Hp) * H + 2 * (q % Hp)
    r_even = (src[None, :] == even_row[:, None]).astype(jnp.bfloat16)    # (N*Hp, N*H)
    r_odd = (src[None, :] == (even_row + 1)[:, None]).astype(jnp.bfloat16)
    i = jnp.arange(W * c_in)
    j = jnp.arange(Wp * c_out)
    same_c = (i % c_in)[:, None] == (j % c_out)[None, :]                 # pad channels never match
    e_even = (((i // c_in)[:, None] == 2 * (j // c_out)[None, :]) & same_c).astype(jnp.bfloat16)
    e_odd = (((i // c_in)[:, None] == 2 * (j // c_out)[None, :] + 1) & same_c).astype(jnp.bfloat16)
    return r_even, r_odd, e_even, e_odd


def init_params(key):
    ks = jax.random.split(key, 10)
    return {
        "w1": 0.1 * jax.random.normal(ks[0], (12, 3, 3, 3), jnp.float32),
        "b1": 0.1 * jax.random.normal(ks[1], (12,), jnp.float32),
        "gamma1": 1.0 + 0.1 * jax.random.normal(ks[2], (12,), jnp.float32),
        "beta1": 0.1 * jax.random.normal(ks[3], (12,), jnp.float32),
        "w2": 0.05 * jax.random.normal(ks[4], (24, 12, 3, 3), jnp.float32),
        "b2": 0.1 * jax.random.normal(ks[5], (24,), jnp.float32),
        "gamma2": 1.0 + 0.1 * jax.random.normal(ks[6], (24,), jnp.float32),
        "beta2": 0.1 * jax.random.normal(ks[7], (24,), jnp.float32),
        "wfc": 0.01 * jax.random.normal(ks[8], (10, 24 * 16 * 16), jnp.float32),
        "bfc": 0.01 * jax.random.normal(ks[9], (10,), jnp.float32),
    }


def prepare_params(p, N, H, W):
    """Precompute kernel-ready matrices once (weight-only, outside the forward)."""
    Hp, Wp = H // 2, W // 2
    s1, s1t = _channel_indicators(W, C1)
    s2, s2t = _channel_indicators(Wp, C2)
    r_even, r_odd, e_even, e_odd = _pool_selectors(N, H, W, C1, C1P)
    # Fold the torch .view(N,-1) NCHW flatten into the fc weight (activation stays NHWC-flat).
    wfc_perm = jnp.transpose(p["wfc"].reshape(10, C2, Hp, Wp),
                             (2, 3, 1, 0)).reshape(Hp * Wp * C2, 10).astype(jnp.bfloat16)
    # NOTE: b1/b2 are intentionally unused: a constant per-channel bias before
    # training-mode BatchNorm cancels exactly in the mean subtraction.
    return {
        "t1": _conv_to_toeplitz_cat(p["w1"], W, C0P),      # (128, 1152) bf16
        "t2": _conv_to_toeplitz_cat(p["w2"], Wp, C1P),     # (256, 1152) bf16
        "s1": s1, "s1t": s1t, "s2": s2, "s2t": s2t,
        "r_even": r_even, "r_odd": r_odd, "e_even": e_even, "e_odd": e_odd,
        "gamma1": p["gamma1"].reshape(1, C1), "beta1": p["beta1"].reshape(1, C1),
        "gamma2": p["gamma2"].reshape(1, C2), "beta2": p["beta2"].reshape(1, C2),
        "wfc_perm": wfc_perm, "bfc": p["bfc"],
    }


# ------------------------------- forward ------------------------------------

def image_model_forward(x_nchw, mats):
    # TODO(synk): the PyTorch forward's print(out.shape) side effects are not reproduced.
    N, _, H, W = x_nchw.shape
    Hp, Wp = H // 2, W // 2
    x = jnp.transpose(x_nchw, (0, 2, 3, 1)).astype(jnp.float32)      # NHWC
    x = jnp.pad(x, ((0, 0), (1, 1), (0, 0), (0, 1)))                 # H pad 1, Cin 3->4 (zeros)
    x2 = x.reshape(N * (H + 2), W * C0P).astype(jnp.bfloat16)        # lane-dense (68, 128) slab
    z2 = conv_blocks(x2, mats, N, H, W)                              # (N*Hp, Wp*C2) bf16, fused
    a2 = z2.reshape(N, Hp * Wp * C2)                                 # pure-metadata reshape
    return fc(a2, mats["wfc_perm"], mats["bfc"])                     # (N, 10) f32


# -------------------------- pure-JAX reference ------------------------------

def reference_forward(x_nchw, p):
    x = jnp.transpose(x_nchw, (0, 2, 3, 1)).astype(jnp.float32)

    def conv3x3(inp, w, b):
        n, h, ww, c = inp.shape
        xp = jnp.pad(inp, ((0, 0), (1, 1), (1, 1), (0, 0)))
        cols = [xp[:, kh:kh + h, kw:kw + ww, :] for kh in range(3) for kw in range(3)]
        pm = jnp.stack(cols, axis=-1).reshape(n, h, ww, c * 9)
        wm = w.reshape(w.shape[0], -1).T
        return pm @ wm + b

    def bn_relu(y, gamma, beta):
        mean = y.mean(axis=(0, 1, 2))
        var = ((y - mean) ** 2).mean(axis=(0, 1, 2))
        return jnp.maximum(gamma * (y - mean) / jnp.sqrt(var + EPS) + beta, 0.0)

    y1 = bn_relu(conv3x3(x, p["w1"], p["b1"]), p["gamma1"], p["beta1"])
    n, h, w, c = y1.shape
    y1 = y1.reshape(n, h // 2, 2, w // 2, 2, c).max(axis=(2, 4))
    y2 = bn_relu(conv3x3(y1, p["w2"], p["b2"]), p["gamma2"], p["beta2"])
    a = jnp.transpose(y2, (0, 3, 1, 2)).reshape(n, -1)
    return a @ p["wfc"].T + p["bfc"]


if __name__ == "__main__":
    k_x, k_p = jax.random.split(jax.random.PRNGKey(0))
    x = jax.random.normal(k_x, (2, 3, 32, 32), jnp.float32)   # NCHW like PyTorch
    params = init_params(k_p)
    mats = prepare_params(params, N=2, H=32, W=32)

    fwd = jax.jit(image_model_forward)
    out = jax.block_until_ready(fwd(x, mats))

    assert out.shape == (2, 10) and out.dtype == jnp.float32
    assert bool(jnp.all(jnp.isfinite(out)))
    ref = reference_forward(x, params)
    assert bool(jnp.allclose(out, ref, atol=5e-2, rtol=5e-2)), (
        "mismatch vs reference, max abs err = "
        + str(float(jnp.max(jnp.abs(out - ref)))))
    print("KERNEL_OK")
</pallas_src>

<mosaic_0001>
module attributes {stable_mosaic.version = 11 : i64} {
  func.func @fc_kernel(%arg0: i32, %arg1: memref<2x6144xbf16, #tpu.memory_space<vmem>>, %arg2: memref<6144x10xbf16, #tpu.memory_space<vmem>>, %arg3: memref<1x10xf32, #tpu.memory_space<vmem>>, %arg4: memref<2x10xf32, #tpu.memory_space<vmem>>) attributes {dimension_semantics = [#tpu.dimension_semantics<arbitrary>], iteration_bounds = array<i64: 1>, scalar_prefetch = 0 : i64, scratch_operands = 0 : i64, tpu.core_type = #tpu.core_type<tc>, window_params = [{pipeline_mode = #tpu.pipeline_mode<synchronous>, transform_indices = @transform_0, window_bounds = array<i64: 2, 6144>}, {pipeline_mode = #tpu.pipeline_mode<synchronous>, transform_indices = @transform_1, window_bounds = array<i64: 6144, 10>}, {pipeline_mode = #tpu.pipeline_mode<synchronous>, transform_indices = @transform_2, window_bounds = array<i64: 1, 10>}, {pipeline_mode = #tpu.pipeline_mode<synchronous>, transform_indices = @transform_3, window_bounds = array<i64: 2, 10>}]} {
    %c0 = arith.constant 0 : index
    %c0_0 = arith.constant 0 : index
    %0 = vector.load %arg1[%c0, %c0_0] : memref<2x6144xbf16, #tpu.memory_space<vmem>>, vector<2x6144xbf16>
    %c0_1 = arith.constant 0 : index
    %c0_2 = arith.constant 0 : index
    %1 = vector.load %arg2[%c0_1, %c0_2] : memref<6144x10xbf16, #tpu.memory_space<vmem>>, vector<6144x10xbf16>
    %cst = arith.constant dense<0.000000e+00> : vector<2x10xf32>
    %2 = tpu.matmul %0, %1, %cst {dimension_numbers = #tpu.dot_dimension_numbers<[1], [0], [0], [1], [0, 0, 1, 1], [], []>} : vector<2x6144xbf16>, vector<6144x10xbf16>, vector<2x10xf32> -> vector<2x10xf32>
    %c0_3 = arith.constant 0 : index
    %c0_4 = arith.constant 0 : index
    %3 = vector.load %arg3[%c0_3, %c0_4] : memref<1x10xf32, #tpu.memory_space<vmem>>, vector<1x10xf32>
    %4 = vector.broadcast %3 : vector<1x10xf32> to vector<2x10xf32>
    %5 = arith.addf %2, %4 : vector<2x10xf32>
    %c0_5 = arith.constant 0 : index
    %c0_6 = arith.constant 0 : index
    %6 = vector.load %arg4[%c0_5, %c0_6] : memref<2x10xf32, #tpu.memory_space<vmem>>, vector<2x10xf32>
    tpu.vector_store %arg4[%c0_5, %c0_6], %5 {strides = array<i32>} : memref<2x10xf32, #tpu.memory_space<vmem>>, vector<2x10xf32>,
    return
  }
  func.func @transform_0(%arg0: i32) -> (i32, i32) {
    %c0_i32 = arith.constant 0 : i32
    %c0_i32_0 = arith.constant 0 : i32
    %c0_i32_1 = arith.constant 0 : i32
    return %c0_i32, %c0_i32_0 : i32, i32
  }
  func.func @transform_1(%arg0: i32) -> (i32, i32) {
    %c0_i32 = arith.constant 0 : i32
    %c0_i32_0 = arith.constant 0 : i32
    %c0_i32_1 = arith.constant 0 : i32
    return %c0_i32, %c0_i32_0 : i32, i32
  }
  func.func @transform_2(%arg0: i32) -> (i32, i32) {
    %c0_i32 = arith.constant 0 : i32
    %c0_i32_0 = arith.constant 0 : i32
    %c0_i32_1 = arith.constant 0 : i32
    return %c0_i32, %c0_i32_0 : i32, i32
  }
  func.func @transform_3(%arg0: i32) -> (i32, i32) {
    %c0_i32 = arith.constant 0 : i32
    %c0_i32_0 = arith.constant 0 : i32
    %c0_i32_1 = arith.constant 0 : i32
    return %c0_i32, %c0_i32_0 : i32, i32
  }
}

module attributes {stable_mosaic.version = 11 : i64} {
  func.func @kernel(%arg0: i32, %arg1: memref<68x128xbf16, #tpu.memory_space<vmem>>, %arg2: memref<128x1152xbf16, #tpu.memory_space<vmem>>, %arg3: memref<32x64xbf16, #tpu.memory_space<vmem>>, %arg4: memref<32x64xbf16, #tpu.memory_space<vmem>>, %arg5: memref<384x256xbf16, #tpu.memory_space<vmem>>, %arg6: memref<384x256xbf16, #tpu.memory_space<vmem>>, %arg7: memref<384x12xf32, #tpu.memory_space<vmem>>, %arg8: memref<12x384xf32, #tpu.memory_space<vmem>>, %arg9: memref<1x12xf32, #tpu.memory_space<vmem>>, %arg10: memref<1x12xf32, #tpu.memory_space<vmem>>, %arg11: memref<256x1152xbf16, #tpu.memory_space<vmem>>, %arg12: memref<384x24xf32, #tpu.memory_space<vmem>>, %arg13: memref<24x384xf32, #tpu.memory_space<vmem>>, %arg14: memref<1x24xf32, #tpu.memory_space<vmem>>, %arg15: memref<1x24xf32, #tpu.memory_space<vmem>>, %arg16: memref<32x384xbf16, #tpu.memory_space<vmem>>) attributes {dimension_semantics = [#tpu.dimension_semantics<arbitrary>], iteration_bounds = array<i64: 1>, scalar_prefetch = 0 : i64, scratch_operands = 0 : i64, tpu.core_type = #tpu.core_type<tc>, window_params = [{pipeline_mode = #tpu.pipeline_mode<synchronous>, transform_indices = @transform_0, window_bounds = array<i64: 68, 128>}, {pipeline_mode = #tpu.pipeline_mode<synchronous>, transform_indices = @transform_1, window_bounds = array<i64: 128, 1152>}, {pipeline_mode = #tpu.pipeline_mode<synchronous>, transform_indices = @transform_2, window_bounds = array<i64: 32, 64>}, {pipeline_mode = #tpu.pipeline_mode<synchronous>, transform_indices = @transform_3, window_bounds = array<i64: 32, 64>}, {pipeline_mode = #tpu.pipeline_mode<synchronous>, transform_indices = @transform_4, window_bounds = array<i64: 384, 256>}, {pipeline_mode = #tpu.pipeline_mode<synchronous>, transform_indices = @transform_5, window_bounds = array<i64: 384, 256>}, {pipeline_mode = #tpu.pipeline_mode<synchronous>, transform_indices = @transform_6, window_bounds = array<i64: 384, 12>}, {pipeline_mode = #tpu.pipeline_mode<synchronous>, transform_indices = @transform_7, window_bounds = array<i64: 12, 384>}, {pipeline_mode = #tpu.pipeline_mode<synchronous>, transform_indices = @transform_8, window_bounds = array<i64: 1, 12>}, {pipeline_mode = #tpu.pipeline_mode<synchronous>, transform_indices = @transform_9, window_bounds = array<i64: 1, 12>}, {pipeline_mode = #tpu.pipeline_mode<synchronous>, transform_indices = @transform_10, window_bounds = array<i64: 256, 1152>}, {pipeline_mode = #tpu.pipeline_mode<synchronous>, transform_indices = @transform_11, window_bounds = array<i64: 384, 24>}, {pipeline_mode = #tpu.pipeline_mode<synchronous>, transform_indices = @transform_12, window_bounds = array<i64: 24, 384>}, {pipeline_mode = #tpu.pipeline_mode<synchronous>, transform_indices = @transform_13, window_bounds = array<i64: 1, 24>}, {pipeline_mode = #tpu.pipeline_mode<synchronous>, transform_indices = @transform_14, window_bounds = array<i64: 1, 24>}, {pipeline_mode = #tpu.pipeline_mode<synchronous>, transform_indices = @transform_15, window_bounds = array<i64: 32, 384>}]} {
    %c0 = arith.constant 0 : index
    %c0_0 = arith.constant 0 : index
    %0 = vector.load %arg1[%c0, %c0_0] : memref<68x128xbf16, #tpu.memory_space<vmem>>, vector<68x128xbf16>
    %c0_1 = arith.constant 0 : index
    %c0_2 = arith.constant 0 : index
    %1 = vector.load %arg2[%c0_1, %c0_2] : memref<128x1152xbf16, #tpu.memory_space<vmem>>, vector<128x1152xbf16>
    %cst = arith.constant dense<0.000000e+00> : vector<68x1152xf32>
    %2 = tpu.matmul %0, %1, %cst {dimension_numbers = #tpu.dot_dimension_numbers<[1], [0], [0], [1], [0, 0, 1, 1], [], []>} : vector<68x128xbf16>, vector<128x1152xbf16>, vector<68x1152xf32> -> vector<68x1152xf32>
    %3 = vector.extract_strided_slice %2 {offsets = [0, 0], sizes = [32, 384], strides = [1, 1]} : vector<68x1152xf32> to vector<32x384xf32>
    %4 = vector.extract_strided_slice %2 {offsets = [1, 384], sizes = [32, 384], strides = [1, 1]} : vector<68x1152xf32> to vector<32x384xf32>
    %5 = arith.addf %3, %4 : vector<32x384xf32>
    %6 = vector.extract_strided_slice %2 {offsets = [2, 768], sizes = [32, 384], strides = [1, 1]} : vector<68x1152xf32> to vector<32x384xf32>
    %7 = arith.addf %5, %6 : vector<32x384xf32>
    %8 = vector.extract_strided_slice %2 {offsets = [34, 0], sizes = [32, 384], strides = [1, 1]} : vector<68x1152xf32> to vector<32x384xf32>
    %9 = vector.extract_strided_slice %2 {offsets = [35, 384], sizes = [32, 384], strides = [1, 1]} : vector<68x1152xf32> to vector<32x384xf32>
    %10 = arith.addf %8, %9 : vector<32x384xf32>
    %11 = vector.extract_strided_slice %2 {offsets = [36, 768], sizes = [32, 384], strides = [1, 1]} : vector<68x1152xf32> to vector<32x384xf32>
    %12 = arith.addf %10, %11 : vector<32x384xf32>
    %13 = tpu.concatenate %7, %12 in 0 : vector<32x384xf32>, vector<32x384xf32> -> vector<64x384xf32>
    %cst_3 = arith.constant dense<0.000000e+00> : vector<384xf32>
    %14 = vector.multi_reduction <add>, %13, %cst_3 [0] : vector<64x384xf32> to vector<384xf32>
    %15 = vector.shape_cast %14 : vector<384xf32> to vector<1x384xf32>
    %16 = arith.mulf %13, %13 : vector<64x384xf32>
    %cst_4 = arith.constant dense<0.000000e+00> : vector<384xf32>
    %17 = vector.multi_reduction <add>, %16, %cst_4 [0] : vector<64x384xf32> to vector<384xf32>
    %18 = vector.shape_cast %17 : vector<384xf32> to vector<1x384xf32>
    %19 = tpu.concatenate %15, %18 in 0 : vector<1x384xf32>, vector<1x384xf32> -> vector<2x384xf32>
    %c0_5 = arith.constant 0 : index
    %c0_6 = arith.constant 0 : index
    %20 = vector.load %arg7[%c0_5, %c0_6] : memref<384x12xf32, #tpu.memory_space<vmem>>, vector<384x12xf32>
    %cst_7 = arith.constant dense<0.000000e+00> : vector<2x12xf32>
    %21 = tpu.matmul %19, %20, %cst_7 {dimension_numbers = #tpu.dot_dimension_numbers<[1], [0], [0], [1], [0, 0, 1, 1], [], []>} : vector<2x384xf32>, vector<384x12xf32>, vector<2x12xf32> -> vector<2x12xf32>
    %cst_8 = arith.constant 2.048000e+03 : f32
    %22 = vector.broadcast %cst_8 : f32 to vector<2x12xf32>
    %23 = arith.divf %21, %22 : vector<2x12xf32>
    %24 = vector.extract_strided_slice %23 {offsets = [0, 0], sizes = [1, 12], strides = [1, 1]} : vector<2x12xf32> to vector<1x12xf32>
    %25 = vector.extract_strided_slice %23 {offsets = [1, 0], sizes = [1, 12], strides = [1, 1]} : vector<2x12xf32> to vector<1x12xf32>
    %26 = arith.mulf %24, %24 : vector<1x12xf32>
    %27 = arith.subf %25, %26 : vector<1x12xf32>
    %c0_9 = arith.constant 0 : index
    %c0_10 = arith.constant 0 : index
    %28 = vector.load %arg9[%c0_9, %c0_10] : memref<1x12xf32, #tpu.memory_space<vmem>>, vector<1x12xf32>
    %cst_11 = arith.constant 9.99999974E-6 : f32
    %29 = vector.broadcast %cst_11 : f32 to vector<1x12xf32>
    %30 = arith.addf %27, %29 : vector<1x12xf32>
    %31 = math.rsqrt %30 : vector<1x12xf32>
    %32 = arith.mulf %28, %31 : vector<1x12xf32>
    %c0_12 = arith.constant 0 : index
    %c0_13 = arith.constant 0 : index
    %33 = vector.load %arg10[%c0_12, %c0_13] : memref<1x12xf32, #tpu.memory_space<vmem>>, vector<1x12xf32>
    %34 = arith.mulf %24, %32 : vector<1x12xf32>
    %35 = arith.subf %33, %34 : vector<1x12xf32>
    %36 = tpu.concatenate %32, %35 in 0 : vector<1x12xf32>, vector<1x12xf32> -> vector<2x12xf32>
    %c0_14 = arith.constant 0 : index
    %c0_15 = arith.constant 0 : index
    %37 = vector.load %arg8[%c0_14, %c0_15] : memref<12x384xf32, #tpu.memory_space<vmem>>, vector<12x384xf32>
    %cst_16 = arith.constant dense<0.000000e+00> : vector<2x384xf32>
    %38 = tpu.matmul %36, %37, %cst_16 {dimension_numbers = #tpu.dot_dimension_numbers<[1], [0], [0], [1], [0, 0, 1, 1], [], []>} : vector<2x12xf32>, vector<12x384xf32>, vector<2x384xf32> -> vector<2x384xf32>
    %39 = vector.extract_strided_slice %38 {offsets = [0, 0], sizes = [1, 384], strides = [1, 1]} : vector<2x384xf32> to vector<1x384xf32>
    %40 = vector.broadcast %39 : vector<1x384xf32> to vector<64x384xf32>
    %41 = arith.mulf %13, %40 : vector<64x384xf32>
    %42 = vector.extract_strided_slice %38 {offsets = [1, 0], sizes = [1, 384], strides = [1, 1]} : vector<2x384xf32> to vector<1x384xf32>
    %43 = vector.broadcast %42 : vector<1x384xf32> to vector<64x384xf32>
    %44 = arith.addf %41, %43 : vector<64x384xf32>
    %cst_17 = arith.constant 0.000000e+00 : f32
    %45 = vector.broadcast %cst_17 : f32 to vector<64x384xf32>
    %46 = arith.maximumf %44, %45 : vector<64x384xf32>
    %47 = arith.truncf %46 : vector<64x384xf32> to vector<64x384xbf16>
    %c0_18 = arith.constant 0 : index
    %c0_19 = arith.constant 0 : index
    %48 = vector.load %arg3[%c0_18, %c0_19] : memref<32x64xbf16, #tpu.memory_space<vmem>>, vector<32x64xbf16>
    %cst_20 = arith.constant dense<0.000000e+00> : vector<32x384xf32>
    %49 = tpu.matmul %48, %47, %cst_20 {dimension_numbers = #tpu.dot_dimension_numbers<[1], [0], [0], [1], [0, 0, 1, 1], [], []>} : vector<32x64xbf16>, vector<64x384xbf16>, vector<32x384xf32> -> vector<32x384xf32>
    %c0_21 = arith.constant 0 : index
    %c0_22 = arith.constant 0 : index
    %50 = vector.load %arg4[%c0_21, %c0_22] : memref<32x64xbf16, #tpu.memory_space<vmem>>, vector<32x64xbf16>
    %cst_23 = arith.constant dense<0.000000e+00> : vector<32x384xf32>
    %51 = tpu.matmul %50, %47, %cst_23 {dimension_numbers = #tpu.dot_dimension_numbers<[1], [0], [0], [1], [0, 0, 1, 1], [], []>} : vector<32x64xbf16>, vector<64x384xbf16>, vector<32x384xf32> -> vector<32x384xf32>
    %52 = arith.maximumf %49, %51 : vector<32x384xf32>
    %53 = arith.truncf %52 : vector<32x384xf32> to vector<32x384xbf16>
    %c0_24 = arith.constant 0 : index
    %c0_25 = arith.constant 0 : index
    %54 = vector.load %arg5[%c0_24, %c0_25] : memref<384x256xbf16, #tpu.memory_space<vmem>>, vector<384x256xbf16>
    %cst_26 = arith.constant dense<0.000000e+00> : vector<32x256xf32>
    %55 = tpu.matmul %53, %54, %cst_26 {dimension_numbers = #tpu.dot_dimension_numbers<[1], [0], [0], [1], [0, 0, 1, 1], [], []>} : vector<32x384xbf16>, vector<384x256xbf16>, vector<32x256xf32> -> vector<32x256xf32>
    %c0_27 = arith.constant 0 : index
    %c0_28 = arith.constant 0 : index
    %56 = vector.load %arg6[%c0_27, %c0_28] : memref<384x256xbf16, #tpu.memory_space<vmem>>, vector<384x256xbf16>
    %cst_29 = arith.constant dense<0.000000e+00> : vector<32x256xf32>
    %57 = tpu.matmul %53, %56, %cst_29 {dimension_numbers = #tpu.dot_dimension_numbers<[1], [0], [0], [1], [0, 0, 1, 1], [], []>} : vector<32x384xbf16>, vector<384x256xbf16>, vector<32x256xf32> -> vector<32x256xf32>
    %58 = arith.maximumf %55, %57 : vector<32x256xf32>
    %59 = arith.truncf %58 : vector<32x256xf32> to vector<32x256xbf16>
    %cst_30 = arith.constant 0.000000e+00 : bf16
    %60 = vector.broadcast %cst_30 : bf16 to vector<16x256xbf16>
    %61 = vector.extract_strided_slice %59 {offsets = [0, 0], sizes = [16, 256], strides = [1, 1]} : vector<32x256xbf16> to vector<16x256xbf16>
    %62 = vector.extract_strided_slice %59 {offsets = [16, 0], sizes = [16, 256], strides = [1, 1]} : vector<32x256xbf16> to vector<16x256xbf16>
    %63 = tpu.concatenate %60, %61, %60, %62, %60 in 0 : vector<16x256xbf16>, vector<16x256xbf16>, vector<16x256xbf16>, vector<16x256xbf16>, vector<16x256xbf16> -> vector<80x256xbf16>
    %c0_31 = arith.constant 0 : index
    %c0_32 = arith.constant 0 : index
    %64 = vector.load %arg11[%c0_31, %c0_32] : memref<256x1152xbf16, #tpu.memory_space<vmem>>, vector<256x1152xbf16>
    %cst_33 = arith.constant dense<0.000000e+00> : vector<80x1152xf32>
    %65 = tpu.matmul %63, %64, %cst_33 {dimension_numbers = #tpu.dot_dimension_numbers<[1], [0], [0], [1], [0, 0, 1, 1], [], []>} : vector<80x256xbf16>, vector<256x1152xbf16>, vector<80x1152xf32> -> vector<80x1152xf32>
    %66 = vector.extract_strided_slice %65 {offsets = [15, 0], sizes = [16, 384], strides = [1, 1]} : vector<80x1152xf32> to vector<16x384xf32>
    %67 = vector.extract_strided_slice %65 {offsets = [16, 384], sizes = [16, 384], strides = [1, 1]} : vector<80x1152xf32> to vector<16x384xf32>
    %68 = arith.addf %66, %67 : vector<16x384xf32>
    %69 = vector.extract_strided_slice %65 {offsets = [17, 768], sizes = [16, 384], strides = [1, 1]} : vector<80x1152xf32> to vector<16x384xf32>
    %70 = arith.addf %68, %69 : vector<16x384xf32>
    %71 = vector.extract_strided_slice %65 {offsets = [47, 0], sizes = [16, 384], strides = [1, 1]} : vector<80x1152xf32> to vector<16x384xf32>
    %72 = vector.extract_strided_slice %65 {offsets = [48, 384], sizes = [16, 384], strides = [1, 1]} : vector<80x1152xf32> to vector<16x384xf32>
    %73 = arith.addf %71, %72 : vector<16x384xf32>
    %74 = vector.extract_strided_slice %65 {offsets = [49, 768], sizes = [16, 384], strides = [1, 1]} : vector<80x1152xf32> to vector<16x384xf32>
    %75 = arith.addf %73, %74 : vector<16x384xf32>
    %76 = tpu.concatenate %70, %75 in 0 : vector<16x384xf32>, vector<16x384xf32> -> vector<32x384xf32>
    %cst_34 = arith.constant dense<0.000000e+00> : vector<384xf32>
    %77 = vector.multi_reduction <add>, %76, %cst_34 [0] : vector<32x384xf32> to vector<384xf32>
    %78 = vector.shape_cast %77 : vector<384xf32> to vector<1x384xf32>
    %79 = arith.mulf %76, %76 : vector<32x384xf32>
    %cst_35 = arith.constant dense<0.000000e+00> : vector<384xf32>
    %80 = vector.multi_reduction <add>, %79, %cst_35 [0] : vector<32x384xf32> to vector<384xf32>
    %81 = vector.shape_cast %80 : vector<384xf32> to vector<1x384xf32>
    %82 = tpu.concatenate %78, %81 in 0 : vector<1x384xf32>, vector<1x384xf32> -> vector<2x384xf32>
    %c0_36 = arith.constant 0 : index
    %c0_37 = arith.constant 0 : index
    %83 = vector.load %arg12[%c0_36, %c0_37] : memref<384x24xf32, #tpu.memory_space<vmem>>, vector<384x24xf32>
    %cst_38 = arith.constant dense<0.000000e+00> : vector<2x24xf32>
    %84 = tpu.matmul %82, %83, %cst_38 {dimension_numbers = #tpu.dot_dimension_numbers<[1], [0], [0], [1], [0, 0, 1, 1], [], []>} : vector<2x384xf32>, vector<384x24xf32>, vector<2x24xf32> -> vector<2x24xf32>
    %cst_39 = arith.constant 5.120000e+02 : f32
    %85 = vector.broadcast %cst_39 : f32 to vector<2x24xf32>
    %86 = arith.divf %84, %85 : vector<2x24xf32>
    %87 = vector.extract_strided_slice %86 {offsets = [0, 0], sizes = [1, 24], strides = [1, 1]} : vector<2x24xf32> to vector<1x24xf32>
    %88 = vector.extract_strided_slice %86 {offsets = [1, 0], sizes = [1, 24], strides = [1, 1]} : vector<2x24xf32> to vector<1x24xf32>
    %89 = arith.mulf %87, %87 : vector<1x24xf32>
    %90 = arith.subf %88, %89 : vector<1x24xf32>
    %c0_40 = arith.constant 0 : index
    %c0_41 = arith.constant 0 : index
    %91 = vector.load %arg14[%c0_40, %c0_41] : memref<1x24xf32, #tpu.memory_space<vmem>>, vector<1x24xf32>
    %cst_42 = arith.constant 9.99999974E-6 : f32
    %92 = vector.broadcast %cst_42 : f32 to vector<1x24xf32>
    %93 = arith.addf %90, %92 : vector<1x24xf32>
    %94 = math.rsqrt %93 : vector<1x24xf32>
    %95 = arith.mulf %91, %94 : vector<1x24xf32>
    %c0_43 = arith.constant 0 : index
    %c0_44 = arith.constant 0 : index
    %96 = vector.load %arg15[%c0_43, %c0_44] : memref<1x24xf32, #tpu.memory_space<vmem>>, vector<1x24xf32>
    %97 = arith.mulf %87, %95 : vector<1x24xf32>
    %98 = arith.subf %96, %97 : vector<1x24xf32>
    %99 = tpu.concatenate %95, %98 in 0 : vector<1x24xf32>, vector<1x24xf32> -> vector<2x24xf32>
    %c0_45 = arith.constant 0 : index
    %c0_46 = arith.constant 0 : index
    %100 = vector.load %arg13[%c0_45, %c0_46] : memref<24x384xf32, #tpu.memory_space<vmem>>, vector<24x384xf32>
    %cst_47 = arith.constant dense<0.000000e+00> : vector<2x384xf32>
    %101 = tpu.matmul %99, %100, %cst_47 {dimension_numbers = #tpu.dot_dimension_numbers<[1], [0], [0], [1], [0, 0, 1, 1], [], []>} : vector<2x24xf32>, vector<24x384xf32>, vector<2x384xf32> -> vector<2x384xf32>
    %102 = vector.extract_strided_slice %101 {offsets = [0, 0], sizes = [1, 384], strides = [1, 1]} : vector<2x384xf32> to vector<1x384xf32>
    %103 = vector.broadcast %102 : vector<1x384xf32> to vector<32x384xf32>
    %104 = arith.mulf %76, %103 : vector<32x384xf32>
    %105 = vector.extract_strided_slice %101 {offsets = [1, 0], sizes = [1, 384], strides = [1, 1]} : vector<2x384xf32> to vector<1x384xf32>
    %106 = vector.broadcast %105 : vector<1x384xf32> to vector<32x384xf32>
    %107 = arith.addf %104, %106 : vector<32x384xf32>
    %cst_48 = arith.constant 0.000000e+00 : f32
    %108 = vector.broadcast %cst_48 : f32 to vector<32x384xf32>
    %109 = arith.maximumf %107, %108 : vector<32x384xf32>
    %110 = arith.truncf %109 : vector<32x384xf32> to vector<32x384xbf16>
    %c0_49 = arith.constant 0 : index
    %c0_50 = arith.constant 0 : index
    %111 = vector.load %arg16[%c0_49, %c0_50] : memref<32x384xbf16, #tpu.memory_space<vmem>>, vector<32x384xbf16>
    tpu.vector_store %arg16[%c0_49, %c0_50], %110 {strides = array<i32>} : memref<32x384xbf16, #tpu.memory_space<vmem>>, vector<32x384xbf16>,
    return
  }
  func.func @transform_0(%arg0: i32) -> (i32, i32) {
    %c0_i32 = arith.constant 0 : i32
    %c0_i32_0 = arith.constant 0 : i32
    %c0_i32_1 = arith.constant 0 : i32
    return %c0_i32, %c0_i32_0 : i32, i32
  }
  func.func @transform_1(%arg0: i32) -> (i32, i32) {
    %c0_i32 = arith.constant 0 : i32
    %c0_i32_0 = arith.constant 0 : i32
    %c0_i32_1 = arith.constant 0 : i32
    return %c0_i32, %c0_i32_0 : i32, i32
  }
  func.func @transform_2(%arg0: i32) -> (i32, i32) {
    %c0_i32 = arith.constant 0 : i32
    %c0_i32_0 = arith.constant 0 : i32
    %c0_i32_1 = arith.constant 0 : i32
    return %c0_i32, %c0_i32_0 : i32, i32
  }
  func.func @transform_3(%arg0: i32) -> (i32, i32) {
    %c0_i32 = arith.constant 0 : i32
    %c0_i32_0 = arith.constant 0 : i32
    %c0_i32_1 = arith.constant 0 : i32
    return %c0_i32, %c0_i32_0 : i32, i32
  }
  func.func @transform_4(%arg0: i32) -> (i32, i32) {
    %c0_i32 = arith.constant 0 : i32
    %c0_i32_0 = arith.constant 0 : i32
    %c0_i32_1 = arith.constant 0 : i32
    return %c0_i32, %c0_i32_0 : i32, i32
  }
  func.func @transform_5(%arg0: i32) -> (i32, i32) {
    %c0_i32 = arith.constant 0 : i32
    %c0_i32_0 = arith.constant 0 : i32
    %c0_i32_1 = arith.constant 0 : i32
    return %c0_i32, %c0_i32_0 : i32, i32
  }
  func.func @transform_6(%arg0: i32) -> (i32, i32) {
    %c0_i32 = arith.constant 0 : i32
    %c0_i32_0 = arith.constant 0 : i32
    %c0_i32_1 = arith.constant 0 : i32
    return %c0_i32, %c0_i32_0 : i32, i32
  }
  func.func @transform_7(%arg0: i32) -> (i32, i32) {
    %c0_i32 = arith.constant 0 : i32
    %c0_i32_0 = arith.constant 0 : i32
    %c0_i32_1 = arith.constant 0 : i32
    return %c0_i32, %c0_i32_0 : i32, i32
  }
  func.func @transform_8(%arg0: i32) -> (i32, i32) {
    %c0_i32 = arith.constant 0 : i32
    %c0_i32_0 = arith.constant 0 : i32
    %c0_i32_1 = arith.constant 0 : i32
    return %c0_i32, %c0_i32_0 : i32, i32
  }
  func.func @transform_9(%arg0: i32) -> (i32, i32) {
    %c0_i32 = arith.constant 0 : i32
    %c0_i32_0 = arith.constant 0 : i32
    %c0_i32_1 = arith.constant 0 : i32
    return %c0_i32, %c0_i32_0 : i32, i32
  }
  func.func @transform_10(%arg0: i32) -> (i32, i32) {
    %c0_i32 = arith.constant 0 : i32
    %c0_i32_0 = arith.constant 0 : i32
    %c0_i32_1 = arith.constant 0 : i32
    return %c0_i32, %c0_i32_0 : i32, i32
  }
  func.func @transform_11(%arg0: i32) -> (i32, i32) {
    %c0_i32 = arith.constant 0 : i32
    %c0_i32_0 = arith.constant 0 : i32
    %c0_i32_1 = arith.constant 0 : i32
    return %c0_i32, %c0_i32_0 : i32, i32
  }
  func.func @transform_12(%arg0: i32) -> (i32, i32) {
    %c0_i32 = arith.constant 0 : i32
    %c0_i32_0 = arith.constant 0 : i32
    %c0_i32_1 = arith.constant 0 : i32
    return %c0_i32, %c0_i32_0 : i32, i32
  }
  func.func @transform_13(%arg0: i32) -> (i32, i32) {
    %c0_i32 = arith.constant 0 : i32
    %c0_i32_0 = arith.constant 0 : i32
    %c0_i32_1 = arith.constant 0 : i32
    return %c0_i32, %c0_i32_0 : i32, i32
  }
  func.func @transform_14(%arg0: i32) -> (i32, i32) {
    %c0_i32 = arith.constant 0 : i32
    %c0_i32_0 = arith.constant 0 : i32
    %c0_i32_1 = arith.constant 0 : i32
    return %c0_i32, %c0_i32_0 : i32, i32
  }
  func.func @transform_15(%arg0: i32) -> (i32, i32) {
    %c0_i32 = arith.constant 0 : i32
    %c0_i32_0 = arith.constant 0 : i32
    %c0_i32_1 = arith.constant 0 : i32
    return %c0_i32, %c0_i32_0 : i32, i32
  }
}

</mosaic_0001>

<bundles_post_ra>
// kernel: image_model_forward.2
= control target key start
LH: loop header
LB: loop body
LE: loop exit
PB: predicated region body
PF: predicated region fallthrough
CT: control target
= control target key end

     0   :  { %20 = vsyncpa [#allocation3], 0  ;;  %s8122_s0 = inlined_call_operand.vmem [shape: bf16[68,128], index: 0, kind: input, shape index: {}]   ;;  %s8123_s1 = inlined_call_operand.hbm [shape: bf16[128,1152], index: 1, kind: input, shape index: {}]   ;;  %s8124_s2 = inlined_call_operand.hbm [shape: bf16[32,64], index: 2, kind: input, shape index: {}]   ;;  %s8125_s3 = inlined_call_operand.hbm [shape: bf16[32,64], index: 3, kind: input, shape index: {}]   ;;  %s8126_s4 = inlined_call_operand.hbm [shape: bf16[384,256], index: 4, kind: input, shape index: {}]   ;;  %s8127_s5 = inlined_call_operand.hbm [shape: bf16[384,256], index: 5, kind: input, shape index: {}]   ;;  %s8128_s6 = inlined_call_operand.vmem [shape: f32[384,12], index: 6, kind: input, shape index: {}]   ;;  %s8129_s7 = inlined_call_operand.hbm [shape: f32[12,384], index: 7, kind: input, shape index: {}]   ;;  %s8130_s8 = inlined_call_operand.hbm [shape: f32[1,12], index: 8, kind: input, shape index: {}]   ;;  %s8131_s9 = inlined_call_operand.hbm [shape: f32[1,12], index: 9, kind: input, shape index: {}]   ;;  %s8132_s10 = inlined_call_operand.hbm [shape: bf16[256,1152], index: 10, kind: input, shape index: {}]   ;;  %s8133_s11 = inlined_call_operand.vmem [shape: f32[384,24], index: 11, kind: input, shape index: {}]   ;;  %s8134_s12 = inlined_call_operand.hbm [shape: f32[24,384], index: 12, kind: input, shape index: {}]   ;;  %s8135_s13 = inlined_call_operand.hbm [shape: f32[1,24], index: 13, kind: input, shape index: {}]   ;;  %s8136_s14 = inlined_call_operand.hbm [shape: f32[1,24], index: 14, kind: input, shape index: {}]   ;;  %s8137_s15 = inlined_call_operand.vmem [shape: bf16[32,384], index: 15, kind: output, shape index: {}]  }
   0x1   :  { %21 = vsyncpa [#allocation5], 0 }
   0x2   :  { %22 = vsyncpa [#allocation8], 0 }
   0x3   :  { %23 = vsyncpa [#allocation11], 0 }
   0x4   :  { %24 = vsyncpa [#allocation14], 0 }
   0x5   :  { %25 = vsyncpa [#allocation17], 0 }
   0x6   :  { %26 = vsyncpa [#allocation20], 0  ;;  %s6706_s18 = smov [#allocation4]   ;;  %s6428_s22 = scalar_lea.hbm %s8124_s2, 256 }
   0x7   :  { %s46_s19 = sshll.u32 %s6706_s18, 4  ;;  %p6429_p0 = scmp.ne.s32.totalorder %s8124_s2, %s6428_s22  ;;  %s47_s19 = int_to_ptr.vmem [resolvable:$true] %s46_s19 }
   0x8   :  { %p6432_p1 = scmp.lt.u32.totalorder %s6428_s22, %s8124_s2 }
   0xa   :  { %p6434_p2 = pnand %p6432_p1, %p6429_p0 }
   0xc   :  { %6437 = shalt.err (!%p6434_p2)
}
   0xd   :  { %s6438_s27 = scalar_lea.vmem %s47_s19, 256  ;;  %p6443_p4 = scmp.lt.s32.totalorder %s47_s19, %s47_s19 }
   0xe   :  { %p6439_p3 = scmp.ne.s32.totalorder %s47_s19, %s6438_s27  ;;  %p6444_p5 = scmp.lt.s32.totalorder %s6438_s27, %s6438_s27 }
  0x10   :  { %p6445_p6 = por %p6444_p5, %p6443_p4 }
  0x12   :  { %p6446_p7 = pnand %p6445_p6, %p6439_p3 }
  0x14   :  { %6449 = shalt.err (!%p6446_p7)
}
  0x15   :  { %s8138_s28 = smov 64   ;;  %s6708_s29 = smov 4  }
  0x16   :  { %52 = dma.hbm_to_vmem [thread:$0]  %s8124_s2, 256, %s47_s19, [#allocation5], %s8138_s28, %s8138_s28, %s6708_s29  }
  0x17   :  { %s6709_s17 = smov [#allocation7]   ;;  %s6450_s22 = scalar_lea.hbm %s8126_s4, 6144 }
  0x18   :  { %s70_s18 = sshll.u32 %s6709_s17, 4  ;;  %p6451_p8 = scmp.ne.s32.totalorder %s8126_s4, %s6450_s22  ;;  %s71_s18 = int_to_ptr.vmem [resolvable:$true] %s70_s18 }
  0x19   :  { %p6454_p9 = scmp.lt.u32.totalorder %s6450_s22, %s8126_s4 }
  0x1b   :  { %p6456_p10 = pnand %p6454_p9, %p6451_p8 }
  0x1d   :  { %6459 = shalt.err (!%p6456_p10)
}
  0x1e   :  { %s6460_s27 = scalar_lea.vmem %s71_s18, 6144  ;;  %p6465_p12 = scmp.lt.s32.totalorder %s71_s18, %s71_s18 }
  0x1f   :  { %p6461_p11 = scmp.ne.s32.totalorder %s71_s18, %s6460_s27  ;;  %p6466_p13 = scmp.lt.s32.totalorder %s6460_s27, %s6460_s27 }
  0x21   :  { %p6467_p0 = por %p6466_p13, %p6465_p12 }
  0x23   :  { %p6468_p1 = pnand %p6467_p0, %p6461_p11 }
  0x25   :  { %6471 = shalt.err (!%p6468_p1)
}
  0x26   :  { %s8139_s2 = smov 128   ;;  %s8140_s19 = smov 8  }
  0x27   :  { %76 = dma.hbm_to_vmem [thread:$0]  %s8126_s4, 6144, %s71_s18, [#allocation8], %s8139_s2, %s8139_s2, %s8140_s19  }
  0x28   :  { %s6712_s17 = smov [#allocation10]   ;;  %s6472_s23 = scalar_lea.hbm %s8129_s7, 768 }
  0x29   :  { %s96_s20 = sshll.u32 %s6712_s17, 4  ;;  %p6473_p2 = scmp.ne.s32.totalorder %s8129_s7, %s6472_s23  ;;  %s97_s20 = int_to_ptr.vmem [resolvable:$true] %s96_s20 }
  0x2a   :  { %p6476_p3 = scmp.lt.u32.totalorder %s6472_s23, %s8129_s7 }
  0x2c   :  { %p6478_p4 = pnand %p6476_p3, %p6473_p2 }
  0x2e   :  { %6481 = shalt.err (!%p6478_p4)
}
  0x2f   :  { %s6482_s28 = scalar_lea.vmem %s97_s20, 768  ;;  %p6487_p6 = scmp.lt.s32.totalorder %s97_s20, %s97_s20 }
  0x30   :  { %p6483_p5 = scmp.ne.s32.totalorder %s97_s20, %s6482_s28  ;;  %p6488_p7 = scmp.lt.s32.totalorder %s6482_s28, %s6482_s28 }
  0x32   :  { %p6489_p8 = por %p6488_p7, %p6487_p6 }
  0x34   :  { %p6490_p9 = pnand %p6489_p8, %p6483_p5 }
  0x36   :  { %6493 = shalt.err (!%p6490_p9)
}
  0x37   :  { %s6713_s4 = smov 384   ;;  %s6714_s18 = smov 24  }
  0x38   :  { %102 = dma.hbm_to_vmem [thread:$0]  %s8129_s7, 768, %s97_s20, [#allocation11], %s6713_s4, %s6713_s4, %s6714_s18  }
  0x39   :  { %s6715_s17 = smov [#allocation13]   ;;  %s6716_s22 = smov [#allocation16]  }
  0x3a   :  { %s119_s21 = sshll.u32 %s6715_s17, 4  ;;  %s142_s23 = sshll.u32 %s6716_s22, 4  ;;  %s120_s21 = int_to_ptr.vmem [resolvable:$true] %s119_s21  ;;  %s143_s23 = int_to_ptr.vmem [resolvable:$true] %s142_s23 }
  0x3b   :  { %s6494_s28 = scalar_lea.hbm %s8131_s9, 16 }
  0x3c   :  { %p6495_p10 = scmp.ne.s32.totalorder %s8131_s9, %s6494_s28  ;;  %p6498_p11 = scmp.lt.u32.totalorder %s6494_s28, %s8131_s9 }
  0x3e   :  { %p6500_p12 = pnand %p6498_p11, %p6495_p10 }
  0x40   :  { %6503 = shalt.err (!%p6500_p12)
}
  0x41   :  { %s6504_s7 = scalar_lea.vmem %s120_s21, 16  ;;  %s6508_s20 = scalar_lea.vmem %s120_s21, 32 }
  0x42   :  { %p6505_p13 = scmp.ne.s32.totalorder %s120_s21, %s6504_s7  ;;  %p6509_p0 = scmp.lt.s32.totalorder %s120_s21, %s120_s21 }
  0x43   :  { %p6510_p1 = scmp.lt.s32.totalorder %s6508_s20, %s6504_s7 }
  0x45   :  { %p6511_p2 = por %p6510_p1, %p6509_p0 }
  0x47   :  { %p6512_p3 = pnand %p6511_p2, %p6505_p13 }
  0x49   :  { %6515 = shalt.err (!%p6512_p3)
}
  0x4a   :  { %122 = dma.hbm_to_vmem [thread:$0]  %s8131_s9, 16, %s120_s21, [#allocation14]  }
  0x4b   :  { %s6516_s2 = scalar_lea.hbm %s8134_s12, 1152 }
  0x4c   :  { %p6517_p4 = scmp.ne.s32.totalorder %s8134_s12, %s6516_s2  ;;  %p6520_p5 = scmp.lt.u32.totalorder %s6516_s2, %s8134_s12 }
  0x4e   :  { %p6522_p6 = pnand %p6520_p5, %p6517_p4 }
  0x50   :  { %6525 = shalt.err (!%p6522_p6)
}
  0x51   :  { %s6526_s26 = scalar_lea.vmem %s143_s23, 1152  ;;  %p6531_p8 = scmp.lt.s32.totalorder %s143_s23, %s143_s23 }
  0x52   :  { %p6527_p7 = scmp.ne.s32.totalorder %s143_s23, %s6526_s26  ;;  %p6532_p9 = scmp.lt.s32.totalorder %s6526_s26, %s6526_s26 }
  0x54   :  { %p6533_p10 = por %p6532_p9, %p6531_p8 }
  0x56   :  { %p6534_p11 = pnand %p6533_p10, %p6527_p7 }
  0x58   :  { %6537 = shalt.err (!%p6534_p11)
}
  0x59   :  { %148 = dma.hbm_to_vmem [thread:$0]  %s8134_s12, 1152, %s143_s23, [#allocation17], %s6713_s4, %s6713_s4, %s6714_s18  }
  0x5a   :  { %s6717_s27 = smov [#allocation2]   ;;  %s6538_s16 = scalar_lea.hbm %s8123_s1, 9216 }
  0x5b   :  { %s34_s7 = sshll.u32 %s6717_s27, 4  ;;  %p6539_p12 = scmp.ne.s32.totalorder %s8123_s1, %s6538_s16  ;;  %s35_s7 = int_to_ptr.vmem [resolvable:$true] %s34_s7 }
  0x5c   :  { %p6542_p13 = scmp.lt.u32.totalorder %s6538_s16, %s8123_s1 }
  0x5e   :  { %p6544_p0 = pnand %p6542_p13, %p6539_p12 }
  0x60   :  { %6547 = shalt.err (!%p6544_p0)
}
  0x61   :  { %s6548_s24 = scalar_lea.vmem %s35_s7, 9216  ;;  %p6553_p2 = scmp.lt.s32.totalorder %s35_s7, %s35_s7 }
  0x62   :  { %p6549_p1 = scmp.ne.s32.totalorder %s35_s7, %s6548_s24  ;;  %p6554_p3 = scmp.lt.s32.totalorder %s6548_s24, %s6548_s24 }
  0x64   :  { %p6555_p4 = por %p6554_p3, %p6553_p2 }
  0x66   :  { %p6556_p5 = pnand %p6555_p4, %p6549_p1 }
  0x68   :  { %6559 = shalt.err (!%p6556_p5)
}
  0x69   :  { %s6718_s12 = smov 576   ;;  %s6719_s4 = smov 36  }
  0x6a   :  { %40 = dma.hbm_to_vmem [thread:$0]  %s8123_s1, 9216, %s35_s7, [#allocation3], %s6718_s12, %s6718_s12, %s6719_s4  }
  0x6b   :  { %s6720_s25 = smov [#allocation6]   ;;  %s6721_s26 = smov [#allocation9]  }
  0x6c   :  { %s58_s28 = sshll.u32 %s6720_s25, 4  ;;  %s82_s9 = sshll.u32 %s6721_s26, 4  ;;  %s59_s28 = int_to_ptr.vmem [resolvable:$true] %s58_s28  ;;  %s6899_s9 = int_to_ptr.vmem [resolvable:$true] %s82_s9 }
  0x6d   :  { %s6560_s20 = scalar_lea.hbm %s8125_s3, 256 }
  0x6e   :  { %p6561_p6 = scmp.ne.s32.totalorder %s8125_s3, %s6560_s20  ;;  %p6564_p7 = scmp.lt.u32.totalorder %s6560_s20, %s8125_s3 }
  0x70   :  { %p6566_p8 = pnand %p6564_p7, %p6561_p6 }
  0x72   :  { %6569 = shalt.err (!%p6566_p8)
}
  0x73   :  { %s6570_s1 = scalar_lea.vmem %s59_s28, 256  ;;  %p6575_p10 = scmp.lt.s32.totalorder %s59_s28, %s59_s28 }
  0x74   :  { %p6571_p9 = scmp.ne.s32.totalorder %s59_s28, %s6570_s1  ;;  %p6576_p11 = scmp.lt.s32.totalorder %s6570_s1, %s6570_s1 }
  0x76   :  { %p6577_p12 = por %p6576_p11, %p6575_p10 }
  0x78   :  { %p6578_p13 = pnand %p6577_p12, %p6571_p9 }
  0x7a   :  { %6581 = shalt.err (!%p6578_p13)
}
  0x7b   :  { %s8141_s7 = smov 64   ;;  %s6582_s23 = scalar_lea.hbm %s8127_s5, 6144 }
  0x7c   :  { %64 = dma.hbm_to_vmem [thread:$0]  %s8125_s3, 256, %s59_s28, [#allocation5], %s8141_s7, %s8141_s7, %s6708_s29  }
  0x7d   :  { %p6583_p0 = scmp.ne.s32.totalorder %s8127_s5, %s6582_s23  ;;  %p6586_p1 = scmp.lt.u32.totalorder %s6582_s23, %s8127_s5 }
  0x7f   :  { %p6588_p2 = pnand %p6586_p1, %p6583_p0 }
  0x81   :  { %6591 = shalt.err (!%p6588_p2)
}
  0x82   :  { %s6592_s20 = scalar_lea.vmem %s6899_s9, 6144  ;;  %p6597_p4 = scmp.lt.s32.totalorder %s6899_s9, %s6899_s9 }
  0x83   :  { %p6593_p3 = scmp.ne.s32.totalorder %s6899_s9, %s6592_s20  ;;  %p6598_p5 = scmp.lt.s32.totalorder %s6592_s20, %s6592_s20 }
  0x85   :  { %p6599_p6 = por %p6598_p5, %p6597_p4 }
  0x87   :  { %p6600_p7 = pnand %p6599_p6, %p6593_p3 }
  0x89   :  { %6603 = shalt.err (!%p6600_p7)
}
  0x8a   :  { %s8142_s3 = smov 8   ;;  %s8143_s29 = smov 128  }
  0x8b   :  { %88 = dma.hbm_to_vmem [thread:$0]  %s8127_s5, 6144, %s6899_s9, [#allocation8], %s8143_s29, %s8143_s29, %s8142_s3  }
  0x8c   :  { %s6722_s16 = smov [#allocation12]   ;;  %s6723_s22 = smov [#allocation15]  }
  0x8d   :  { %s109_s17 = sshll.u32 %s6722_s16, 4  ;;  %s128_s1 = sshll.u32 %s6723_s22, 4  ;;  %s110_s17 = int_to_ptr.vmem [resolvable:$true] %s109_s17  ;;  %s6936_s1 = int_to_ptr.vmem [resolvable:$true] %s128_s1 }
  0x8e   :  { %s6604_s19 = scalar_lea.hbm %s8130_s8, 16 }
  0x8f   :  { %p6605_p8 = scmp.ne.s32.totalorder %s8130_s8, %s6604_s19  ;;  %p6608_p9 = scmp.lt.u32.totalorder %s6604_s19, %s8130_s8 }
  0x91   :  { %p6610_p10 = pnand %p6608_p9, %p6605_p8 }
  0x93   :  { %6613 = shalt.err (!%p6610_p10)
}
  0x94   :  { %s6614_s5 = scalar_lea.vmem %s110_s17, 16  ;;  %s6618_s9 = scalar_lea.vmem %s110_s17, 32 }
  0x95   :  { %p6615_p11 = scmp.ne.s32.totalorder %s110_s17, %s6614_s5  ;;  %p6619_p12 = scmp.lt.s32.totalorder %s110_s17, %s110_s17 }
  0x96   :  { %p6620_p13 = scmp.lt.s32.totalorder %s6618_s9, %s6614_s5 }
  0x98   :  { %p6621_p0 = por %p6620_p13, %p6619_p12 }
  0x9a   :  { %p6622_p1 = pnand %p6621_p0, %p6615_p11 }
  0x9c   :  { %6625 = shalt.err (!%p6622_p1)
}
  0x9d   :  { %112 = dma.hbm_to_vmem [thread:$0]  %s8130_s8, 16, %s110_s17, [#allocation11]  }
  0x9e   :  { %s6626_s3 = scalar_lea.hbm %s8132_s10, 18432 }
  0x9f   :  { %p6627_p2 = scmp.ne.s32.totalorder %s8132_s10, %s6626_s3  ;;  %p6630_p3 = scmp.lt.u32.totalorder %s6626_s3, %s8132_s10 }
  0xa1   :  { %p6632_p4 = pnand %p6630_p3, %p6627_p2 }
  0xa3   :  { %6635 = shalt.err (!%p6632_p4)
}
  0xa4   :  { %s6636_s22 = scalar_lea.vmem %s6936_s1, 18432  ;;  %p6641_p6 = scmp.lt.s32.totalorder %s6936_s1, %s6936_s1 }
  0xa5   :  { %p6637_p5 = scmp.ne.s32.totalorder %s6936_s1, %s6636_s22  ;;  %p6642_p7 = scmp.lt.s32.totalorder %s6636_s22, %s6636_s22 }
  0xa7   :  { %p6643_p8 = por %p6642_p7, %p6641_p6 }
  0xa9   :  { %p6644_p9 = pnand %p6643_p8, %p6637_p5 }
  0xab   :  { %6647 = shalt.err (!%p6644_p9)
}
  0xac   :  { %134 = dma.hbm_to_vmem [thread:$0]  %s8132_s10, 18432, %s6936_s1, [#allocation14], %s6718_s12, %s6718_s12, %s6719_s4  }
  0xad   :  { %s6724_s7 = smov [#allocation18]   ;;  %s6725_s19 = smov [#allocation19]  }
  0xae   :  { %s155_s2 = sshll.u32 %s6724_s7, 4  ;;  %s165_s24 = sshll.u32 %s6725_s19, 4  ;;  %s156_s2 = int_to_ptr.vmem [resolvable:$true] %s155_s2  ;;  %s166_s24 = int_to_ptr.vmem [resolvable:$true] %s165_s24 }
  0xaf   :  { %s6648_s25 = scalar_lea.hbm %s8135_s13, 16 }
  0xb0   :  { %p6649_p10 = scmp.ne.s32.totalorder %s8135_s13, %s6648_s25  ;;  %p6652_p11 = scmp.lt.u32.totalorder %s6648_s25, %s8135_s13 }
  0xb2   :  { %p6654_p12 = pnand %p6652_p11, %p6649_p10 }
  0xb4   :  { %6657 = shalt.err (!%p6654_p12)
}
  0xb5   :  { %s6658_s10 = scalar_lea.vmem %s156_s2, 16  ;;  %s6662_s12 = scalar_lea.vmem %s156_s2, 32 }
  0xb6   :  { %p6659_p13 = scmp.ne.s32.totalorder %s156_s2, %s6658_s10  ;;  %p6663_p0 = scmp.lt.s32.totalorder %s156_s2, %s156_s2 }
  0xb7   :  { %p6664_p1 = scmp.lt.s32.totalorder %s6662_s12, %s6658_s10 }
  0xb9   :  { %p6665_p2 = por %p6664_p1, %p6663_p0 }
  0xbb   :  { %p6666_p3 = pnand %p6665_p2, %p6659_p13 }
  0xbd   :  { %6669 = shalt.err (!%p6666_p3)
}
  0xbe   :  { %158 = dma.hbm_to_vmem [thread:$0]  %s8135_s13, 16, %s156_s2, [#allocation17]  }
  0xbf   :  { %s6670_s3 = scalar_lea.hbm %s8136_s14, 16 }
  0xc0   :  { %p6671_p4 = scmp.ne.s32.totalorder %s8136_s14, %s6670_s3  ;;  %p6674_p5 = scmp.lt.u32.totalorder %s6670_s3, %s8136_s14 }
  0xc2   :  { %p6676_p6 = pnand %p6674_p5, %p6671_p4 }
  0xc4   :  { %6679 = shalt.err (!%p6676_p6)
}
  0xc5   :  { %s6680_s22 = scalar_lea.vmem %s166_s24, 16  ;;  %s6684_s8 = scalar_lea.vmem %s166_s24, 32 }
  0xc6   :  { %p6681_p7 = scmp.ne.s32.totalorder %s166_s24, %s6680_s22  ;;  %p6685_p8 = scmp.lt.s32.totalorder %s166_s24, %s166_s24 }
  0xc7   :  { %p6686_p9 = scmp.lt.s32.totalorder %s6684_s8, %s6680_s22 }
  0xc9   :  { %p6687_p10 = por %p6686_p9, %p6685_p8 }
  0xcb   :  { %p6688_p11 = pnand %p6687_p10, %p6681_p7 }
  0xcd   :  { %6691 = shalt.err (!%p6688_p11)
}
  0xce   :  { %168 = dma.hbm_to_vmem [thread:$0]  %s8136_s14, 16, %s166_s24, [#allocation20]  }
  0xcf   :  { %6692 = dma.done.wait [#allocation3], 9216  }
  0xd0   :  { %6693 = vsyncadd [#allocation3], 4294958080 }
  0xd1   :  { %6694 = dma.done.wait [#allocation5], 512  }
  0xd2   :  { %6695 = vsyncadd [#allocation5], 4294966784 }
  0xd3   :  { %6696 = dma.done.wait [#allocation8], 12288  }
  0xd4   :  { %6697 = vsyncadd [#allocation8], 4294955008 }
  0xd5   :  { %6698 = dma.done.wait [#allocation11], 784  }
  0xd6   :  { %6699 = vsyncadd [#allocation11], 4294966512 }
  0xd7   :  { %6700 = dma.done.wait [#allocation14], 18448  }
  0xd8   :  { %6701 = vsyncadd [#allocation14], 4294948848 }
  0xd9   :  { %6702 = dma.done.wait [#allocation17], 1168  }
  0xda   :  { %6703 = vsyncadd [#allocation17], 4294966128 }
  0xdb   :  { %6704 = dma.done.wait [#allocation20], 16  }
  0xdc   :  { %6705 = vsyncadd [#allocation20], 4294967280  ;;  %v6726_v0 = vmov 0   ;;  %v5959_v1 = vld [vmem:[#allocation2 + $0x4] ss:$36 sps:$4 sm:$0xff]   ;;  %v7017_v51 = vld [vmem:[%s8122_s0 + $0x10] sm:$0xff]  }
  0xdd   :  { %723 = vmatprep.mubr.bf16.mxu0 %v6726_v0  ;;  %804 = vmatprep.mubr.bf16.mxu1 %v6726_v0  ;;  %v5961_v2 = vld [vmem:[#allocation2 + $0xc] ss:$36 sps:$4 sm:$0xff]   ;;  %v5963_v3 = vld [vmem:[#allocation2] ss:$36 sps:$4 sm:$0xff]   ;;  %v5967_v6 = vld [vmem:[#allocation2 + $0x54] ss:$36 sps:$4 sm:$0xff]  }
  0xde   :  { %691 = vmatprep.subr.bf16.mxu0 %v5959_v1  ;;  %v5964_v4 = vld [vmem:[#allocation2 + $0x8] ss:$36 sps:$4 sm:$0xff]   ;;  %772 = vmatprep.subr.bf16.mxu1 %v5961_v2  ;;  %v5970_v8 = vld [vmem:[#allocation2 + $0x50] ss:$36 sps:$4 sm:$0xff]   ;;  %v5973_v10 = vld [vmem:[#allocation2 + $0x9c] ss:$36 sps:$4 sm:$0xff]  }
  0xdf   :  { %v5965_v5 = vld [vmem:[#allocation2 + $0x4c] ss:$36 sps:$4 sm:$0xff]   ;;  %692 = vmatpush1.bf16.msra.mxu0 %v5963_v3  ;;  %773 = vmatpush1.bf16.msra.mxu1 %v5964_v4  ;;  %v5971_v9 = vld [vmem:[#allocation2 + $0x94] ss:$36 sps:$4 sm:$0xff]   ;;  %v5977_v13 = vld [vmem:[#allocation2 + $0xdc] ss:$36 sps:$4 sm:$0xff]  }
  0xe0   :  { %v5969_v7 = vld [vmem:[#allocation2 + $0x48] ss:$36 sps:$4 sm:$0xff]   ;;  %693 = vmatprep.subr.bf16.mxu0 %v5965_v5  ;;  %774 = vmatprep.subr.bf16.mxu1 %v5967_v6  ;;  %v5975_v11 = vld [vmem:[#allocation2 + $0x90] ss:$36 sps:$4 sm:$0xff]   ;;  %v5976_v12 = vld [vmem:[#allocation2 + $0x98] ss:$36 sps:$4 sm:$0xff]  }
  0xe1   :  { %v5979_v14 = vld [vmem:[#allocation2 + $0xe4] ss:$36 sps:$4 sm:$0xff]   ;;  %v5981_v15 = vld [vmem:[#allocation2 + $0xd8] ss:$36 sps:$4 sm:$0xff]   ;;  %v5985_v18 = vld [vmem:[#allocation2 + $0x12c] ss:$36 sps:$4 sm:$0xff]  }
  0xe2   :  { %v5982_v16 = vld [vmem:[#allocation2 + $0xe0] ss:$36 sps:$4 sm:$0xff]   ;;  %v5988_v20 = vld [vmem:[#allocation2 + $0x128] ss:$36 sps:$4 sm:$0xff]   ;;  %v5991_v22 = vld [vmem:[#allocation2 + $0x174] ss:$36 sps:$4 sm:$0xff]  }
  0xe3   :  { %694 = vmatpush1.bf16.msra.mxu0 %v5969_v7  ;;  %775 = vmatpush1.bf16.msra.mxu1 %v5970_v8  ;;  %v5983_v17 = vld [vmem:[#allocation2 + $0x124] ss:$36 sps:$4 sm:$0xff]   ;;  %v5989_v21 = vld [vmem:[#allocation2 + $0x16c] ss:$36 sps:$4 sm:$0xff]   ;;  %v5995_v25 = vld [vmem:[#allocation2 + $0x1b4] ss:$36 sps:$4 sm:$0xff]  }
  0xe4   :  { %695 = vmatprep.subr.bf16.mxu0 %v5971_v9  ;;  %776 = vmatprep.subr.bf16.mxu1 %v5973_v10  ;;  %v5987_v19 = vld [vmem:[#allocation2 + $0x120] ss:$36 sps:$4 sm:$0xff]   ;;  %v5993_v23 = vld [vmem:[#allocation2 + $0x168] ss:$36 sps:$4 sm:$0xff]   ;;  %v5994_v24 = vld [vmem:[#allocation2 + $0x170] ss:$36 sps:$4 sm:$0xff]  }
  0xe5   :  { %v5997_v26 = vld [vmem:[#allocation2 + $0x1bc] ss:$36 sps:$4 sm:$0xff]   ;;  %v5999_v27 = vld [vmem:[#allocation2 + $0x1b0] ss:$36 sps:$4 sm:$0xff]   ;;  %v6003_v30 = vld [vmem:[#allocation2 + $0x204] ss:$36 sps:$4 sm:$0xff]  }
  0xe6   :  { %v6000_v28 = vld [vmem:[#allocation2 + $0x1b8] ss:$36 sps:$4 sm:$0xff]   ;;  %v6006_v32 = vld [vmem:[#allocation2 + $0x200] ss:$36 sps:$4 sm:$0xff]   ;;  %v6008_v36 = vld [vmem:[#allocation2 + $0x10] ss:$36 sps:$4 sm:$0xff]  }
  0xe7   :  { %696 = vmatpush1.bf16.msra.mxu0 %v5975_v11  ;;  %777 = vmatpush1.bf16.msra.mxu1 %v5976_v12  ;;  %v6001_v29 = vld [vmem:[#allocation2 + $0x1fc] ss:$36 sps:$4 sm:$0xff]   ;;  %v6010_v33 = vld [vmem:[#allocation2 + $0x14] ss:$36 sps:$4 sm:$0xff]   ;;  %v6023_v39 = vld [vmem:[#allocation2 + $0x64] ss:$36 sps:$4 sm:$0xff]  }
  0xe8   :  { %697 = vmatprep.subr.bf16.mxu0 %v5977_v13  ;;  %778 = vmatprep.subr.bf16.mxu1 %v5979_v14  ;;  %v6005_v31 = vld [vmem:[#allocation2 + $0x1f8] ss:$36 sps:$4 sm:$0xff]   ;;  %v6999_v35 = vld [vmem:[%s8122_s0] sm:$0xff]   ;;  %v7008_v43 = vld [vmem:[%s8122_s0 + $0x8] sm:$0xff]   ;;  %v6727_v7 = vmov 0.0   ;;  %vm6728_vm0 = vmmov 0  }
  0xe9   :  { %v6016_v34 = vld [vmem:[#allocation2 + $0x1c] ss:$36 sps:$4 sm:$0xff]   ;;  %v6020_v41 = vld [vmem:[#allocation2 + $0xa4] ss:$36 sps:$4 sm:$0xff]   ;;  %v6026_v45 = vld [vmem:[#allocation2 + $0xec] ss:$36 sps:$4 sm:$0xff]  }
  0xea   :  { %v6013_v37 = vld [vmem:[#allocation2 + $0x5c] ss:$36 sps:$4 sm:$0xff]   ;;  %v6030_v46 = vld [vmem:[#allocation2 + $0xac] ss:$36 sps:$4 sm:$0xff]   ;;  %v6036_v49 = vld [vmem:[#allocation2 + $0xf4] ss:$36 sps:$4 sm:$0xff]  }
  0xeb   :  { %698 = vmatpush1.bf16.msra.mxu0 %v5981_v15  ;;  %779 = vmatpush1.bf16.msra.mxu1 %v5982_v16  ;;  %v6014_v38 = vld [vmem:[#allocation2 + $0x18] ss:$36 sps:$4 sm:$0xff]   ;;  %v6021_v42 = vld [vmem:[#allocation2 + $0x60] ss:$36 sps:$4 sm:$0xff]   ;;  %v6028_v47 = vld [vmem:[#allocation2 + $0xa8] ss:$36 sps:$4 sm:$0xff]  }
  0xec   :  { %699 = vmatprep.subr.bf16.mxu0 %v5983_v17  ;;  %780 = vmatprep.subr.bf16.mxu1 %v5985_v18  ;;  %v6011_v40 = vld [vmem:[#allocation2 + $0x58] ss:$36 sps:$4 sm:$0xff]   ;;  %v6018_v44 = vld [vmem:[#allocation2 + $0xa0] ss:$36 sps:$4 sm:$0xff]   ;;  %v6024_v48 = vld [vmem:[#allocation2 + $0xe8] ss:$36 sps:$4 sm:$0xff]  }
  0xed   :  { %v6033_v50 = vld [vmem:[#allocation2 + $0x134] ss:$36 sps:$4 sm:$0xff]   ;;  %v6040_v54 = vld [vmem:[#allocation2 + $0x13c] ss:$36 sps:$4 sm:$0xff]   ;;  %v6046_v58 = vld [vmem:[#allocation2 + $0x184] ss:$36 sps:$4 sm:$0xff]  }
  0xee   :  { %v6031_v52 = vld [vmem:[#allocation2 + $0x130] ss:$36 sps:$4 sm:$0xff]   ;;  %v6038_v55 = vld [vmem:[#allocation2 + $0x138] ss:$36 sps:$4 sm:$0xff]   ;;  %v6049_v60 = vld [vmem:[#allocation2 + $0x1c4] ss:$36 sps:$4 sm:$0xff]  }
  0xef   :  { %700 = vmatpush1.bf16.msra.mxu0 %v5987_v19  ;;  %781 = vmatpush1.bf16.msra.mxu1 %v5988_v20  ;;  %v6034_v53 = vld [vmem:[#allocation2 + $0xf0] ss:$36 sps:$4 sm:$0xff]   ;;  %v6043_v56 = vld [vmem:[#allocation2 + $0x17c] ss:$36 sps:$4 sm:$0xff]   ;;  %v6051_v2 = vld [vmem:[#allocation2 + $0x1c8] ss:$36 sps:$4 sm:$0xff]  }
  0xf0   :  { %701 = vmatprep.subr.bf16.mxu0 %v5989_v21  ;;  %782 = vmatprep.subr.bf16.mxu1 %v5991_v22  ;;  %v6041_v57 = vld [vmem:[#allocation2 + $0x178] ss:$36 sps:$4 sm:$0xff]   ;;  %v6044_v61 = vld [vmem:[#allocation2 + $0x180] ss:$36 sps:$4 sm:$0xff]   ;;  %v6053_v63 = vld [vmem:[#allocation2 + $0x1cc] ss:$36 sps:$4 sm:$0xff]  }
  0xf1   :  { %v7026_v59 = vld [vmem:[%s8122_s0 + $0x18] sm:$0xff]   ;;  %v6047_v62 = vld [vmem:[#allocation2 + $0x1c0] ss:$36 sps:$4 sm:$0xff]   ;;  %v6056_v1 = vld [vmem:[#allocation2 + $0x20c] ss:$36 sps:$4 sm:$0xff]   ;;  %vm1102_vm1 = vcmask 1046528  }
  0xf2   :  { %v6054_v3 = vld [vmem:[#allocation2 + $0x208] ss:$36 sps:$4 sm:$0xff]   ;;  %v6059_v4 = vld [vmem:[#allocation2 + $0x214] ss:$36 sps:$4 sm:$0xff]   ;;  %v6060_v8 = vld [vmem:[#allocation2 + $0x20] ss:$36 sps:$4 sm:$0xff]  }
  0xf3   :  { %702 = vmatpush1.bf16.msra.mxu0 %v5993_v23  ;;  %783 = vmatpush1.bf16.msra.mxu1 %v5994_v24  ;;  %v7035_v5 = vld [vmem:[%s8122_s0 + $0x20] ss:$0 sps:$4 sm:$0x33]   ;;  %v6057_v6 = vld [vmem:[#allocation2 + $0x210] ss:$36 sps:$4 sm:$0xff]   ;;  %v1530_v17 = vld [vmem:[%s8128_s6 + $0x88] sm:$0xff] }
  0xf4   :  { %703 = vmatprep.subr.bf16.mxu0 %v5995_v25  ;;  %784 = vmatprep.subr.bf16.mxu1 %v5997_v26  ;;  %v6061_v9 = vld [vmem:[#allocation2 + $0x68] ss:$36 sps:$4 sm:$0xff]   ;;  %v6062_v10 = vld [vmem:[#allocation2 + $0xb0] ss:$36 sps:$4 sm:$0xff]   ;;  %v6063_v11 = vld [vmem:[#allocation2 + $0xf8] ss:$36 sps:$4 sm:$0xff]  }
  0xf5   :  { %v6064_v12 = vld [vmem:[#allocation2 + $0x140] ss:$36 sps:$4 sm:$0xff]   ;;  %v6065_v13 = vld [vmem:[#allocation2 + $0x188] ss:$36 sps:$4 sm:$0xff]   ;;  %v6066_v14 = vld [vmem:[#allocation2 + $0x1d0] ss:$36 sps:$4 sm:$0xff]  }
  0xf6   :  { %v6067_v15 = vld [vmem:[#allocation2 + $0x218] ss:$36 sps:$4 sm:$0xff]   ;;  %v1529_v16 = vld [vmem:[%s8128_s6 + $0x80] sm:$0xff]  ;;  %v1514_v20 = vld [vmem:[%s8128_s6 + $0x8] sm:$0xff]  ;;  %vm1169_vm2 = vcmask 1045504   ;;  %vm1509_vm3 = vcmask 1040384  }
  0xf7   :  { %704 = vmatpush1.bf16.msra.mxu0 %v5999_v27  ;;  %785 = vmatpush1.bf16.msra.mxu1 %v6000_v28  ;;  %v5788_v18 = vpack.c.bf16 %v1530_v17, %v1529_v16  ;;  %v1513_v19 = vld [vmem:[%s8128_s6] sm:$0xff]  ;;  %v1531_v22 = vld [vmem:[%s8128_s6 + $0x90] sm:$0xff]  ;;  %v1532_v23 = vld [vmem:[%s8128_s6 + $0x98] sm:$0xff]  ;;  %vm1749_vm4 = vcmask 1043456   ;;  %vm6730_vm5 = vmmov 1   ;;  %vm1745_vm7 = vcmask 97280  }
  0xf8   :  { %705 = vmatprep.subr.bf16.mxu0 %v6001_v29  ;;  %786 = vmatprep.subr.bf16.mxu1 %v6003_v30  ;;  %v5790_v21 = vpack.c.bf16 %v1514_v20, %v1513_v19  ;;  %v5792_v24 = vpack.c.bf16 %v1532_v23, %v1531_v22  ;;  %v1515_v25 = vld [vmem:[%s8128_s6 + $0x10] sm:$0xff]  ;;  %v1516_v26 = vld [vmem:[%s8128_s6 + $0x18] sm:$0xff]  ;;  %v1533_v28 = vld [vmem:[%s8128_s6 + $0xa0] sm:$0xff]  ;;  %vm2022_vm8 = vcmask 523264   ;;  %vm4844_vm9 = vcmask 195584  }
  0xf9   :  { %v5794_v27 = vpack.c.bf16 %v1516_v26, %v1515_v25  ;;  %v1534_v29 = vld [vmem:[%s8128_s6 + $0xa8] sm:$0xff]  ;;  %vm5845_vm6 = vmpackc.low %vm1749_vm4, %vm6730_vm5 }
  0xfa   :  { %v5796_v30 = vpack.c.bf16 %v1534_v29, %v1533_v28 }
  0xfb   :  { %706 = vmatpush1.bf16.msra.mxu0 %v6005_v31  ;;  %787 = vmatpush1.bf16.msra.mxu1 %v6006_v32  ;;  %v1517_v31 = vld [vmem:[%s8128_s6 + $0x20] sm:$0xff]  ;;  %v1518_v32 = vld [vmem:[%s8128_s6 + $0x28] sm:$0xff] }
  0xfc   :  { %853 = vmatprep.subr.bf16.mxu0 %v6010_v33  ;;  %934 = vmatprep.subr.bf16.mxu1 %v6016_v34  ;;  %v5798_v33 = vpack.c.bf16 %v1518_v32, %v1517_v31  ;;  %v1535_v34 = vld [vmem:[%s8128_s6 + $0xb0] sm:$0xff] }
  0xfe   :  { %724 = vmatmul.mubr.bf16.vlgmr.msra.gmra.mrb[0].mxu0 %v6999_v35  ;;  %805 = vmatmul.mubr.bf16.vlgmr.msra.gmra.mrb[0].mxu1 %v6999_v35 }
  0xff   :  { %854 = vmatpush1.bf16.msra.mxu0 %v6008_v36  ;;  %733 = vmatprep.mubr.bf16.mxu0 %v6726_v0 }
 0x100   :  { %855 = vmatprep.subr.bf16.mxu0 %v6013_v37  ;;  %814 = vmatprep.mubr.bf16.mxu1 %v6726_v0  ;;  %v1519_v37 = vld [vmem:[%s8128_s6 + $0x30] sm:$0xff] }
 0x101   :  { %935 = vmatpush1.bf16.msra.mxu1 %v6014_v38  ;;  %v1520_v38 = vld [vmem:[%s8128_s6 + $0x38] sm:$0xff] }
 0x102   :  { %936 = vmatprep.subr.bf16.mxu1 %v6023_v39  ;;  %v5802_v39 = vpack.c.bf16 %v1520_v38, %v1519_v37 }
 0x103   :  { %856 = vmatpush1.bf16.msra.mxu0 %v6011_v40  ;;  %v1537_v40 = vld [vmem:[%s8128_s6 + $0xc0] sm:$0xff] }
 0x104   :  { %857 = vmatprep.subr.bf16.mxu0 %v6020_v41  ;;  %v1538_v41 = vld [vmem:[%s8128_s6 + $0xc8] sm:$0xff] }
 0x105   :  { %937 = vmatpush1.bf16.msra.mxu1 %v6021_v42  ;;  %v5804_v42 = vpack.c.bf16 %v1538_v41, %v1537_v40 }
 0x106   :  { %734 = vmatmul.mubr.bf16.gmra.mrb[4].mxu0 %v7008_v43  ;;  %815 = vmatmul.mubr.bf16.gmra.mrb[4].mxu1 %v7008_v43 }
 0x107   :  { %858 = vmatpush1.bf16.msra.mxu0 %v6018_v44  ;;  %743 = vmatprep.mubr.bf16.mxu0 %v6726_v0  ;;  %v1522_v44 = vld [vmem:[%s8128_s6 + $0x48] sm:$0xff] }
 0x108   :  { %824 = vmatprep.mubr.bf16.mxu1 %v6726_v0  ;;  %859 = vmatprep.subr.bf16.mxu0 %v6026_v45 }
 0x109   :  { %938 = vmatprep.subr.bf16.mxu1 %v6030_v46  ;;  %v1539_v46 = vld [vmem:[%s8128_s6 + $0xd0] sm:$0xff] }
 0x10a   :  { %939 = vmatpush1.bf16.msra.mxu1 %v6028_v47  ;;  %v1540_v47 = vld [vmem:[%s8128_s6 + $0xd8] sm:$0xff] }
 0x10b   :  { %860 = vmatpush1.bf16.msra.mxu0 %v6024_v48  ;;  %940 = vmatprep.subr.bf16.mxu1 %v6036_v49  ;;  %v5808_v48 = vpack.c.bf16 %v1540_v47, %v1539_v46  ;;  %v1523_v49 = vld [vmem:[%s8128_s6 + $0x50] sm:$0xff] }
 0x10c   :  { %861 = vmatprep.subr.bf16.mxu0 %v6033_v50  ;;  %v1524_v50 = vld [vmem:[%s8128_s6 + $0x58] sm:$0xff] }
 0x10e   :  { %744 = vmatmul.mubr.bf16.gmra.mrb[8].mxu0 %v7017_v51  ;;  %825 = vmatmul.mubr.bf16.gmra.mrb[8].mxu1 %v7017_v51 }
 0x10f   :  { %862 = vmatpush1.bf16.msra.mxu0 %v6031_v52  ;;  %941 = vmatpush1.bf16.msra.mxu1 %v6034_v53  ;;  %v1541_v52 = vld [vmem:[%s8128_s6 + $0xe0] sm:$0xff]  ;;  %v1542_v53 = vld [vmem:[%s8128_s6 + $0xe8] sm:$0xff] }
 0x110   :  { %753 = vmatprep.mubr.bf16.mxu0 %v6726_v0  ;;  %834 = vmatprep.mubr.bf16.mxu1 %v6726_v0 }
 0x111   :  { %942 = vmatprep.subr.bf16.mxu1 %v6040_v54  ;;  %863 = vmatprep.subr.bf16.mxu0 %v6043_v56  ;;  %v5812_v54 = vpack.c.bf16 %v1542_v53, %v1541_v52  ;;  %v1526_v56 = vld [vmem:[%s8128_s6 + $0x68] sm:$0xff] }
 0x113   :  { %943 = vmatpush1.bf16.msra.mxu1 %v6038_v55  ;;  %864 = vmatpush1.bf16.msra.mxu0 %v6041_v57  ;;  %v1525_v55 = vld [vmem:[%s8128_s6 + $0x60] sm:$0xff] }
 0x114   :  { %944 = vmatprep.subr.bf16.mxu1 %v6046_v58  ;;  %865 = vmatprep.subr.bf16.mxu0 %v6049_v60  ;;  %v5814_v57 = vpack.c.bf16 %v1526_v56, %v1525_v55  ;;  %v1543_v58 = vld [vmem:[%s8128_s6 + $0xf0] sm:$0xff] }
 0x116   :  { %754 = vmatmul.mubr.bf16.gmra.mrb[12].mxu0 %v7026_v59  ;;  %835 = vmatmul.mubr.bf16.gmra.mrb[12].mxu1 %v7026_v59 }
 0x117   :  { %945 = vmatpush1.bf16.msra.mxu1 %v6044_v61  ;;  %763 = vmatprep.mubr.bf16.mxu0 %v6726_v0  ;;  %v1527_v61 = vld [vmem:[%s8128_s6 + $0x70] sm:$0xff] }
 0x118   :  { %844 = vmatprep.mubr.bf16.mxu1 %v6726_v0  ;;  %866 = vmatpush1.bf16.msra.mxu0 %v6047_v62  ;;  %v1528_v62 = vld [vmem:[%s8128_s6 + $0x78] sm:$0xff] }
 0x119   :  { %946 = vmatprep.subr.bf16.mxu1 %v6053_v63  ;;  %867 = vmatprep.subr.bf16.mxu0 %v6056_v1  ;;  %v5818_v63 = vpack.c.bf16 %v1528_v62, %v1527_v61  ;;  %v6729_v1 = vmov 0.0|0.0  }
 0x11b   :  { %947 = vmatpush1.bf16.msra.mxu1 %v6051_v2 }
 0x11c   :  { %868 = vmatpush1.bf16.msra.mxu0 %v6054_v3  ;;  %948 = vmatprep.subr.bf16.mxu1 %v6059_v4 }
 0x11d   :  { %5642 = vmatprep.subr.bf16.mxu0 %v6727_v7 }
 0x11e   :  { %764 = vmatmul.mubr.bf16.gmra.mrb[16].mxu0 %v7035_v5  ;;  %845 = vmatmul.mubr.bf16.gmra.mrb[16].mxu1 %v7035_v5 }
 0x11f   :  { %949 = vmatpush1.bf16.msra.mxu1 %v6057_v6  ;;  %885 = vmatprep.mubr.bf16.mxu0 %v6726_v0 }
 0x120   :  { %966 = vmatprep.mubr.bf16.mxu1 %v6726_v0  ;;  %5789 = vmatprep.subr.bf16.mxu1 %v5788_v18 }
 0x126   :  { %886 = vmatmul.mubr.bf16.vlgmr.msra.gmra.mrb[20].mxu0 %v6999_v35  ;;  %967 = vmatmul.mubr.bf16.vlgmr.msra.gmra.mrb[20].mxu1 %v6999_v35 }
 0x127   :  { %5643 = vmatpush3.bf16.msra.mxu0 %v6060_v8  ;;  %895 = vmatprep.mubr.bf16.mxu0 %v6726_v0 }
 0x128   :  { %5644 = vmatprep.subr.bf16.mxu0 %v6727_v7  ;;  %976 = vmatprep.mubr.bf16.mxu1 %v6726_v0 }
 0x129   :  { %5791 = vmatpush3.bf16.msra.mxu1 %v5790_v21 }
 0x12a   :  { %5793 = vmatprep.subr.bf16.mxu1 %v5792_v24 }
 0x12b   :  { %5645 = vmatpush3.bf16.msra.mxu0 %v6061_v9 }
 0x12c   :  { %5646 = vmatprep.subr.bf16.mxu0 %v6727_v7 }
 0x12d   :  { %5795 = vmatpush3.bf16.msra.mxu1 %v5794_v27 }
 0x12e   :  { %896 = vmatmul.mubr.bf16.gmra.mrb[24].mxu0 %v7008_v43  ;;  %977 = vmatmul.mubr.bf16.gmra.mrb[24].mxu1 %v7008_v43 }
 0x12f   :  { %5647 = vmatpush3.bf16.msra.mxu0 %v6062_v10  ;;  %905 = vmatprep.mubr.bf16.mxu0 %v6726_v0 }
 0x130   :  { %986 = vmatprep.mubr.bf16.mxu1 %v6726_v0  ;;  %5648 = vmatprep.subr.bf16.mxu0 %v6727_v7 }
 0x131   :  { %5797 = vmatprep.subr.bf16.mxu1 %v5796_v30 }
 0x132   :  { %5799 = vmatpush3.bf16.msra.mxu1 %v5798_v33 }
 0x133   :  { %5649 = vmatpush3.bf16.msra.mxu0 %v6063_v11 }
 0x134   :  { %5650 = vmatprep.subr.bf16.mxu0 %v6727_v7 }
 0x136   :  { %906 = vmatmul.mubr.bf16.gmra.mrb[28].mxu0 %v7017_v51  ;;  %987 = vmatmul.mubr.bf16.gmra.mrb[28].mxu1 %v7017_v51 }
 0x137   :  { %5651 = vmatpush3.bf16.msra.mxu0 %v6064_v12  ;;  %915 = vmatprep.mubr.bf16.mxu0 %v6726_v0 }
 0x138   :  { %996 = vmatprep.mubr.bf16.mxu1 %v6726_v0  ;;  %5652 = vmatprep.subr.bf16.mxu0 %v6727_v7 }
 0x13b   :  { %5653 = vmatpush3.bf16.msra.mxu0 %v6065_v13 }
 0x13c   :  { %5654 = vmatprep.subr.bf16.mxu0 %v6727_v7 }
 0x13e   :  { %916 = vmatmul.mubr.bf16.gmra.mrb[32].mxu0 %v7026_v59  ;;  %997 = vmatmul.mubr.bf16.gmra.mrb[32].mxu1 %v7026_v59 }
 0x13f   :  { %925 = vmatprep.mubr.bf16.mxu0 %v6726_v0  ;;  %1006 = vmatprep.mubr.bf16.mxu1 %v6726_v0 }
 0x140   :  { %5655 = vmatpush3.bf16.msra.mxu0 %v6066_v14 }
 0x141   :  { %5656 = vmatprep.subr.bf16.mxu0 %v6727_v7 }
 0x144   :  { %5657 = vmatpush3.bf16.msra.mxu0 %v6067_v15 }
 0x145   :  { %5850 = vmatprep.subr.bf16.mxu0 %v6729_v1 }
 0x146   :  { %926 = vmatmul.mubr.bf16.gmra.mrb[36].mxu0 %v7035_v5  ;;  %1007 = vmatmul.mubr.bf16.gmra.mrb[36].mxu1 %v7035_v5 }
 0x147   :  { %5658 = vmatprep.mubr.msk.bf16.mxu0 %vm6728_vm0, %v6727_v7 }
 0x14e   :  { %5659 = vmatmul.mubr.bf16.vlgmr.msra.gmra.mrb[40].mxu0 %v6999_v35  ;;  %v1536_v35 = vld [vmem:[%s8128_s6 + $0xb8] sm:$0xff] }
 0x14f   :  { %5662 = vmatprep.mubr.msk.bf16.mxu0 %vm6728_vm0, %v6727_v7  ;;  %v5800_v36 = vpack.c.bf16 %v1536_v35, %v1535_v34 }
 0x151   :  { %5801 = vmatprep.subr.bf16.mxu1 %v5800_v36 }
 0x152   :  { %5803 = vmatpush3.bf16.msra.mxu1 %v5802_v39 }
 0x153   :  { %5805 = vmatprep.subr.bf16.mxu1 %v5804_v42 }
 0x156   :  { %5663 = vmatmul.mubr.bf16.gmra.mrb[44].mxu0 %v7008_v43  ;;  %v1521_v43 = vld [vmem:[%s8128_s6 + $0x40] sm:$0xff] }
 0x157   :  { %5666 = vmatprep.mubr.msk.bf16.mxu0 %vm6728_vm0, %v6727_v7  ;;  %v5806_v45 = vpack.c.bf16 %v1522_v44, %v1521_v43 }
 0x159   :  { %5807 = vmatpush3.bf16.msra.mxu1 %v5806_v45 }
 0x15a   :  { %5809 = vmatprep.subr.bf16.mxu1 %v5808_v48 }
 0x15e   :  { %5667 = vmatmul.mubr.bf16.gmra.mrb[48].mxu0 %v7017_v51  ;;  %v5810_v51 = vpack.c.bf16 %v1524_v50, %v1523_v49 }
 0x15f   :  { %5670 = vmatprep.mubr.msk.bf16.mxu0 %vm6728_vm0, %v6727_v7 }
 0x160   :  { %5811 = vmatpush3.bf16.msra.mxu1 %v5810_v51 }
 0x161   :  { %5813 = vmatprep.subr.bf16.mxu1 %v5812_v54 }
 0x164   :  { %5815 = vmatpush3.bf16.msra.mxu1 %v5814_v57 }
 0x166   :  { %5671 = vmatmul.mubr.bf16.gmra.mrb[52].mxu0 %v7026_v59  ;;  %v1544_v59 = vld [vmem:[%s8128_s6 + $0xf8] sm:$0xff] }
 0x167   :  { %5674 = vmatprep.mubr.msk.bf16.mxu0 %vm6728_vm0, %v6727_v7  ;;  %v5816_v60 = vpack.c.bf16 %v1544_v59, %v1543_v58 }
 0x169   :  { %5817 = vmatprep.subr.bf16.mxu1 %v5816_v60 }
 0x16a   :  { %5819 = vmatpush3.bf16.msra.mxu1 %v5818_v63 }
 0x16b   :  { %5820 = vmatprep.subr.bf16.mxu1 %v6729_v1 }
 0x16e   :  { %5675 = vmatmul.mubr.bf16.gmra.mrb[56].mxu0 %v7035_v5 }
 0x16f   :  { %5717 = vmatprep.mubr.msk.f32.mxu0 %vm6728_vm0, %v6727_v7 }
 0x1d1   :  { %v725_v2 = vpop.f32.mrb[0].mxu0  ;;  %v7182_v3 = vpop.f32.mrb[0].mxu1 }
 0x1d2   :  { %v7184_v4 = vpop.f32.mrb[1].mxu0  ;;  %v808_v5 = vpop.f32.mrb[1].mxu1 }
 0x1d3   :  { %v1103_v6 = vrot.slane %v808_v5, 1  ;;  %v729_v8 = vpop.f32.mrb[2].mxu0  ;;  %v7186_v9 = vpop.f32.mrb[2].mxu1 }
 0x1d4   :  { %v7188_v10 = vpop.f32.mrb[3].mxu0  ;;  %v812_v11 = vpop.f32.mrb[3].mxu1 }
 0x1d5   :  { %v1104_v12 = vrot.slane %v812_v11, 1 }
 0x1d7   :  { %v1105_v13 = vsel %vm1102_vm1, %v1103_v6, %v1104_v12 }
 0x1d8   :  { %v7191_v14 = vadd.f32 %v1105_v13, %v725_v2 }
 0x1d9   :  { %v735_v15 = vpop.f32.mrb[4].mxu0  ;;  %v7193_v16 = vpop.f32.mrb[4].mxu1 }
 0x1da   :  { %v7195_v17 = vpop.f32.mrb[5].mxu0  ;;  %v818_v18 = vpop.f32.mrb[5].mxu1 }
 0x1db   :  { %v1112_v19 = vrot.slane %v818_v18, 1  ;;  %v739_v20 = vpop.f32.mrb[6].mxu0  ;;  %v7197_v21 = vpop.f32.mrb[6].mxu1 }
 0x1dc   :  { %v7199_v22 = vpop.f32.mrb[7].mxu0  ;;  %v822_v23 = vpop.f32.mrb[7].mxu1 }
 0x1dd   :  { %v1113_v24 = vsel %vm1102_vm1, %v1104_v12, %v1112_v19  ;;  %v1118_v25 = vrot.slane %v822_v23, 1 }
 0x1de   :  { %v7202_v26 = vadd.f32 %v1113_v24, %v729_v8 }
 0x1df   :  { %v1119_v27 = vsel %vm1102_vm1, %v1112_v19, %v1118_v25 }
 0x1e0   :  { %v7205_v28 = vadd.f32 %v1119_v27, %v735_v15 }
 0x1e1   :  { %v745_v29 = vpop.f32.mrb[8].mxu0  ;;  %v7207_v30 = vpop.f32.mrb[8].mxu1 }
 0x1e2   :  { %v7209_v31 = vpop.f32.mrb[9].mxu0  ;;  %v828_v32 = vpop.f32.mrb[9].mxu1 }
 0x1e3   :  { %v1124_v33 = vrot.slane %v828_v32, 1  ;;  %v749_v34 = vpop.f32.mrb[10].mxu0  ;;  %v7211_v35 = vpop.f32.mrb[10].mxu1 }
 0x1e4   :  { %v7213_v36 = vpop.f32.mrb[11].mxu0  ;;  %v832_v37 = vpop.f32.mrb[11].mxu1 }
 0x1e5   :  { %v1125_v38 = vsel %vm1102_vm1, %v1118_v25, %v1124_v33  ;;  %v1233_v39 = vrot.slane %v832_v37, 1 }
 0x1e6   :  { %v7216_v40 = vadd.f32 %v1125_v38, %v739_v20 }
 0x1e7   :  { %v1234_v41 = vsel %vm1102_vm1, %v1124_v33, %v1233_v39 }
 0x1e8   :  { %v7219_v42 = vadd.f32 %v1234_v41, %v745_v29 }
 0x1e9   :  { %v755_v43 = vpop.f32.mrb[12].mxu0  ;;  %v7221_v44 = vpop.f32.mrb[12].mxu1 }
 0x1ea   :  { %v7223_v45 = vpop.f32.mrb[13].mxu0  ;;  %v838_v46 = vpop.f32.mrb[13].mxu1 }
 0x1eb   :  { %v1239_v47 = vrot.slane %v838_v46, 1  ;;  %v759_v48 = vpop.f32.mrb[14].mxu0  ;;  %v7225_v49 = vpop.f32.mrb[14].mxu1 }
 0x1ec   :  { %v7227_v50 = vpop.f32.mrb[15].mxu0  ;;  %v842_v51 = vpop.f32.mrb[15].mxu1 }
 0x1ed   :  { %v1240_v52 = vsel %vm1102_vm1, %v1233_v39, %v1239_v47  ;;  %v1245_v53 = vrot.slane %v842_v51, 1 }
 0x1ee   :  { %v7230_v54 = vadd.f32 %v1240_v52, %v749_v34 }
 0x1ef   :  { %v1246_v55 = vsel %vm1102_vm1, %v1239_v47, %v1245_v53 }
 0x1f0   :  { %v7233_v56 = vadd.f32 %v1246_v55, %v755_v43 }
 0x1f1   :  { %v765_v57 = vpop.f32.mrb[16].mxu0  ;;  %v7235_v58 = vpop.f32.mrb[16].mxu1 }
 0x1f2   :  { %v7237_v59 = vpop.f32.mrb[17].mxu0  ;;  %v848_v60 = vpop.f32.mrb[17].mxu1 }
 0x1f3   :  { %v1251_v61 = vrot.slane %v848_v60, 1  ;;  %v769_v62 = vpop.f32.mrb[18].mxu0  ;;  %v850_v63 = vpop.f32.mrb[18].mxu1 }
 0x1f4   :  { %v770_v2 = vpop.f32.mrb[19].mxu0  ;;  %v851_v5 = vpop.f32.mrb[19].mxu1 }
 0x1f5   :  { %v1252_v6 = vsel %vm1102_vm1, %v1245_v53, %v1251_v61  ;;  %v7240_v8 = vadd.f32 %v1251_v61, %v765_v57 }
 0x1f6   :  { %v7242_v11 = vadd.f32 %v1252_v6, %v759_v48 }
 0x1f9   :  { %v887_v12 = vpop.f32.mrb[20].mxu0  ;;  %v968_v13 = vpop.f32.mrb[20].mxu1 }
 0x1fa   :  { %v1170_v15 = vrot.slane %v968_v13, 2  ;;  %v889_v18 = vpop.f32.mrb[21].mxu0  ;;  %v970_v19 = vpop.f32.mrb[21].mxu1  ;;  %v1106_v25 = vrot.slane %v887_v12, 1 }
 0x1fb   :  { %v1173_v20 = vrot.slane %v970_v19, 2  ;;  %v891_v23 = vpop.f32.mrb[22].mxu0  ;;  %v972_v24 = vpop.f32.mrb[22].mxu1  ;;  %v1109_v34 = vrot.slane %v889_v18, 1 }
 0x1fc   :  { %v1107_v27 = vrot.slane %v891_v23, 1  ;;  %v1171_v29 = vrot.slane %v972_v24, 2  ;;  %v893_v32 = vpop.f32.mrb[23].mxu0  ;;  %v974_v33 = vpop.f32.mrb[23].mxu1 }
 0x1fd   :  { %v1110_v37 = vrot.slane %v893_v32, 1  ;;  %v1174_v38 = vrot.slane %v974_v33, 2 }
 0x1fe   :  { %v1108_v39 = vsel %vm1102_vm1, %v1106_v25, %v1107_v27  ;;  %v1172_v41 = vsel %vm1169_vm2, %v1170_v15, %v1171_v29 }
 0x1ff   :  { %v1143_v43 = vadd.f32 %v1108_v39, %v7184_v4  ;;  %v7248_v46 = vadd.f32 %v1172_v41, %v7191_v14  ;;  %v1111_v47 = vsel %vm1102_vm1, %v1109_v34, %v1110_v37  ;;  %v1175_v48 = vsel %vm1169_vm2, %v1173_v20, %v1174_v38 }
 0x200   :  { %v7253_v51 = vadd.f32 %v1111_v47, %v7182_v3 }
 0x201   :  { %v7255_v52 = vadd.f32 %v1175_v48, %v1143_v43  ;;  %v897_v53 = vpop.f32.mrb[24].mxu0  ;;  %v978_v55 = vpop.f32.mrb[24].mxu1 }
 0x202   :  { %v1114_v57 = vrot.slane %v897_v53, 1  ;;  %v1179_v60 = vrot.slane %v978_v55, 2  ;;  %v899_v61 = vpop.f32.mrb[25].mxu0  ;;  %v980_v62 = vpop.f32.mrb[25].mxu1 }
 0x203   :  { %v1116_v63 = vrot.slane %v899_v61, 1  ;;  %v1181_v4 = vrot.slane %v980_v62, 2  ;;  %v901_v2 = vpop.f32.mrb[26].mxu0  ;;  %v982_v14 = vpop.f32.mrb[26].mxu1  ;;  %v1447_v43 = vmul.f32 %v7255_v52, %v7255_v52 }
 0x204   :  { %v1115_v5 = vsel %vm1102_vm1, %v1107_v27, %v1114_v57  ;;  %v1180_v6 = vsel %vm1169_vm2, %v1171_v29, %v1179_v60  ;;  %v1120_v12 = vrot.slane %v901_v2, 1  ;;  %v1185_v13 = vrot.slane %v982_v14, 2  ;;  %v903_v3 = vpop.f32.mrb[27].mxu0  ;;  %v984_v15 = vpop.f32.mrb[27].mxu1 }
 0x205   :  { %v1146_v18 = vadd.f32 %v1115_v5, %v7188_v10  ;;  %v7261_v19 = vadd.f32 %v1180_v6, %v7202_v26  ;;  %v1117_v20 = vsel %vm1102_vm1, %v1110_v37, %v1116_v63  ;;  %v1182_v23 = vsel %vm1169_vm2, %v1174_v38, %v1181_v4 }
 0x206   :  { %v7266_v24 = vadd.f32 %v1117_v20, %v7186_v9  ;;  %v1121_v25 = vsel %vm1102_vm1, %v1114_v57, %v1120_v12  ;;  %v1186_v27 = vsel %vm1169_vm2, %v1179_v60, %v1185_v13  ;;  %v1122_v29 = vrot.slane %v903_v3, 1 }
 0x207   :  { %v1449_v32 = vmul.f32 %v7261_v19, %v7261_v19  ;;  %v7272_v33 = vadd.f32 %v1182_v23, %v1146_v18  ;;  %v1149_v10 = vadd.f32 %v1121_v25, %v7195_v17  ;;  %v7276_v26 = vadd.f32 %v1186_v27, %v7205_v28 }
 0x208   :  { %v1123_v34 = vsel %vm1102_vm1, %v1116_v63, %v1122_v29  ;;  %v1187_v37 = vrot.slane %v984_v15, 2  ;;  %v1446_v9 = vmul.f32 %v7248_v46, %v7248_v46  ;;  %v1407_v17 = vadd.f32 %v7261_v19, %v7248_v46 }
 0x209   :  { %v7282_v38 = vadd.f32 %v1123_v34, %v7193_v16  ;;  %v907_v39 = vpop.f32.mrb[28].mxu0  ;;  %v988_v41 = vpop.f32.mrb[28].mxu1  ;;  %v1450_v63 = vmul.f32 %v7272_v33, %v7272_v33  ;;  %v1452_v15 = vmul.f32 %v7276_v26, %v7276_v26 }
 0x20a   :  { %v1188_v28 = vsel %vm1169_vm2, %v1181_v4, %v1187_v37  ;;  %v1126_v47 = vrot.slane %v907_v39, 1  ;;  %v909_v48 = vpop.f32.mrb[29].mxu0  ;;  %v990_v53 = vpop.f32.mrb[29].mxu1  ;;  %v1470_v55 = vadd.f32 %v1449_v32, %v1446_v9  ;;  %v1191_v60 = vrot.slane %v988_v41, 2 }
 0x20b   :  { %v7289_v57 = vadd.f32 %v1188_v28, %v1149_v10  ;;  %v1128_v61 = vrot.slane %v909_v48, 1  ;;  %v911_v16 = vpop.f32.mrb[30].mxu0  ;;  %v992_v62 = vpop.f32.mrb[30].mxu1  ;;  %v1193_v14 = vrot.slane %v990_v53, 2  ;;  %v1420_v4 = vadd.f32 %v7272_v33, %v7255_v52 }
 0x20c   :  { %v1127_v2 = vsel %vm1102_vm1, %v1120_v12, %v1126_v47  ;;  %v1235_v5 = vrot.slane %v911_v16, 1  ;;  %v913_v6 = vpop.f32.mrb[31].mxu0  ;;  %v994_v3 = vpop.f32.mrb[31].mxu1  ;;  %v1192_v20 = vsel %vm1169_vm2, %v1185_v13, %v1191_v60  ;;  %v7312_v9 = vadd.f32 %v1450_v63, %v1447_v43 }
 0x20d   :  { %v1152_v18 = vadd.f32 %v1127_v2, %v7199_v22  ;;  %v7301_v23 = vadd.f32 %v1192_v20, %v7216_v40  ;;  %v1129_v25 = vsel %vm1102_vm1, %v1122_v29, %v1128_v61  ;;  %v1194_v12 = vsel %vm1169_vm2, %v1187_v37, %v1193_v14 }
 0x20e   :  { %v1236_v27 = vsel %vm1102_vm1, %v1126_v47, %v1235_v5  ;;  %v7307_v32 = vadd.f32 %v1129_v25, %v7197_v21  ;;  %v1408_v22 = vadd.f32 %v1407_v17, %v7276_v26  ;;  %v1299_v13 = vrot.slane %v992_v62, 2 }
 0x20f   :  { %v7309_v10 = vadd.f32 %v1194_v12, %v1152_v18  ;;  %v1273_v34 = vadd.f32 %v1236_v27, %v7209_v31  ;;  %v1237_v40 = vrot.slane %v913_v6, 1  ;;  %v1471_v39 = vadd.f32 %v1470_v55, %v1452_v15 }
 0x210   :  { %v7316_v29 = vadd.f32 %v1420_v4, %v7289_v57  ;;  %v1453_v37 = vmul.f32 %v7289_v57, %v7289_v57  ;;  %v1301_v41 = vrot.slane %v994_v3, 2  ;;  %v7321_v47 = vadd.f32 %v1408_v22, %v7301_v23 }
 0x211   :  { %v917_v21 = vpop.f32.mrb[32].mxu0  ;;  %v998_v28 = vpop.f32.mrb[32].mxu1  ;;  %v1300_v31 = vsel %vm1169_vm2, %v1191_v60, %v1299_v13  ;;  %v1238_v43 = vsel %vm1102_vm1, %v1128_v61, %v1237_v40  ;;  %v1455_v55 = vmul.f32 %v7301_v23, %v7301_v23  ;;  %v1456_v20 = vmul.f32 %v7309_v10, %v7309_v10 }
 0x212   :  { %v1241_v17 = vrot.slane %v917_v21, 1  ;;  %v919_v48 = vpop.f32.mrb[33].mxu0  ;;  %v1000_v53 = vpop.f32.mrb[33].mxu1  ;;  %v1338_v16 = vadd.f32 %v1300_v31, %v7219_v42  ;;  %v7329_v62 = vadd.f32 %v1238_v43, %v7207_v30  ;;  %v1302_v63 = vsel %vm1169_vm2, %v1193_v14, %v1301_v41 }
 0x213   :  { %v921_v2 = vpop.f32.mrb[34].mxu0  ;;  %v1002_v6 = vpop.f32.mrb[34].mxu1  ;;  %v1339_v3 = vadd.f32 %v1302_v63, %v1273_v34  ;;  %v1305_v4 = vrot.slane %v998_v28, 2  ;;  %v1243_v61 = vrot.slane %v919_v48, 1  ;;  %v1307_v30 = vrot.slane %v1000_v53, 2 }
 0x214   :  { %v1242_v60 = vsel %vm1102_vm1, %v1235_v5, %v1241_v17  ;;  %v7333_v15 = vpop.f32.mrb[35].mxu0  ;;  %v7335_v18 = vpop.f32.mrb[35].mxu1  ;;  %v1247_v25 = vrot.slane %v921_v2, 1  ;;  %v1368_v12 = vrot.slane %v1338_v16, 2  ;;  %v1311_v34 = vrot.slane %v1002_v6, 2 }
 0x215   :  { %v1276_v42 = vadd.f32 %v1242_v60, %v7213_v36  ;;  %v1306_v14 = vsel %vm1169_vm2, %v1299_v13, %v1305_v4  ;;  %v1244_v27 = vsel %vm1102_vm1, %v1237_v40, %v1243_v61  ;;  %v1308_v21 = vsel %vm1169_vm2, %v1301_v41, %v1307_v30 }
 0x216   :  { %v1341_v5 = vadd.f32 %v1306_v14, %v7230_v54  ;;  %v7344_v22 = vadd.f32 %v1244_v27, %v7211_v35  ;;  %v1248_v28 = vsel %vm1102_vm1, %v1241_v17, %v1247_v25  ;;  %v1312_v43 = vsel %vm1169_vm2, %v1305_v4, %v1311_v34 }
 0x217   :  { %v1342_v31 = vadd.f32 %v1308_v21, %v1276_v42  ;;  %v1279_v36 = vadd.f32 %v1248_v28, %v7223_v45  ;;  %v1249_v48 = vrot.slane %v7333_v15, 1  ;;  %v1371_v13 = vrot.slane %v1339_v3, 2 }
 0x218   :  { %v1369_v53 = vrot.slane %v1341_v5, 2  ;;  %v1344_v40 = vadd.f32 %v1312_v43, %v7233_v56  ;;  %v1313_v54 = vrot.slane %v7335_v18, 2  ;;  %v1472_v42 = vadd.f32 %v1471_v39, %v1455_v55 }
 0x219   :  { %v927_v16 = vpop.f32.mrb[36].mxu0  ;;  %v1008_v35 = vpop.f32.mrb[36].mxu1  ;;  %v1372_v63 = vrot.slane %v1342_v31, 2  ;;  %v1250_v41 = vsel %vm1102_vm1, %v1243_v61, %v1249_v48 }
 0x21a   :  { %v1253_v2 = vrot.slane %v927_v16, 1  ;;  %v1317_v17 = vrot.slane %v1008_v35, 2  ;;  %v929_v6 = vpop.f32.mrb[37].mxu0  ;;  %v1010_v60 = vpop.f32.mrb[37].mxu1  ;;  %v7355_v45 = vsel %vm1169_vm2, %v1368_v12, %v1369_v53  ;;  %v1377_v4 = vrot.slane %v1344_v40, 2 }
 0x21b   :  { %v7358_v3 = vadd.f32 %v1250_v41, %v7221_v44  ;;  %v1314_v56 = vsel %vm1169_vm2, %v1307_v30, %v1313_v54  ;;  %v931_v15 = vpop.f32.mrb[38].mxu0  ;;  %v1012_v18 = vpop.f32.mrb[38].mxu1  ;;  %v1458_v14 = vmul.f32 %v7355_v45, %v7355_v45  ;;  %v7364_v61 = vsel %vm1169_vm2, %v1371_v13, %v1372_v63 }
 0x21c   :  { %v1345_v27 = vadd.f32 %v1314_v56, %v1279_v36  ;;  %v932_v5 = vpop.f32.mrb[39].mxu0  ;;  %v1013_v21 = vpop.f32.mrb[39].mxu1  ;;  %v1484_v12 = vadd.f32 %v7312_v9, %v1453_v37  ;;  %v1422_v44 = vadd.f32 %v7316_v29, %v7309_v10  ;;  %v7370_v28 = vsel %vm1169_vm2, %v1369_v53, %v1377_v4 }
 0x21d   :  { %v1254_v30 = vsel %vm1102_vm1, %v1247_v25, %v1253_v2  ;;  %v1410_v39 = vadd.f32 %v7321_v47, %v7355_v45  ;;  %v1473_v55 = vadd.f32 %v1472_v42, %v1458_v14  ;;  %v1459_v31 = vmul.f32 %v7364_v61, %v7364_v61 }
 0x21e   :  { %v1379_v36 = vrot.slane %v1345_v27, 2  ;;  %v1461_v43 = vmul.f32 %v7370_v28, %v7370_v28  ;;  %v1282_v9 = vadd.f32 %v1254_v30, %v7227_v50  ;;  %v1285_v29 = vadd.f32 %v1253_v2, %v7237_v59 }
 0x21f   :  { %v1318_v37 = vsel %vm1169_vm2, %v1311_v34, %v1317_v17  ;;  %v1485_v13 = vadd.f32 %v1484_v12, %v1456_v20  ;;  %v1350_v53 = vadd.f32 %v1317_v17, %v7240_v8  ;;  %v1423_v40 = vadd.f32 %v1422_v44, %v7364_v61 }
 0x220   :  { %v7383_v25 = vsel %vm1169_vm2, %v1372_v63, %v1379_v36  ;;  %v1347_v47 = vadd.f32 %v1318_v37, %v7242_v11  ;;  %v1255_v16 = vrot.slane %v929_v6, 1  ;;  %v1319_v35 = vrot.slane %v1010_v60, 2 }
 0x221   :  { %v1049_v41 = vpop.f32.mrb[40].mxu0  ;;  %v1486_v56 = vadd.f32 %v1485_v13, %v1459_v31  ;;  %v1411_v50 = vadd.f32 %v1410_v39, %v7370_v28  ;;  %v1389_v59 = vrot.slane %v1350_v53, 2  ;;  %v1474_v34 = vadd.f32 %v1473_v55, %v1461_v43 }
 0x222   :  { %v1383_v15 = vrot.slane %v1347_v47, 2  ;;  %v5660_v2 = vpop.f32.mrb[41].mxu0  ;;  %v1256_v20 = vsel %vm1102_vm1, %v1249_v48, %v1255_v16  ;;  %v7391_v63 = vadd.f32 %v1255_v16, %v7235_v58  ;;  %v1320_v11 = vsel %vm1169_vm2, %v1313_v54, %v1319_v35 }
 0x223   :  { %v1052_v8 = vpop.f32.mrb[42].mxu0  ;;  %v7401_v60 = vadd.f32 %v1256_v20, %v7225_v49  ;;  %v1348_v18 = vadd.f32 %v1320_v11, %v1282_v9  ;;  %v1424_v14 = vadd.f32 %v1423_v40, %v7383_v25  ;;  %v1351_v54 = vadd.f32 %v1319_v35, %v1285_v29 }
 0x224   :  { %v7395_v17 = vsel %vm1169_vm2, %v1377_v4, %v1383_v15  ;;  %v7398_v6 = vsel %vm1169_vm2, %v1383_v15, %v1389_v59  ;;  %v5661_v42 = vpop.f32.mrb[43].mxu0  ;;  %v1462_v4 = vmul.f32 %v7383_v25, %v7383_v25  ;;  %v1176_v5 = vrot.slane %v1049_v41, 2 }
 0x225   :  { %v1412_v48 = vadd.f32 %v1411_v50, %v7395_v17  ;;  %v1464_v58 = vmul.f32 %v7395_v17, %v7395_v17  ;;  %v1385_v27 = vrot.slane %v1348_v18, 2  ;;  %v1177_v21 = vrot.slane %v1052_v8, 2 }
 0x226   :  { %v1467_v49 = vmul.f32 %v7398_v6, %v7398_v6  ;;  %v1391_v30 = vrot.slane %v1351_v54, 2  ;;  %v1487_v13 = vadd.f32 %v1486_v56, %v1462_v4 }
 0x227   :  { %v1413_v12 = vadd.f32 %v1412_v48, %v7398_v6  ;;  %v1475_v44 = vadd.f32 %v1474_v34, %v1464_v58  ;;  %v7413_v39 = vsel %vm1169_vm2, %v1379_v36, %v1385_v27  ;;  %v1178_v55 = vsel %vm1169_vm2, %v1176_v5, %v1177_v21 }
 0x228   :  { %v7417_v9 = vsel %vm1169_vm2, %v1385_v27, %v1391_v30  ;;  %v1425_v29 = vadd.f32 %v1424_v14, %v7413_v39  ;;  %v1465_v47 = vmul.f32 %v7413_v39, %v7413_v39  ;;  %v7423_v53 = vadd.f32 %v1178_v55, %v7253_v51 }
 0x229   :  { %v1414_v31 = vrot.slane %v1413_v12, 4  ;;  %v1476_v43 = vadd.f32 %v1475_v44, %v1467_v49  ;;  %v1057_v37 = vpop.f32.mrb[44].mxu0  ;;  %v1468_v15 = vmul.f32 %v7417_v9, %v7417_v9 }
 0x22a   :  { %v1183_v40 = vrot.slane %v1057_v37, 2  ;;  %v5664_v36 = vpop.f32.mrb[45].mxu0  ;;  %v1426_v41 = vadd.f32 %v1425_v29, %v7417_v9  ;;  %v1488_v59 = vadd.f32 %v1487_v13, %v1465_v47 }
 0x22b   :  { %v1415_v16 = vadd.f32 %v1414_v31, %v1413_v12  ;;  %v1477_v35 = vrot.slane %v1476_v43, 4  ;;  %v1060_v50 = vpop.f32.mrb[46].mxu0 }
 0x22c   :  { %v1184_v2 = vsel %vm1169_vm2, %v1177_v21, %v1183_v40  ;;  %v1189_v56 = vrot.slane %v1060_v50, 2  ;;  %v5665_v34 = vpop.f32.mrb[47].mxu0  ;;  %v1427_v11 = vrot.slane %v1426_v41, 4  ;;  %v1489_v8 = vadd.f32 %v1488_v59, %v1468_v15  ;;  %v1546_v50 = vld [vmem:[%s8128_s6 + $0x108] sm:$0xff] }
 0x22d   :  { %v1478_v20 = vadd.f32 %v1477_v35, %v1476_v43  ;;  %v7430_v51 = vadd.f32 %v1184_v2, %v7266_v24  ;;  %v1416_v42 = vrot.slane %v1415_v16, 2 }
 0x22e   :  { %v1190_v18 = vsel %vm1169_vm2, %v1183_v40, %v1189_v56  ;;  %v1428_v48 = vadd.f32 %v1427_v11, %v1426_v41  ;;  %v1490_v58 = vrot.slane %v1489_v8, 4 }
 0x22f   :  { %v7434_v14 = vadd.f32 %v1190_v18, %v7282_v38  ;;  %v1479_v54 = vrot.slane %v1478_v20, 2  ;;  %v1417_v24 = vadd.f32 %v1416_v42, %v1415_v16  ;;  %v1545_v16 = vld [vmem:[%s8128_s6 + $0x100] sm:$0xff]  ;;  %v1451_v59 = vmul.f32 %v7430_v51, %v7430_v51 }
 0x230   :  { %v1429_v27 = vrot.slane %v1428_v48, 2  ;;  %v1491_v12 = vadd.f32 %v1490_v58, %v1489_v8  ;;  %v5821_v18 = vpack.c.bf16 %v1546_v50, %v1545_v16  ;;  %v1433_v42 = vadd.f32 %v7430_v51, %v7423_v53 }
 0x231   :  { %v1065_v4 = vpop.f32.mrb[48].mxu0  ;;  %v1480_v49 = vadd.f32 %v1479_v54, %v1478_v20  ;;  %v1418_v35 = vrot.slane %v1417_v24, 1  ;;  %v1448_v20 = vmul.f32 %v7423_v53, %v7423_v53 }
 0x232   :  { %v1195_v5 = vrot.slane %v1065_v4, 2  ;;  %v5668_v21 = vpop.f32.mrb[49].mxu0  ;;  %v1430_v30 = vadd.f32 %v1429_v27, %v1428_v48  ;;  %v1492_v29 = vrot.slane %v1491_v12, 2  ;;  %v1547_v27 = vld [vmem:[%s8128_s6 + $0x110] sm:$0xff] }
 0x233   :  { %v1068_v44 = vpop.f32.mrb[50].mxu0  ;;  %v1481_v37 = vrot.slane %v1480_v49, 1  ;;  %v1419_v11 = vadd.f32 %v1418_v35, %v1417_v24 }
 0x234   :  { %v1196_v55 = vsel %vm1169_vm2, %v1189_v56, %v1195_v5  ;;  %v1303_v31 = vrot.slane %v1068_v44, 2  ;;  %v5669_v43 = vpop.f32.mrb[51].mxu0  ;;  %v1431_v47 = vrot.slane %v1430_v30, 1  ;;  %v1493_v40 = vadd.f32 %v1492_v29, %v1491_v12 }
 0x235   :  { %v7438_v38 = vadd.f32 %v1196_v55, %v7307_v32  ;;  %v1482_v32 = vadd.f32 %v1481_v37, %v1480_v49  ;;  %v1496_v49 = vadd.f32 %v1451_v59, %v1448_v20  ;;  %v1454_v44 = vmul.f32 %v7434_v14, %v7434_v14  ;;  %v1549_v37 = vld [vmem:[%s8128_s6 + $0x120] sm:$0xff]  ;;  %v1551_v20 = vld [vmem:[%s8128_s6 + $0x130] sm:$0xff] }
 0x236   :  { %v1304_v13 = vsel %vm1169_vm2, %v1195_v5, %v1303_v31  ;;  %v1494_v41 = vrot.slane %v1493_v40, 1  ;;  %v1432_v2 = vadd.f32 %v1431_v47, %v1430_v30  ;;  %v1548_v5 = vld [vmem:[%s8128_s6 + $0x118] sm:$0xff]  ;;  %v1434_v29 = vadd.f32 %v1433_v42, %v7434_v14 }
 0x237   :  { %v1340_v36 = vadd.f32 %v1304_v13, %v7329_v62  ;;  %v1510_v21 = vsel %vm1509_vm3, %v1419_v11, %v1482_v32  ;;  %v5824_v43 = vpack.c.bf16 %v1548_v5, %v1547_v27  ;;  %v1552_v11 = vld [vmem:[%s8128_s6 + $0x138] sm:$0xff]  ;;  %v1553_v5 = vld [vmem:[%s8128_s6 + $0x140] sm:$0xff] }
 0x238   :  { %v1495_v56 = vadd.f32 %v1494_v41, %v1493_v40  ;;  %v1435_v35 = vadd.f32 %v1434_v29, %v7438_v38  ;;  %v1556_v29 = vld [vmem:[%s8128_s6 + $0x158] sm:$0xff] }
 0x239   :  { %v1073_v15 = vpop.f32.mrb[52].mxu0  ;;  %v1374_v24 = vrot.slane %v1340_v36, 2  ;;  %v1497_v36 = vadd.f32 %v1496_v49, %v1454_v44 }
 0x23a   :  { %v1309_v34 = vrot.slane %v1073_v15, 2  ;;  %v5672_v62 = vpop.f32.mrb[53].mxu0  ;;  %v1511_v48 = vsel %vm1509_vm3, %v1432_v2, %v1495_v56 }
 0x23b   :  { %v1076_v8 = vpop.f32.mrb[54].mxu0  ;;  %1625 = vmatprep.mubr.f32.mxu1 %v1511_v48 }
 0x23c   :  { %v1310_v58 = vsel %vm1169_vm2, %v1303_v31, %v1309_v34  ;;  %v1315_v54 = vrot.slane %v1076_v8, 2  ;;  %v5673_v4 = vpop.f32.mrb[55].mxu0  ;;  %1626 = vmatmul.mubr.f32.vlgmr.msra.gmra.mrb[40].mxu1 %v1510_v21 }
 0x23d   :  { %v1343_v12 = vadd.f32 %v1310_v58, %v7344_v22  ;;  %5822 = vmatpush3.bf16.msra.mxu1 %v5821_v18  ;;  %5710 = vmatprep.mubr.msk.f32.mxu1 %vm6728_vm0, %v6727_v7  ;;  %v1457_v22 = vmul.f32 %v7438_v38, %v7438_v38  ;;  %v5830_v4 = vpack.c.bf16 %v1552_v11, %v1551_v20 }
 0x23e   :  { %v1316_v30 = vsel %vm1169_vm2, %v1309_v34, %v1315_v54  ;;  %5823 = vmatprep.subr.bf16.mxu1 %v6729_v1 }
 0x23f   :  { %v1375_v55 = vrot.slane %v1343_v12, 2  ;;  %v1346_v31 = vadd.f32 %v1316_v30, %v7358_v3  ;;  %v1550_v3 = vld [vmem:[%s8128_s6 + $0x128] sm:$0xff]  ;;  %v1498_v2 = vadd.f32 %v1497_v36, %v1457_v22  ;;  %v1557_v36 = vld [vmem:[%s8128_s6 + $0x160] sm:$0xff] }
 0x240   :  { %v5827_v59 = vpack.c.bf16 %v1550_v3, %v1549_v37 }
 0x241   :  { %v7481_v13 = vsel %vm1169_vm2, %v1374_v24, %v1375_v55  ;;  %v1381_v47 = vrot.slane %v1346_v31, 2  ;;  %v1081_v40 = vpop.f32.mrb[56].mxu0  ;;  %5825 = vmatpush3.bf16.msra.mxu1 %v5824_v43  ;;  %v1555_v43 = vld [vmem:[%s8128_s6 + $0x150] sm:$0xff] }
 0x242   :  { %v1460_v41 = vmul.f32 %v7481_v13, %v7481_v13  ;;  %v1321_v16 = vrot.slane %v1081_v40, 2  ;;  %v5676_v50 = vpop.f32.mrb[57].mxu0  ;;  %v1436_v56 = vadd.f32 %v1435_v35, %v7481_v13  ;;  %5826 = vmatprep.subr.bf16.mxu1 %v6729_v1  ;;  %v5836_v3 = vpack.c.bf16 %v1556_v29, %v1555_v43  ;;  %v1558_v35 = vld [vmem:[%s8128_s6 + $0x168] sm:$0xff] }
 0x243   :  { %v7487_v32 = vsel %vm1169_vm2, %v1375_v55, %v1381_v47  ;;  %v1084_v15 = vpop.f32.mrb[58].mxu0  ;;  %v5839_v50 = vpack.c.bf16 %v1558_v35, %v1557_v36  ;;  %v1715_v35 = vlaneseq }
 0x244   :  { %v1322_v34 = vsel %vm1169_vm2, %v1315_v54, %v1321_v16  ;;  %v5677_v62 = vpop.f32.mrb[59].mxu0  ;;  %v1352_v18 = vadd.f32 %v1321_v16, %v7391_v63  ;;  %v1499_v42 = vadd.f32 %v1498_v2, %v1460_v41  ;;  %v1463_v48 = vmul.f32 %v7487_v32, %v7487_v32  ;;  %v1554_v63 = vld [vmem:[%s8128_s6 + $0x148] sm:$0xff]  ;;  %v1559_v15 = vld [vmem:[%s8128_s6 + $0x170] sm:$0xff] }
 0x245   :  { %v1349_v8 = vadd.f32 %v1322_v34, %v7401_v60  ;;  %5828 = vmatpush3.bf16.msra.mxu1 %v5827_v59  ;;  %v1437_v27 = vadd.f32 %v1436_v56, %v7487_v32  ;;  %v5833_v30 = vpack.c.bf16 %v1554_v63, %v1553_v5  ;;  %v1560_v59 = vld [vmem:[%s8128_s6 + $0x178] sm:$0xff]  ;;  %v1739_v5 = vld [vmem:[#allocation10] sm:$0xff] }
 0x246   :  { %v1393_v54 = vrot.slane %v1352_v18, 2  ;;  %5829 = vmatprep.subr.bf16.mxu1 %v6729_v1  ;;  %v1500_v12 = vadd.f32 %v1499_v42, %v1463_v48  ;;  %v5842_v20 = vpack.c.bf16 %v1560_v59, %v1559_v15  ;;  %v1741_v48 = vld [vmem:[#allocation10 + $0x10] sm:$0xff] }
 0x247   :  { %v1387_v58 = vrot.slane %v1349_v8, 2 }
 0x249   :  { %v7511_v60 = vsel %vm1169_vm2, %v1381_v47, %v1387_v58  ;;  %v7514_v21 = vsel %vm1169_vm2, %v1387_v58, %v1393_v54  ;;  %5831 = vmatpush3.bf16.msra.mxu1 %v5830_v4  ;;  %v1744_v58 = vld [vmem:[#allocation10 + $0x28] sm:$0xf] }
 0x24a   :  { %v1438_v49 = vadd.f32 %v1437_v27, %v7511_v60  ;;  %v1466_v44 = vmul.f32 %v7511_v60, %v7511_v60  ;;  %v1469_v55 = vmul.f32 %v7514_v21, %v7514_v21  ;;  %5832 = vmatprep.subr.bf16.mxu1 %v6729_v1  ;;  %v1740_v54 = vld [vmem:[#allocation10 + $0x8] sm:$0xff]  ;;  %v5851_v4 = vpack.c.bf16 %v1744_v58, %v1741_v48  ;;  %v1743_v27 = vld [vmem:[#allocation10 + $0x20] sm:$0xf] }
 0x24b   :  { %v5844_v63 = vpack.c.bf16 %v1743_v27, %v1740_v54  ;;  %v7555_v58 = vld [vmem:[#allocation4] sm:$0xff]  }
 0x24c   :  { %v1439_v24 = vadd.f32 %v1438_v49, %v7514_v21  ;;  %v1501_v31 = vadd.f32 %v1500_v12, %v1466_v44  ;;  %v1742_v12 = vld [vmem:[#allocation10 + $0x18] sm:$0xf]  ;;  %5853 = vmatpush3.bf16.msk.msra.mxu0 %vm5845_vm6, %v5851_v4 }
 0x24d   :  { %5834 = vmatpush3.bf16.msra.mxu1 %v5833_v30  ;;  %v5847_v49 = vpack.c.bf16 %v1742_v12, %v1739_v5 }
 0x24e   :  { %v1440_v22 = vrot.slane %v1439_v24, 4  ;;  %v1502_v37 = vadd.f32 %v1501_v31, %v1469_v55  ;;  %5835 = vmatprep.subr.bf16.mxu1 %v6729_v1 }
 0x250   :  { %v1441_v47 = vadd.f32 %v1440_v22, %v1439_v24  ;;  %v1503_v40 = vrot.slane %v1502_v37, 4 }
 0x251   :  { %5837 = vmatpush3.bf16.msra.mxu1 %v5836_v3 }
 0x252   :  { %v1442_v41 = vrot.slane %v1441_v47, 2  ;;  %v1504_v16 = vadd.f32 %v1503_v40, %v1502_v37  ;;  %5838 = vmatprep.subr.bf16.mxu1 %v6729_v1  ;;  %v6731_v40 = vmov 1966171168  }
 0x253   :  { %v1713_v36 = vunpack.c.l.s4 %v6731_v40 }
 0x254   :  { %v1443_v2 = vadd.f32 %v1442_v41, %v1441_v47  ;;  %v1505_v56 = vrot.slane %v1504_v16, 2 }
 0x255   :  { %5840 = vmatpush3.bf16.msra.mxu1 %v5839_v50  ;;  %v1714_v41 = vunpack.c.0.s8 %v1713_v36 }
 0x256   :  { %v1444_v34 = vrot.slane %v1443_v2, 1  ;;  %v1506_v62 = vadd.f32 %v1505_v56, %v1504_v16  ;;  %5841 = vmatprep.subr.bf16.mxu1 %v6729_v1  ;;  %v1716_v16 = vshrl.u32 %v1715_v35, 7  ;;  %v1708_v56 = vld [vmem:[#allocation12] sm:$0x1] }
 0x258   :  { %v1507_v11 = vrot.slane %v1506_v62, 1  ;;  %v1445_v8 = vadd.f32 %v1444_v34, %v1443_v2  ;;  %v7546_v50 = vsub.s32 %v1714_v41, %v1716_v16  ;;  %v7559_v54 = vsub.s32 1, %v1716_v16 }
 0x259   :  { %5843 = vmatpush3.bf16.msra.mxu1 %v5842_v20  ;;  %v1729_v20 = vld [vmem:[#allocation13] sm:$0x1] }
 0x25a   :  { %v1508_v18 = vadd.f32 %v1507_v11, %v1506_v62  ;;  %5846 = vmatprep.subr.msk.bf16.mxu1 %vm5845_vm6, %v5844_v63 }
 0x25c   :  { %v1512_v42 = vsel %vm1509_vm3, %v1445_v8, %v1508_v18  ;;  %v7550_v8 = vsub.s32 0, %v1716_v16 }
 0x25d   :  { %5711 = vmatmul.mubr.f32.vlgmr.msra.gmra.mrb[42].mxu1 %v1512_v42 }
 0x25e   :  { %1823 = vmatprep.mubr.f32.mxu1 %v6727_v7  ;;  %5849 = vmatpush1.bf16.msk.msra.mxu1 %vm5845_vm6, %v5847_v49 }
 0x30f   :  { %v5505_v44 = vpop.f32.mrb[40].mxu1 }
 0x310   :  { %v5506_v30 = vpop.f32.mrb[41].mxu1 }
 0x311   :  { %v5507_v24 = vadd.f32 %v5506_v30, %v5505_v44 }
 0x330   :  { %v1697_v55 = vpop.f32.mrb[42].mxu1 }
 0x331   :  { %v1698_v31 = vadd.f32 %v5507_v24, %v1697_v55  ;;  %v5712_v43 = vpop.f32.mrb[43].mxu1 }
 0x333   :  { %v1702_v29 = vmul.f32 0.00048828125, %v1698_v31 }
 0x335   :  { %v1703_v22 = vmul.f32 %v1702_v29, %v1702_v29 }
 0x337   :  { %v1705_v37 = vrot.slane %v1703_v22, 7 }
 0x339   :  { %v1707_v3 = vsub.f32 %v1702_v29, %v1705_v37 }
 0x33b   :  { %v1709_v47 = vadd.f32 1e-05, %v1707_v3 }
 0x33d   :  { %6424 = vrsqrt.f32 %v1709_v47 }
 0x347   :  { %v6425_v15 = vpop.eup %6424 }
 0x348   :  { %v1718_v59 = vrot.slane %v6425_v15, %v7546_v50 }
 0x34a   :  { %v1719_v2 = vcombine.high %v1718_v59, %v1718_v59 }
 0x34c   :  { %v1726_v34 = vrot.slane %v1719_v2, %v7546_v50 }
 0x34e   :  { %v1728_v62 = vmul.f32 %v1726_v34, %v1708_v56 }
 0x350   :  { %v1730_v11 = vmul.f32 %v1728_v62, %v1702_v29 }
 0x352   :  { %v1731_v18 = vsub.f32 %v1729_v20, %v1730_v11 }
 0x354   :  { %v1736_v42 = vrot.slane %v1731_v18, %v7550_v8 }
 0x356   :  { %v1738_v48 = vsel %vm1509_vm3, %v1728_v62, %v1736_v42 }
 0x357   :  { %5187 = vmatmul.mubr.msk.f32.vlgmr.msra.gmra.mrb[44].mxu1 %vm1745_vm7, %v1738_v48  ;;  %5718 = vmatmul.mubr.msk.f32.vlgmr.msra.gmra.mrb[60].mxu0 %vm1745_vm7, %v1738_v48 }
 0x358   :  { %2061 = vmatprep.mubr.bf16.mxu1 %v6726_v0  ;;  %5728 = vmatprep.mubr.msk.bf16.mxu0 %vm2022_vm8, %v7555_v58 }
 0x42a   :  { %v1825_v4 = vpop.f32.mrb[44].mxu1  ;;  %v1896_v27 = vpop.f32.mrb[60].mxu0 }
 0x42b   :  { %v7562_v5 = vrot.slane %v1825_v4, %v7550_v8  ;;  %v7565_v63 = vrot.slane %v1896_v27, %v7550_v8  ;;  %v1827_v12 = vpop.f32.mrb[45].mxu1  ;;  %v5719_v49 = vpop.f32.mrb[61].mxu0  ;;  %v7568_v44 = vrot.slane %v1825_v4, %v7559_v54  ;;  %v7571_v30 = vrot.slane %v1896_v27, %v7559_v54 }
 0x42c   :  { %v7574_v24 = vrot.slane %v1827_v12, %v7550_v8  ;;  %v7577_v55 = vrot.slane %v1827_v12, %v7559_v54 }
 0x42d   :  { %v1914_v31 = vmul.f32 %v7565_v63, %v7423_v53  ;;  %v1917_v43 = vmul.f32 %v7565_v63, %v7430_v51  ;;  %v1912_v29 = vmul.f32 %v7562_v5, %v7248_v46  ;;  %v1915_v22 = vmul.f32 %v7562_v5, %v7261_v19 }
 0x42e   :  { %v1913_v37 = vmul.f32 %v7574_v24, %v7255_v52  ;;  %v1916_v3 = vmul.f32 %v7574_v24, %v7272_v33  ;;  %v1920_v47 = vmul.f32 %v7565_v63, %v7434_v14  ;;  %v1923_v53 = vmul.f32 %v7565_v63, %v7438_v38 }
 0x42f   :  { %v1950_v51 = vadd.f32 %v7571_v30, %v1914_v31  ;;  %v1953_v40 = vadd.f32 %v7571_v30, %v1917_v43  ;;  %v1948_v46 = vadd.f32 %v7568_v44, %v1912_v29  ;;  %v1951_v19 = vadd.f32 %v7568_v44, %v1915_v22 }
 0x430   :  { %v1949_v36 = vadd.f32 %v7577_v55, %v1913_v37  ;;  %v1952_v52 = vadd.f32 %v7577_v55, %v1916_v3  ;;  %v1956_v33 = vadd.f32 %v7571_v30, %v1920_v47  ;;  %v1959_v35 = vadd.f32 %v7571_v30, %v1923_v53 }
 0x431   :  { %v1974_v14 = vmax.f32 %v1950_v51, 0.0  ;;  %v1977_v41 = vmax.f32 %v1953_v40, 0.0  ;;  %v1972_v16 = vmax.f32 %v1948_v46, 0.0  ;;  %v1975_v38 = vmax.f32 %v1951_v19, 0.0 }
 0x432   :  { %v1973_v15 = vmax.f32 %v1949_v36, 0.0  ;;  %v1976_v59 = vmax.f32 %v1952_v52, 0.0  ;;  %v1980_v2 = vmax.f32 %v1956_v33, 0.0  ;;  %v1983_v56 = vmax.f32 %v1959_v35, 0.0 }
 0x433   :  { %v7603_v34 = vpack.c.bf16 %v1977_v41, %v1974_v14  ;;  %v7605_v62 = vpack.c.bf16 %v1975_v38, %v1972_v16  ;;  %v1919_v20 = vmul.f32 %v7574_v24, %v7289_v57  ;;  %v1922_v11 = vmul.f32 %v7574_v24, %v7309_v10 }
 0x434   :  { %v7611_v18 = vpack.c.bf16 %v1976_v59, %v1973_v15  ;;  %v7613_v42 = vpack.c.bf16 %v1983_v56, %v1980_v2  ;;  %v1918_v48 = vmul.f32 %v7562_v5, %v7276_v26  ;;  %v1921_v4 = vmul.f32 %v7562_v5, %v7301_v23 }
 0x435   :  { %5720 = vmatprep.subr.bf16.mxu0 %v7603_v34  ;;  %v1955_v27 = vadd.f32 %v7577_v55, %v1919_v20  ;;  %v1958_v12 = vadd.f32 %v7577_v55, %v1922_v11  ;;  %v1926_v57 = vmul.f32 %v7565_v63, %v7481_v13  ;;  %v1929_v10 = vmul.f32 %v7565_v63, %v7487_v32 }
 0x436   :  { %2029 = vmatprep.subr.bf16.mxu1 %v7611_v18  ;;  %5721 = vmatpush3.bf16.msra.mxu0 %v7603_v34  ;;  %v1954_v26 = vadd.f32 %v7568_v44, %v1918_v48  ;;  %v1957_v23 = vadd.f32 %v7568_v44, %v1921_v4  ;;  %v1925_v49 = vmul.f32 %v7574_v24, %v7364_v61 }
 0x437   :  { %2030 = vmatpush1.bf16.msra.mxu1 %v7605_v62  ;;  %5722 = vmatprep.subr.bf16.mxu0 %v7613_v42  ;;  %v1979_v31 = vmax.f32 %v1955_v27, 0.0  ;;  %v1982_v13 = vmax.f32 %v1958_v12, 0.0  ;;  %v1962_v43 = vadd.f32 %v7571_v30, %v1926_v57  ;;  %v1965_v32 = vadd.f32 %v7571_v30, %v1929_v10  ;;  %v6081_v10 = vld [vmem:[#allocation9 + $0x10] ss:$8 sps:$4 sm:$0xff]  }
 0x438   :  { %v1978_v29 = vmax.f32 %v1954_v26, 0.0  ;;  %v1981_v22 = vmax.f32 %v1957_v23, 0.0  ;;  %v1928_v37 = vmul.f32 %v7574_v24, %v7383_v25  ;;  %v1961_v3 = vadd.f32 %v7577_v55, %v1925_v49  ;;  %v6089_v26 = vld [vmem:[#allocation9 + $0x24] ss:$8 sps:$4 sm:$0xff]   ;;  %v6078_v23 = vld [vmem:[#allocation7 + $0x10] ss:$8 sps:$4 sm:$0xff]  }
 0x439   :  { %v2000_v47 = vpack.c.bf16 %v1982_v13, %v1979_v31  ;;  %v1986_v53 = vmax.f32 %v1962_v43, 0.0  ;;  %v1989_v61 = vmax.f32 %v1965_v32, 0.0  ;;  %v1924_v51 = vmul.f32 %v7562_v5, %v7355_v45  ;;  %v6086_v49 = vld [vmem:[#allocation7 + $0x24] ss:$8 sps:$4 sm:$0xff]   ;;  %v6087_v31 = vld [vmem:[#allocation9 + $0x20] ss:$8 sps:$4 sm:$0xff]  }
 0x43a   :  { %5723 = vmatpush3.bf16.msra.mxu0 %v7613_v42  ;;  %v1999_v40 = vpack.c.bf16 %v1981_v22, %v1978_v29  ;;  %v1964_v46 = vadd.f32 %v7577_v55, %v1928_v37  ;;  %v1985_v19 = vmax.f32 %v1961_v3, 0.0  ;;  %v1927_v36 = vmul.f32 %v7562_v5, %v7370_v28  ;;  %v6095_v13 = vld [vmem:[#allocation9 + $0x34] ss:$8 sps:$4 sm:$0xff]   ;;  %v6084_v43 = vld [vmem:[#allocation7 + $0x20] ss:$8 sps:$4 sm:$0xff]  }
 0x43b   :  { %2031 = vmatprep.subr.bf16.mxu1 %v2000_v47  ;;  %v2004_v52 = vpack.c.bf16 %v1989_v61, %v1986_v53  ;;  %v1960_v25 = vadd.f32 %v7568_v44, %v1924_v51  ;;  %v1932_v33 = vmul.f32 %v7565_v63, %v7511_v60  ;;  %v1935_v35 = vmul.f32 %v7565_v63, %v7514_v21  ;;  %v6092_v32 = vld [vmem:[#allocation7 + $0x34] ss:$8 sps:$4 sm:$0xff]   ;;  %v6093_v29 = vld [vmem:[#allocation9 + $0x30] ss:$8 sps:$4 sm:$0xff]   ;;  %v6101_v22 = vld [vmem:[#allocation9 + $0x44] ss:$8 sps:$4 sm:$0xff]  }
 0x43c   :  { %2032 = vmatpush1.bf16.msra.mxu1 %v1999_v40  ;;  %v1988_v45 = vmax.f32 %v1964_v46, 0.0  ;;  %v1963_v14 = vadd.f32 %v7568_v44, %v1927_v36  ;;  %v1931_v41 = vmul.f32 %v7574_v24, %v7413_v39  ;;  %v1934_v28 = vmul.f32 %v7574_v24, %v7417_v9  ;;  %v6090_v37 = vld [vmem:[#allocation7 + $0x30] ss:$8 sps:$4 sm:$0xff]   ;;  %v6098_v3 = vld [vmem:[#allocation7 + $0x44] ss:$8 sps:$4 sm:$0xff]  }
 0x43d   :  { %5724 = vmatprep.subr.bf16.mxu0 %v2004_v52  ;;  %v1984_v16 = vmax.f32 %v1960_v25, 0.0  ;;  %v1968_v38 = vadd.f32 %v7571_v30, %v1932_v33  ;;  %v1971_v15 = vadd.f32 %v7571_v30, %v1935_v35  ;;  %v1930_v60 = vmul.f32 %v7562_v5, %v7395_v17  ;;  %v6107_v53 = vld [vmem:[#allocation9 + $0x54] ss:$8 sps:$4 sm:$0xff]   ;;  %v6096_v61 = vld [vmem:[#allocation7 + $0x40] ss:$8 sps:$4 sm:$0xff]  }
 0x43e   :  { %v2003_v21 = vpack.c.bf16 %v1988_v45, %v1985_v19  ;;  %5725 = vmatpush3.bf16.msra.mxu0 %v2004_v52  ;;  %v1987_v63 = vmax.f32 %v1963_v14, 0.0  ;;  %v1967_v59 = vadd.f32 %v7577_v55, %v1931_v41  ;;  %v1970_v2 = vadd.f32 %v7577_v55, %v1934_v28  ;;  %v6069_v55 = vld [vmem:[#allocation4 + $0x8] sm:$0xff]   ;;  %v6104_v51 = vld [vmem:[#allocation7 + $0x54] ss:$8 sps:$4 sm:$0xff]   ;;  %v6102_v19 = vld [vmem:[#allocation7 + $0x50] ss:$8 sps:$4 sm:$0xff]  }
 0x43f   :  { %v1992_v39 = vmax.f32 %v1968_v38, 0.0  ;;  %v1995_v56 = vmax.f32 %v1971_v15, 0.0  ;;  %v1933_v9 = vmul.f32 %v7562_v5, %v7398_v6  ;;  %v1966_v24 = vadd.f32 %v7568_v44, %v1930_v60  ;;  %v6070_v6 = vld [vmem:[#allocation6] sm:$0xff]   ;;  %v6077_v5 = vld [vmem:[#allocation9 + $0x4] ss:$8 sps:$4 sm:$0xff]  }
 0x440   :  { %2033 = vmatprep.subr.bf16.mxu1 %v2003_v21  ;;  %v2002_v20 = vpack.c.bf16 %v1987_v63, %v1984_v16  ;;  %v1991_v30 = vmax.f32 %v1967_v59, 0.0  ;;  %v1994_v11 = vmax.f32 %v1970_v2, 0.0  ;;  %v6113_v46 = vld [vmem:[#allocation9 + $0x64] ss:$8 sps:$4 sm:$0xff]   ;;  %v6119_v25 = vld [vmem:[#allocation9 + $0x74] ss:$8 sps:$4 sm:$0xff]  }
 0x441   :  { %v2007_v48 = vpack.c.bf16 %v1995_v56, %v1992_v39  ;;  %v1969_v17 = vadd.f32 %v7568_v44, %v1933_v9  ;;  %v1990_v4 = vmax.f32 %v1966_v24, 0.0  ;;  %v6075_v44 = vld [vmem:[#allocation9] ss:$8 sps:$4 sm:$0xff]   ;;  %v6110_v36 = vld [vmem:[#allocation7 + $0x64] ss:$8 sps:$4 sm:$0xff]  }
 0x442   :  { %2034 = vmatpush1.bf16.msra.mxu1 %v2002_v20  ;;  %v2006_v27 = vpack.c.bf16 %v1994_v11, %v1991_v30  ;;  %v6108_v33 = vld [vmem:[#allocation7 + $0x60] ss:$8 sps:$4 sm:$0xff]   ;;  %v6116_v35 = vld [vmem:[#allocation7 + $0x74] ss:$8 sps:$4 sm:$0xff]   ;;  %v6117_v45 = vld [vmem:[#allocation9 + $0x70] ss:$8 sps:$4 sm:$0xff]  }
 0x443   :  { %5726 = vmatprep.subr.bf16.mxu0 %v2007_v48  ;;  %v1993_v12 = vmax.f32 %v1969_v17, 0.0  ;;  %v6125_v14 = vld [vmem:[#allocation9 + $0x84] ss:$8 sps:$4 sm:$0xff]   ;;  %v6114_v41 = vld [vmem:[#allocation7 + $0x70] ss:$8 sps:$4 sm:$0xff]  }
 0x444   :  { %2035 = vmatprep.subr.bf16.mxu1 %v2006_v27  ;;  %5727 = vmatpush3.bf16.msra.mxu0 %v2007_v48  ;;  %v6122_v28 = vld [vmem:[#allocation7 + $0x84] ss:$8 sps:$4 sm:$0xff]   ;;  %v6123_v16 = vld [vmem:[#allocation9 + $0x80] ss:$8 sps:$4 sm:$0xff]   ;;  %v6131_v38 = vld [vmem:[#allocation9 + $0x94] ss:$8 sps:$4 sm:$0xff]  }
 0x445   :  { %v2005_v57 = vpack.c.bf16 %v1993_v12, %v1990_v4  ;;  %5732 = vmatprep.subr.bf16.mxu0 %v7603_v34  ;;  %v6120_v15 = vld [vmem:[#allocation7 + $0x80] ss:$8 sps:$4 sm:$0xff]   ;;  %v6128_v60 = vld [vmem:[#allocation7 + $0x94] ss:$8 sps:$4 sm:$0xff]   ;;  %v6126_v63 = vld [vmem:[#allocation7 + $0x90] ss:$8 sps:$4 sm:$0xff]  }
 0x446   :  { %v6132_v59 = vld [vmem:[#allocation7 + $0xa0] ss:$8 sps:$4 sm:$0xff]   ;;  %v6134_v2 = vld [vmem:[#allocation7 + $0xa4] ss:$8 sps:$4 sm:$0xff]   ;;  %v6138_v9 = vld [vmem:[#allocation7 + $0xb0] ss:$8 sps:$4 sm:$0xff]  }
 0x447   :  { %2036 = vmatpush1.bf16.msra.mxu1 %v2005_v57  ;;  %5729 = vmatmul.mubr.msk.bf16.vlgmr.msra.gmra.mrb[64].mxu0 %vm2022_vm8, %v6069_v55  ;;  %v6135_v39 = vld [vmem:[#allocation9 + $0xa0] ss:$8 sps:$4 sm:$0xff]   ;;  %v6137_v56 = vld [vmem:[#allocation9 + $0xa4] ss:$8 sps:$4 sm:$0xff]   ;;  %v6140_v24 = vld [vmem:[#allocation7 + $0xb4] ss:$8 sps:$4 sm:$0xff]  }
 0x448   :  { %2151 = vmatprep.subr.bf16.mxu1 %v7611_v18  ;;  %5733 = vmatpush3.bf16.msra.mxu0 %v7603_v34  ;;  %v6071_v34 = vld [vmem:[#allocation6 + $0x8] sm:$0xff]   ;;  %v6072_v18 = vld [vmem:[#allocation7] ss:$8 sps:$4 sm:$0xff]   ;;  %v6149_v4 = vld [vmem:[#allocation9 + $0xc4] ss:$8 sps:$4 sm:$0xff]  }
 0x449   :  { %5734 = vmatprep.subr.bf16.mxu0 %v7613_v42  ;;  %5740 = vmatprep.mubr.msk.bf16.mxu0 %vm2022_vm8, %v6070_v6  ;;  %v6143_v30 = vld [vmem:[#allocation9 + $0xb4] ss:$8 sps:$4 sm:$0xff]   ;;  %v6144_v11 = vld [vmem:[#allocation7 + $0xc0] ss:$8 sps:$4 sm:$0xff]  }
 0x44a   :  { %5192 = vmatmul.mubr.msk.bf16.vlgmr.msra.gmra.mrb[48].mxu1 %vm2022_vm8, %v7555_v58  ;;  %v6074_v58 = vld [vmem:[#allocation7 + $0x4] ss:$8 sps:$4 sm:$0xff]   ;;  %v6147_v17 = vld [vmem:[#allocation9 + $0xc0] ss:$8 sps:$4 sm:$0xff]   ;;  %v6152_v12 = vld [vmem:[#allocation7 + $0xd4] ss:$8 sps:$4 sm:$0xff]  }
 0x44b   :  { %2152 = vmatpush1.bf16.msra.mxu1 %v7605_v62  ;;  %2071 = vmatprep.mubr.bf16.mxu1 %v6726_v0  ;;  %v6083_v62 = vld [vmem:[#allocation9 + $0x14] ss:$8 sps:$4 sm:$0xff]  }
 0x44c   :  { %2153 = vmatprep.subr.bf16.mxu1 %v2000_v47  ;;  %5735 = vmatpush3.bf16.msra.mxu0 %v7613_v42  ;;  %v6080_v42 = vld [vmem:[#allocation7 + $0x14] ss:$8 sps:$4 sm:$0xff]   ;;  %v6099_v47 = vld [vmem:[#allocation9 + $0x40] ss:$8 sps:$4 sm:$0xff]  }
 0x44d   :  { %5736 = vmatprep.subr.bf16.mxu0 %v2004_v52 }
 0x44f   :  { %2154 = vmatpush1.bf16.msra.mxu1 %v1999_v40  ;;  %v6105_v40 = vld [vmem:[#allocation9 + $0x50] ss:$8 sps:$4 sm:$0xff]  }
 0x450   :  { %2155 = vmatprep.subr.bf16.mxu1 %v2003_v21  ;;  %5737 = vmatpush3.bf16.msra.mxu0 %v2004_v52  ;;  %v6111_v52 = vld [vmem:[#allocation9 + $0x60] ss:$8 sps:$4 sm:$0xff]   ;;  %v6129_v21 = vld [vmem:[#allocation9 + $0x90] ss:$8 sps:$4 sm:$0xff]  }
 0x451   :  { %5738 = vmatprep.subr.bf16.mxu0 %v2007_v48 }
 0x452   :  { %5193 = vmatmul.mubr.msk.bf16.gmra.mrb[52].mxu1 %vm2022_vm8, %v6069_v55  ;;  %v6153_v55 = vld [vmem:[#allocation9 + $0xd0] ss:$8 sps:$4 sm:$0xff]  }
 0x453   :  { %2156 = vmatpush1.bf16.msra.mxu1 %v2002_v20  ;;  %2183 = vmatprep.mubr.bf16.mxu1 %v6726_v0  ;;  %v6141_v20 = vld [vmem:[#allocation9 + $0xb0] ss:$8 sps:$4 sm:$0xff]  }
 0x454   :  { %2157 = vmatprep.subr.bf16.mxu1 %v2006_v27  ;;  %5739 = vmatpush3.bf16.msra.mxu0 %v2007_v48  ;;  %v6146_v48 = vld [vmem:[#allocation7 + $0xc4] ss:$8 sps:$4 sm:$0xff]   ;;  %v6150_v27 = vld [vmem:[#allocation7 + $0xd0] ss:$8 sps:$4 sm:$0xff]  }
 0x455   :  { %2953 = vmatprep.subr.bf16.mxu0 %v6077_v5  ;;  %v6158_v5 = vld [vmem:[#allocation7 + $0xe4] ss:$8 sps:$4 sm:$0xff]  }
 0x457   :  { %2158 = vmatpush1.bf16.msra.mxu1 %v2005_v57  ;;  %5741 = vmatmul.mubr.msk.bf16.vlgmr.msra.gmra.mrb[68].mxu0 %vm2022_vm8, %v6071_v34  ;;  %v6155_v57 = vld [vmem:[#allocation9 + $0xd4] ss:$8 sps:$4 sm:$0xff]  }
 0x458   :  { %2559 = vmatprep.subr.bf16.mxu1 %v6074_v58  ;;  %2954 = vmatpush1.bf16.msra.mxu0 %v6075_v44  ;;  %v6159_v58 = vld [vmem:[#allocation9 + $0xe0] ss:$8 sps:$4 sm:$0xff]   ;;  %v6161_v44 = vld [vmem:[#allocation9 + $0xe4] ss:$8 sps:$4 sm:$0xff]  }
 0x459   :  { %2955 = vmatprep.subr.bf16.mxu0 %v6083_v62  ;;  %v6164_v62 = vld [vmem:[#allocation7 + $0xf4] ss:$8 sps:$4 sm:$0xff]  }
 0x45a   :  { %5198 = vmatmul.mubr.msk.bf16.vlgmr.msra.gmra.mrb[56].mxu1 %vm2022_vm8, %v6070_v6  ;;  %v6156_v6 = vld [vmem:[#allocation7 + $0xe0] ss:$8 sps:$4 sm:$0xff]  }
 0x45b   :  { %2193 = vmatprep.mubr.bf16.mxu1 %v6726_v0  ;;  %2560 = vmatpush1.bf16.msra.mxu1 %v6072_v18  ;;  %v6165_v18 = vld [vmem:[#allocation9 + $0xf0] ss:$8 sps:$4 sm:$0xff]  }
 0x45c   :  { %2561 = vmatprep.subr.bf16.mxu1 %v6080_v42  ;;  %2956 = vmatpush1.bf16.msra.mxu0 %v6081_v10  ;;  %v6167_v42 = vld [vmem:[#allocation9 + $0xf4] ss:$8 sps:$4 sm:$0xff]   ;;  %v6170_v10 = vld [vmem:[#allocation7 + $0x104] ss:$8 sps:$4 sm:$0xff]  }
 0x45d   :  { %2957 = vmatprep.subr.bf16.mxu0 %v6089_v26  ;;  %v6173_v26 = vld [vmem:[#allocation9 + $0x104] ss:$8 sps:$4 sm:$0xff]  }
 0x45f   :  { %2562 = vmatpush1.bf16.msra.mxu1 %v6078_v23 }
 0x460   :  { %2563 = vmatprep.subr.bf16.mxu1 %v6086_v49  ;;  %2958 = vmatpush1.bf16.msra.mxu0 %v6087_v31 }
 0x461   :  { %2959 = vmatprep.subr.bf16.mxu0 %v6095_v13 }
 0x462   :  { %5199 = vmatmul.mubr.msk.bf16.gmra.mrb[60].mxu1 %vm2022_vm8, %v6071_v34  ;;  %v6162_v34 = vld [vmem:[#allocation7 + $0xf0] ss:$8 sps:$4 sm:$0xff]  }
 0x463   :  { %2564 = vmatpush1.bf16.msra.mxu1 %v6084_v43 }
 0x464   :  { %2565 = vmatprep.subr.bf16.mxu1 %v6092_v32  ;;  %2960 = vmatpush1.bf16.msra.mxu0 %v6093_v29 }
 0x465   :  { %2961 = vmatprep.subr.bf16.mxu0 %v6101_v22 }
 0x467   :  { %2566 = vmatpush1.bf16.msra.mxu1 %v6090_v37 }
 0x468   :  { %2567 = vmatprep.subr.bf16.mxu1 %v6098_v3  ;;  %2962 = vmatpush1.bf16.msra.mxu0 %v6099_v47 }
 0x469   :  { %2963 = vmatprep.subr.bf16.mxu0 %v6107_v53 }
 0x46b   :  { %2568 = vmatpush1.bf16.msra.mxu1 %v6096_v61 }
 0x46c   :  { %2569 = vmatprep.subr.bf16.mxu1 %v6104_v51  ;;  %2964 = vmatpush1.bf16.msra.mxu0 %v6105_v40 }
 0x46d   :  { %2965 = vmatprep.subr.bf16.mxu0 %v6113_v46 }
 0x46f   :  { %2570 = vmatpush1.bf16.msra.mxu1 %v6102_v19 }
 0x470   :  { %2571 = vmatprep.subr.bf16.mxu1 %v6110_v36  ;;  %2966 = vmatpush1.bf16.msra.mxu0 %v6111_v52 }
 0x471   :  { %2967 = vmatprep.subr.bf16.mxu0 %v6119_v25 }
 0x473   :  { %2572 = vmatpush1.bf16.msra.mxu1 %v6108_v33 }
 0x474   :  { %2573 = vmatprep.subr.bf16.mxu1 %v6116_v35  ;;  %2968 = vmatpush1.bf16.msra.mxu0 %v6117_v45 }
 0x475   :  { %2969 = vmatprep.subr.bf16.mxu0 %v6125_v14 }
 0x477   :  { %2574 = vmatpush1.bf16.msra.mxu1 %v6114_v41 }
 0x478   :  { %2575 = vmatprep.subr.bf16.mxu1 %v6122_v28  ;;  %2970 = vmatpush1.bf16.msra.mxu0 %v6123_v16 }
 0x479   :  { %2971 = vmatprep.subr.bf16.mxu0 %v6131_v38 }
 0x47b   :  { %2576 = vmatpush1.bf16.msra.mxu1 %v6120_v15 }
 0x47c   :  { %2577 = vmatprep.subr.bf16.mxu1 %v6128_v60  ;;  %2972 = vmatpush1.bf16.msra.mxu0 %v6129_v21 }
 0x47d   :  { %2973 = vmatprep.subr.bf16.mxu0 %v6137_v56  ;;  %v6179_v56 = vld [vmem:[#allocation9 + $0x114] ss:$8 sps:$4 sm:$0xff]  }
 0x47f   :  { %2578 = vmatpush1.bf16.msra.mxu1 %v6126_v63 }
 0x480   :  { %2579 = vmatprep.subr.bf16.mxu1 %v6134_v2  ;;  %2974 = vmatpush1.bf16.msra.mxu0 %v6135_v39  ;;  %v6171_v2 = vld [vmem:[#allocation9 + $0x100] ss:$8 sps:$4 sm:$0xff]   ;;  %v6176_v39 = vld [vmem:[#allocation7 + $0x114] ss:$8 sps:$4 sm:$0xff]  }
 0x481   :  { %2975 = vmatprep.subr.bf16.mxu0 %v6143_v30 }
 0x483   :  { %2580 = vmatpush1.bf16.msra.mxu1 %v6132_v59  ;;  %v6168_v59 = vld [vmem:[#allocation7 + $0x100] ss:$8 sps:$4 sm:$0xff]  }
 0x484   :  { %2581 = vmatprep.subr.bf16.mxu1 %v6140_v24  ;;  %2976 = vmatpush1.bf16.msra.mxu0 %v6141_v20 }
 0x485   :  { %2977 = vmatprep.subr.bf16.mxu0 %v6149_v4 }
 0x487   :  { %2582 = vmatpush1.bf16.msra.mxu1 %v6138_v9 }
 0x488   :  { %2583 = vmatprep.subr.bf16.mxu1 %v6146_v48  ;;  %2978 = vmatpush1.bf16.msra.mxu0 %v6147_v17  ;;  %v6174_v48 = vld [vmem:[#allocation7 + $0x110] ss:$8 sps:$4 sm:$0xff]  }
 0x489   :  { %2979 = vmatprep.subr.bf16.mxu0 %v6155_v57  ;;  %v6177_v17 = vld [vmem:[#allocation9 + $0x110] ss:$8 sps:$4 sm:$0xff]  }
 0x48b   :  { %2584 = vmatpush1.bf16.msra.mxu1 %v6144_v11 }
 0x48c   :  { %2585 = vmatprep.subr.bf16.mxu1 %v6152_v12  ;;  %2980 = vmatpush1.bf16.msra.mxu0 %v6153_v55  ;;  %v6182_v12 = vld [vmem:[#allocation7 + $0x124] ss:$8 sps:$4 sm:$0xff]  }
 0x48d   :  { %2981 = vmatprep.subr.bf16.mxu0 %v6161_v44  ;;  %v6185_v55 = vld [vmem:[#allocation9 + $0x124] ss:$8 sps:$4 sm:$0xff]   ;;  %v6183_v44 = vld [vmem:[#allocation9 + $0x120] ss:$8 sps:$4 sm:$0xff]  }
 0x48f   :  { %2586 = vmatpush1.bf16.msra.mxu1 %v6150_v27 }
 0x490   :  { %2587 = vmatprep.subr.bf16.mxu1 %v6158_v5  ;;  %2982 = vmatpush1.bf16.msra.mxu0 %v6159_v58  ;;  %v6180_v58 = vld [vmem:[#allocation7 + $0x120] ss:$8 sps:$4 sm:$0xff]  }
 0x491   :  { %2983 = vmatprep.subr.bf16.mxu0 %v6167_v42  ;;  %v6189_v42 = vld [vmem:[#allocation9 + $0x130] ss:$8 sps:$4 sm:$0xff]  }
 0x493   :  { %2588 = vmatpush1.bf16.msra.mxu1 %v6156_v6 }
 0x494   :  { %2589 = vmatprep.subr.bf16.mxu1 %v6164_v62  ;;  %2984 = vmatpush1.bf16.msra.mxu0 %v6165_v18  ;;  %v6191_v62 = vld [vmem:[#allocation9 + $0x134] ss:$8 sps:$4 sm:$0xff]   ;;  %v6186_v18 = vld [vmem:[#allocation7 + $0x130] ss:$8 sps:$4 sm:$0xff]  }
 0x495   :  { %3006 = vmatprep.subr.bf16.mxu0 %v6173_v26  ;;  %v6197_v26 = vld [vmem:[#allocation9 + $0x144] ss:$8 sps:$4 sm:$0xff]  }
 0x497   :  { %2590 = vmatpush1.bf16.msra.mxu1 %v6162_v34  ;;  %v6188_v34 = vld [vmem:[#allocation7 + $0x134] ss:$8 sps:$4 sm:$0xff]  }
 0x498   :  { %2612 = vmatprep.subr.bf16.mxu1 %v6170_v10  ;;  %v6194_v10 = vld [vmem:[#allocation7 + $0x144] ss:$8 sps:$4 sm:$0xff]  }
 0x51a   :  { %v5730_v23 = vpop.f32.mrb[64].mxu0 }
 0x51b   :  { %v2116_v49 = vpop.f32.mrb[65].mxu0 }
 0x51c   :  { %v5731_v31 = vpop.f32.mrb[66].mxu0 }
 0x51d   :  { %v2063_v13 = vpop.f32.mrb[48].mxu1  ;;  %v2119_v43 = vpop.f32.mrb[67].mxu0 }
 0x51e   :  { %v2065_v32 = vpop.f32.mrb[49].mxu1 }
 0x51f   :  { %v2067_v29 = vpop.f32.mrb[50].mxu1 }
 0x520   :  { %v2069_v22 = vpop.f32.mrb[51].mxu1 }
 0x525   :  { %v2073_v37 = vpop.f32.mrb[52].mxu1 }
 0x526   :  { %v2075_v3 = vpop.f32.mrb[53].mxu1 }
 0x527   :  { %v2077_v47 = vpop.f32.mrb[54].mxu1 }
 0x528   :  { %v2079_v53 = vpop.f32.mrb[55].mxu1 }
 0x52a   :  { %v5742_v61 = vpop.f32.mrb[68].mxu0 }
 0x52b   :  { %v2261_v51 = vmax.f32 %v5730_v23, %v5742_v61  ;;  %v2238_v40 = vpop.f32.mrb[69].mxu0  ;;  %v6192_v23 = vld [vmem:[#allocation7 + $0x140] ss:$8 sps:$4 sm:$0xff]   ;;  %v6210_v61 = vld [vmem:[#allocation7 + $0x170] ss:$8 sps:$4 sm:$0xff]  }
 0x52c   :  { %v2255_v46 = vmax.f32 %v2116_v49, %v2238_v40  ;;  %v5743_v19 = vpop.f32.mrb[70].mxu0  ;;  %v6195_v49 = vld [vmem:[#allocation9 + $0x140] ss:$8 sps:$4 sm:$0xff]   ;;  %v6218_v40 = vld [vmem:[#allocation15 + $0x4] ss:$36 sps:$4 sm:$0xff]  }
 0x52d   :  { %v2185_v36 = vpop.f32.mrb[56].mxu1  ;;  %v2264_v52 = vmax.f32 %v5731_v31, %v5743_v19  ;;  %v2241_v25 = vpop.f32.mrb[71].mxu0  ;;  %v6200_v31 = vld [vmem:[#allocation7 + $0x154] ss:$8 sps:$4 sm:$0xff]  }
 0x52e   :  { %v2253_v33 = vmax.f32 %v2063_v13, %v2185_v36  ;;  %v2187_v35 = vpop.f32.mrb[57].mxu1  ;;  %v2258_v45 = vmax.f32 %v2119_v43, %v2241_v25  ;;  %v6203_v13 = vld [vmem:[#allocation9 + $0x154] ss:$8 sps:$4 sm:$0xff]   ;;  %v6198_v43 = vld [vmem:[#allocation7 + $0x150] ss:$8 sps:$4 sm:$0xff]  }
 0x52f   :  { %v2254_v14 = vmax.f32 %v2065_v32, %v2187_v35  ;;  %v2189_v41 = vpop.f32.mrb[58].mxu1  ;;  %v7682_v28 = vpack.c.bf16 %v2264_v52, %v2261_v51  ;;  %v6201_v32 = vld [vmem:[#allocation9 + $0x150] ss:$8 sps:$4 sm:$0xff]   ;;  %v6219_v36 = vld [vmem:[#allocation15 + $0x8] ss:$36 sps:$4 sm:$0xff]  }
 0x530   :  { %v2256_v16 = vmax.f32 %v2067_v29, %v2189_v41  ;;  %v2191_v38 = vpop.f32.mrb[59].mxu1  ;;  %v7684_v15 = vpack.c.bf16 %v2258_v45, %v2255_v46  ;;  %v6206_v29 = vld [vmem:[#allocation7 + $0x164] ss:$8 sps:$4 sm:$0xff]   ;;  %v6213_v51 = vld [vmem:[#allocation9 + $0x170] ss:$8 sps:$4 sm:$0xff]  }
 0x531   :  { %v2257_v60 = vmax.f32 %v2069_v22, %v2191_v38  ;;  %v6209_v22 = vld [vmem:[#allocation9 + $0x164] ss:$8 sps:$4 sm:$0xff]   ;;  %v6216_v19 = vld [vmem:[#allocation15] ss:$36 sps:$4 sm:$0xff]  }
 0x532   :  { %v2265_v21 = vpack.c.bf16 %v2256_v16, %v2253_v33  ;;  %v6221_v46 = vld [vmem:[#allocation15 + $0xc] ss:$36 sps:$4 sm:$0xff]   ;;  %v6227_v25 = vld [vmem:[#allocation15 + $0x54] ss:$36 sps:$4 sm:$0xff]   ;;  %v6236_v38 = vld [vmem:[#allocation15 + $0xdc] ss:$36 sps:$4 sm:$0xff]  }
 0x533   :  { %v2266_v63 = vpack.c.bf16 %v2257_v60, %v2254_v14  ;;  %v6224_v52 = vld [vmem:[#allocation15 + $0x4c] ss:$36 sps:$4 sm:$0xff]   ;;  %v6230_v45 = vld [vmem:[#allocation15 + $0x94] ss:$36 sps:$4 sm:$0xff]   ;;  %v6233_v14 = vld [vmem:[#allocation15 + $0x9c] ss:$36 sps:$4 sm:$0xff]  }
 0x534   :  { %v6222_v33 = vld [vmem:[#allocation15 + $0x48] ss:$36 sps:$4 sm:$0xff]   ;;  %v6225_v35 = vld [vmem:[#allocation15 + $0x50] ss:$36 sps:$4 sm:$0xff]   ;;  %v6231_v16 = vld [vmem:[#allocation15 + $0x98] ss:$36 sps:$4 sm:$0xff]  }
 0x535   :  { %v2195_v9 = vpop.f32.mrb[60].mxu1  ;;  %2591 = vmatprep.mubr.bf16.mxu1 %v2266_v63  ;;  %2985 = vmatprep.mubr.bf16.mxu0 %v2266_v63  ;;  %v6228_v41 = vld [vmem:[#allocation15 + $0x90] ss:$36 sps:$4 sm:$0xff]   ;;  %v6234_v60 = vld [vmem:[#allocation15 + $0xd8] ss:$36 sps:$4 sm:$0xff]  }
 0x536   :  { %v2259_v24 = vmax.f32 %v2073_v37, %v2195_v9  ;;  %v2197_v20 = vpop.f32.mrb[61].mxu1  ;;  %2592 = vmatmul.mubr.bf16.vlgmr.msra.gmra.mrb[64].mxu1 %v2265_v21  ;;  %2986 = vmatmul.mubr.bf16.vlgmr.msra.gmra.mrb[72].mxu0 %v2265_v21  ;;  %v6204_v37 = vld [vmem:[#allocation7 + $0x160] ss:$8 sps:$4 sm:$0xff]   ;;  %v6237_v21 = vld [vmem:[#allocation15 + $0xe0] ss:$36 sps:$4 sm:$0xff]  }
 0x537   :  { %v2260_v30 = vmax.f32 %v2075_v3, %v2197_v20  ;;  %2613 = vmatpush1.bf16.msra.mxu1 %v6168_v59  ;;  %3007 = vmatpush1.bf16.msra.mxu0 %v6171_v2  ;;  %v2199_v11 = vpop.f32.mrb[62].mxu1  ;;  %v6207_v3 = vld [vmem:[#allocation9 + $0x160] ss:$8 sps:$4 sm:$0xff]   ;;  %v6242_v63 = vld [vmem:[#allocation15 + $0x124] ss:$36 sps:$4 sm:$0xff]  }
 0x538   :  { %v2262_v4 = vmax.f32 %v2077_v47, %v2199_v11  ;;  %v2201_v27 = vpop.f32.mrb[63].mxu1  ;;  %2614 = vmatprep.subr.bf16.mxu1 %v6176_v39  ;;  %3008 = vmatprep.subr.bf16.mxu0 %v6179_v56  ;;  %v6212_v47 = vld [vmem:[#allocation7 + $0x174] ss:$8 sps:$4 sm:$0xff]   ;;  %v6245_v59 = vld [vmem:[#allocation15 + $0x12c] ss:$36 sps:$4 sm:$0xff]  }
 0x539   :  { %v2263_v57 = vmax.f32 %v2079_v53, %v2201_v27  ;;  %v6215_v53 = vld [vmem:[#allocation9 + $0x174] ss:$8 sps:$4 sm:$0xff]   ;;  %v6248_v56 = vld [vmem:[#allocation15 + $0x16c] ss:$36 sps:$4 sm:$0xff]   ;;  %v6254_v20 = vld [vmem:[#allocation15 + $0x1b4] ss:$36 sps:$4 sm:$0xff]  }
 0x53a   :  { %v2268_v6 = vpack.c.bf16 %v2262_v4, %v2259_v24  ;;  %v6240_v2 = vld [vmem:[#allocation15 + $0x120] ss:$36 sps:$4 sm:$0xff]   ;;  %v6243_v39 = vld [vmem:[#allocation15 + $0x128] ss:$36 sps:$4 sm:$0xff]   ;;  %v6249_v24 = vld [vmem:[#allocation15 + $0x170] ss:$36 sps:$4 sm:$0xff]  }
 0x53b   :  { %v2269_v5 = vpack.c.bf16 %v2263_v57, %v2260_v30  ;;  %2615 = vmatpush1.bf16.msra.mxu1 %v6174_v48  ;;  %3009 = vmatpush1.bf16.msra.mxu0 %v6177_v17  ;;  %v6246_v9 = vld [vmem:[#allocation15 + $0x168] ss:$36 sps:$4 sm:$0xff]   ;;  %v6257_v30 = vld [vmem:[#allocation15 + $0x1bc] ss:$36 sps:$4 sm:$0xff]   ;;  %v6252_v11 = vld [vmem:[#allocation15 + $0x1b0] ss:$36 sps:$4 sm:$0xff]  }
 0x53c   :  { %2616 = vmatprep.subr.bf16.mxu1 %v6182_v12  ;;  %3010 = vmatprep.subr.bf16.mxu0 %v6185_v55  ;;  %v6255_v48 = vld [vmem:[#allocation15 + $0x1b8] ss:$36 sps:$4 sm:$0xff]   ;;  %v6263_v4 = vld [vmem:[#allocation15 + $0x204] ss:$36 sps:$4 sm:$0xff]   ;;  %v6269_v57 = vld [vmem:[#allocation15 + $0x24c] ss:$36 sps:$4 sm:$0xff]  }
 0x53d   :  { %2601 = vmatprep.mubr.bf16.mxu1 %v2269_v5  ;;  %2995 = vmatprep.mubr.bf16.mxu0 %v2269_v5  ;;  %v6260_v17 = vld [vmem:[#allocation15 + $0x1fc] ss:$36 sps:$4 sm:$0xff]   ;;  %v6266_v55 = vld [vmem:[#allocation15 + $0x244] ss:$36 sps:$4 sm:$0xff]  }
 0x53e   :  { %2602 = vmatmul.mubr.bf16.gmra.mrb[68].mxu1 %v2268_v6  ;;  %2996 = vmatmul.mubr.bf16.gmra.mrb[76].mxu0 %v2268_v6  ;;  %v6258_v27 = vld [vmem:[#allocation15 + $0x1f8] ss:$36 sps:$4 sm:$0xff]   ;;  %v6261_v12 = vld [vmem:[#allocation15 + $0x200] ss:$36 sps:$4 sm:$0xff]   ;;  %v6267_v5 = vld [vmem:[#allocation15 + $0x248] ss:$36 sps:$4 sm:$0xff]  }
 0x53f   :  { %2617 = vmatpush1.bf16.msra.mxu1 %v6180_v58  ;;  %3011 = vmatpush1.bf16.msra.mxu0 %v6183_v44  ;;  %v6264_v6 = vld [vmem:[#allocation15 + $0x240] ss:$36 sps:$4 sm:$0xff]   ;;  %v6272_v58 = vld [vmem:[#allocation15 + $0x28c] ss:$36 sps:$4 sm:$0xff]   ;;  %v6275_v44 = vld [vmem:[#allocation15 + $0x294] ss:$36 sps:$4 sm:$0xff]  }
 0x540   :  { %2618 = vmatprep.subr.bf16.mxu1 %v6188_v34  ;;  %3012 = vmatprep.subr.bf16.mxu0 %v6191_v62  ;;  %v6270_v34 = vld [vmem:[#allocation15 + $0x288] ss:$36 sps:$4 sm:$0xff]   ;;  %v6273_v62 = vld [vmem:[#allocation15 + $0x290] ss:$36 sps:$4 sm:$0xff]  }
 0x541   :  { %2644 = vmatprep.mubr.bf16.mxu1 %v6726_v0  ;;  %3038 = vmatprep.mubr.bf16.mxu0 %v6726_v0 }
 0x543   :  { %2619 = vmatpush1.bf16.msra.mxu1 %v6186_v18  ;;  %3013 = vmatpush1.bf16.msra.mxu0 %v6189_v42  ;;  %v6278_v18 = vld [vmem:[#allocation15 + $0x2d4] ss:$36 sps:$4 sm:$0xff]   ;;  %v6281_v42 = vld [vmem:[#allocation15 + $0x2dc] ss:$36 sps:$4 sm:$0xff]  }
 0x544   :  { %2620 = vmatprep.subr.bf16.mxu1 %v6194_v10  ;;  %3014 = vmatprep.subr.bf16.mxu0 %v6197_v26  ;;  %v6276_v10 = vld [vmem:[#allocation15 + $0x2d0] ss:$36 sps:$4 sm:$0xff]   ;;  %v6279_v26 = vld [vmem:[#allocation15 + $0x2d8] ss:$36 sps:$4 sm:$0xff]  }
 0x547   :  { %2621 = vmatpush1.bf16.msra.mxu1 %v6192_v23  ;;  %3015 = vmatpush1.bf16.msra.mxu0 %v6195_v49  ;;  %v6284_v23 = vld [vmem:[#allocation15 + $0x31c] ss:$36 sps:$4 sm:$0xff]   ;;  %v6287_v49 = vld [vmem:[#allocation15 + $0x324] ss:$36 sps:$4 sm:$0xff]  }
 0x548   :  { %2622 = vmatprep.subr.bf16.mxu1 %v6200_v31  ;;  %3016 = vmatprep.subr.bf16.mxu0 %v6203_v13  ;;  %v6282_v31 = vld [vmem:[#allocation15 + $0x318] ss:$36 sps:$4 sm:$0xff]   ;;  %v6285_v13 = vld [vmem:[#allocation15 + $0x320] ss:$36 sps:$4 sm:$0xff]  }
 0x54b   :  { %2623 = vmatpush1.bf16.msra.mxu1 %v6198_v43  ;;  %3017 = vmatpush1.bf16.msra.mxu0 %v6201_v32  ;;  %v6290_v43 = vld [vmem:[#allocation15 + $0x364] ss:$36 sps:$4 sm:$0xff]   ;;  %v6293_v32 = vld [vmem:[#allocation15 + $0x36c] ss:$36 sps:$4 sm:$0xff]  }
 0x54c   :  { %2624 = vmatprep.subr.bf16.mxu1 %v6206_v29  ;;  %3018 = vmatprep.subr.bf16.mxu0 %v6209_v22  ;;  %v6288_v29 = vld [vmem:[#allocation15 + $0x360] ss:$36 sps:$4 sm:$0xff]   ;;  %v6291_v22 = vld [vmem:[#allocation15 + $0x368] ss:$36 sps:$4 sm:$0xff]  }
 0x54f   :  { %2625 = vmatpush1.bf16.msra.mxu1 %v6204_v37  ;;  %3019 = vmatpush1.bf16.msra.mxu0 %v6207_v3  ;;  %v6296_v37 = vld [vmem:[#allocation15 + $0x3ac] ss:$36 sps:$4 sm:$0xff]   ;;  %v6299_v3 = vld [vmem:[#allocation15 + $0x3b4] ss:$36 sps:$4 sm:$0xff]  }
 0x550   :  { %2626 = vmatprep.subr.bf16.mxu1 %v6212_v47  ;;  %3020 = vmatprep.subr.bf16.mxu0 %v6215_v53  ;;  %v6294_v47 = vld [vmem:[#allocation15 + $0x3a8] ss:$36 sps:$4 sm:$0xff]   ;;  %v6297_v53 = vld [vmem:[#allocation15 + $0x3b0] ss:$36 sps:$4 sm:$0xff]  }
 0x553   :  { %2627 = vmatpush1.bf16.msra.mxu1 %v6210_v61  ;;  %3021 = vmatpush1.bf16.msra.mxu0 %v6213_v51  ;;  %v6302_v61 = vld [vmem:[#allocation15 + $0x3f4] ss:$36 sps:$4 sm:$0xff]   ;;  %v6305_v51 = vld [vmem:[#allocation15 + $0x3fc] ss:$36 sps:$4 sm:$0xff]  }
 0x554   :  { %3967 = vmatprep.subr.bf16.mxu1 %v6218_v40  ;;  %4042 = vmatprep.subr.bf16.mxu0 %v6221_v46  ;;  %v6300_v40 = vld [vmem:[#allocation15 + $0x3f0] ss:$36 sps:$4 sm:$0xff]   ;;  %v6303_v46 = vld [vmem:[#allocation15 + $0x3f8] ss:$36 sps:$4 sm:$0xff]  }
 0x556   :  { %2645 = vmatmul.mubr.bf16.vlgmr.msra.gmra.mrb[64].mxu1 %v7684_v15  ;;  %3039 = vmatmul.mubr.bf16.vlgmr.msra.gmra.mrb[72].mxu0 %v7684_v15  ;;  %v6239_v15 = vld [vmem:[#allocation15 + $0xe4] ss:$36 sps:$4 sm:$0xff]  }
 0x557   :  { %2654 = vmatprep.mubr.bf16.mxu1 %v6726_v0  ;;  %3048 = vmatprep.mubr.bf16.mxu0 %v6726_v0 }
 0x558   :  { %3968 = vmatpush1.bf16.msra.mxu1 %v6216_v19  ;;  %4043 = vmatpush1.bf16.msra.mxu0 %v6219_v36  ;;  %v6308_v19 = vld [vmem:[#allocation15 + $0x43c] ss:$36 sps:$4 sm:$0xff]   ;;  %v6311_v36 = vld [vmem:[#allocation15 + $0x444] ss:$36 sps:$4 sm:$0xff]  }
 0x559   :  { %3969 = vmatprep.subr.bf16.mxu1 %v6224_v52  ;;  %4044 = vmatprep.subr.bf16.mxu0 %v6227_v25  ;;  %v6306_v52 = vld [vmem:[#allocation15 + $0x438] ss:$36 sps:$4 sm:$0xff]   ;;  %v6309_v25 = vld [vmem:[#allocation15 + $0x440] ss:$36 sps:$4 sm:$0xff]  }
 0x55c   :  { %3970 = vmatpush1.bf16.msra.mxu1 %v6222_v33  ;;  %4045 = vmatpush1.bf16.msra.mxu0 %v6225_v35  ;;  %v6314_v33 = vld [vmem:[#allocation15 + $0x14] ss:$36 sps:$4 sm:$0xff]   ;;  %v6317_v35 = vld [vmem:[#allocation15 + $0x1c] ss:$36 sps:$4 sm:$0xff]  }
 0x55d   :  { %3971 = vmatprep.subr.bf16.mxu1 %v6230_v45  ;;  %4046 = vmatprep.subr.bf16.mxu0 %v6233_v14  ;;  %v6312_v45 = vld [vmem:[#allocation15 + $0x10] ss:$36 sps:$4 sm:$0xff]   ;;  %v6315_v14 = vld [vmem:[#allocation15 + $0x18] ss:$36 sps:$4 sm:$0xff]  }
 0x55e   :  { %2655 = vmatmul.mubr.bf16.gmra.mrb[68].mxu1 %v7682_v28  ;;  %3049 = vmatmul.mubr.bf16.gmra.mrb[76].mxu0 %v7682_v28  ;;  %v6251_v28 = vld [vmem:[#allocation15 + $0x174] ss:$36 sps:$4 sm:$0xff]  }
 0x55f   :  { %3999 = vmatprep.mubr.bf16.mxu1 %v6726_v0  ;;  %4074 = vmatprep.mubr.bf16.mxu0 %v6726_v0 }
 0x560   :  { %3972 = vmatpush1.bf16.msra.mxu1 %v6228_v41  ;;  %4047 = vmatpush1.bf16.msra.mxu0 %v6231_v16  ;;  %v6320_v41 = vld [vmem:[#allocation15 + $0x5c] ss:$36 sps:$4 sm:$0xff]   ;;  %v6323_v16 = vld [vmem:[#allocation15 + $0x64] ss:$36 sps:$4 sm:$0xff]  }
 0x561   :  { %3973 = vmatprep.subr.bf16.mxu1 %v6236_v38  ;;  %4048 = vmatprep.subr.bf16.mxu0 %v6239_v15  ;;  %v6318_v38 = vld [vmem:[#allocation15 + $0x58] ss:$36 sps:$4 sm:$0xff]   ;;  %v6321_v15 = vld [vmem:[#allocation15 + $0x60] ss:$36 sps:$4 sm:$0xff]  }
 0x564   :  { %3974 = vmatpush1.bf16.msra.mxu1 %v6234_v60  ;;  %4049 = vmatpush1.bf16.msra.mxu0 %v6237_v21  ;;  %v6326_v60 = vld [vmem:[#allocation15 + $0xa4] ss:$36 sps:$4 sm:$0xff]   ;;  %v6329_v21 = vld [vmem:[#allocation15 + $0xac] ss:$36 sps:$4 sm:$0xff]  }
 0x565   :  { %3975 = vmatprep.subr.bf16.mxu1 %v6242_v63  ;;  %4050 = vmatprep.subr.bf16.mxu0 %v6245_v59  ;;  %v6324_v63 = vld [vmem:[#allocation15 + $0xa0] ss:$36 sps:$4 sm:$0xff]   ;;  %v6327_v59 = vld [vmem:[#allocation15 + $0xa8] ss:$36 sps:$4 sm:$0xff]  }
 0x568   :  { %3976 = vmatpush1.bf16.msra.mxu1 %v6240_v2  ;;  %4051 = vmatpush1.bf16.msra.mxu0 %v6243_v39  ;;  %v6332_v2 = vld [vmem:[#allocation15 + $0xec] ss:$36 sps:$4 sm:$0xff]   ;;  %v6335_v39 = vld [vmem:[#allocation15 + $0xf4] ss:$36 sps:$4 sm:$0xff]  }
 0x569   :  { %3977 = vmatprep.subr.bf16.mxu1 %v6248_v56  ;;  %4052 = vmatprep.subr.bf16.mxu0 %v6251_v28  ;;  %v6330_v56 = vld [vmem:[#allocation15 + $0xe8] ss:$36 sps:$4 sm:$0xff]   ;;  %v6333_v28 = vld [vmem:[#allocation15 + $0xf0] ss:$36 sps:$4 sm:$0xff]  }
 0x56c   :  { %3978 = vmatpush1.bf16.msra.mxu1 %v6246_v9  ;;  %4053 = vmatpush1.bf16.msra.mxu0 %v6249_v24  ;;  %v6338_v9 = vld [vmem:[#allocation15 + $0x134] ss:$36 sps:$4 sm:$0xff]   ;;  %v6341_v24 = vld [vmem:[#allocation15 + $0x13c] ss:$36 sps:$4 sm:$0xff]  }
 0x56d   :  { %3979 = vmatprep.subr.bf16.mxu1 %v6254_v20  ;;  %4054 = vmatprep.subr.bf16.mxu0 %v6257_v30  ;;  %v6336_v20 = vld [vmem:[#allocation15 + $0x130] ss:$36 sps:$4 sm:$0xff]   ;;  %v6339_v30 = vld [vmem:[#allocation15 + $0x138] ss:$36 sps:$4 sm:$0xff]  }
 0x570   :  { %3980 = vmatpush1.bf16.msra.mxu1 %v6252_v11  ;;  %4055 = vmatpush1.bf16.msra.mxu0 %v6255_v48  ;;  %v6344_v11 = vld [vmem:[#allocation15 + $0x17c] ss:$36 sps:$4 sm:$0xff]   ;;  %v6347_v48 = vld [vmem:[#allocation15 + $0x184] ss:$36 sps:$4 sm:$0xff]  }
 0x571   :  { %3981 = vmatprep.subr.bf16.mxu1 %v6260_v17  ;;  %4056 = vmatprep.subr.bf16.mxu0 %v6263_v4  ;;  %v6342_v17 = vld [vmem:[#allocation15 + $0x178] ss:$36 sps:$4 sm:$0xff]   ;;  %v6345_v4 = vld [vmem:[#allocation15 + $0x180] ss:$36 sps:$4 sm:$0xff]  }
 0x574   :  { %3982 = vmatpush1.bf16.msra.mxu1 %v6258_v27  ;;  %4057 = vmatpush1.bf16.msra.mxu0 %v6261_v12  ;;  %v6350_v27 = vld [vmem:[#allocation15 + $0x1c4] ss:$36 sps:$4 sm:$0xff]  }
 0x575   :  { %3983 = vmatprep.subr.bf16.mxu1 %v6266_v55  ;;  %4058 = vmatprep.subr.bf16.mxu0 %v6269_v57  ;;  %v6348_v12 = vld [vmem:[#allocation15 + $0x1c0] ss:$36 sps:$4 sm:$0xff]   ;;  %v6351_v55 = vld [vmem:[#allocation15 + $0x1c8] ss:$36 sps:$4 sm:$0xff]  }
 0x576   :  { %v6353_v57 = vld [vmem:[#allocation15 + $0x1cc] ss:$36 sps:$4 sm:$0xff]  }
 0x578   :  { %3984 = vmatpush1.bf16.msra.mxu1 %v6264_v6  ;;  %4059 = vmatpush1.bf16.msra.mxu0 %v6267_v5  ;;  %v6356_v6 = vld [vmem:[#allocation15 + $0x20c] ss:$36 sps:$4 sm:$0xff]  }
 0x579   :  { %3985 = vmatprep.subr.bf16.mxu1 %v6272_v58  ;;  %4060 = vmatprep.subr.bf16.mxu0 %v6275_v44  ;;  %v6354_v5 = vld [vmem:[#allocation15 + $0x208] ss:$36 sps:$4 sm:$0xff]   ;;  %v6357_v58 = vld [vmem:[#allocation15 + $0x210] ss:$36 sps:$4 sm:$0xff]  }
 0x57a   :  { %v6359_v44 = vld [vmem:[#allocation15 + $0x214] ss:$36 sps:$4 sm:$0xff]  }
 0x57c   :  { %3986 = vmatpush1.bf16.msra.mxu1 %v6270_v34  ;;  %4061 = vmatpush1.bf16.msra.mxu0 %v6273_v62  ;;  %v6362_v34 = vld [vmem:[#allocation15 + $0x254] ss:$36 sps:$4 sm:$0xff]  }
 0x57d   :  { %3987 = vmatprep.subr.bf16.mxu1 %v6278_v18  ;;  %4062 = vmatprep.subr.bf16.mxu0 %v6281_v42  ;;  %v6360_v62 = vld [vmem:[#allocation15 + $0x250] ss:$36 sps:$4 sm:$0xff]   ;;  %v6363_v18 = vld [vmem:[#allocation15 + $0x258] ss:$36 sps:$4 sm:$0xff]  }
 0x57e   :  { %v6365_v42 = vld [vmem:[#allocation15 + $0x25c] ss:$36 sps:$4 sm:$0xff]  }
 0x580   :  { %3988 = vmatpush1.bf16.msra.mxu1 %v6276_v10  ;;  %4063 = vmatpush1.bf16.msra.mxu0 %v6279_v26  ;;  %v6368_v10 = vld [vmem:[#allocation15 + $0x29c] ss:$36 sps:$4 sm:$0xff]  }
 0x581   :  { %3989 = vmatprep.subr.bf16.mxu1 %v6284_v23  ;;  %4064 = vmatprep.subr.bf16.mxu0 %v6287_v49  ;;  %v6366_v26 = vld [vmem:[#allocation15 + $0x298] ss:$36 sps:$4 sm:$0xff]   ;;  %v6369_v23 = vld [vmem:[#allocation15 + $0x2a0] ss:$36 sps:$4 sm:$0xff]  }
 0x582   :  { %v6371_v49 = vld [vmem:[#allocation15 + $0x2a4] ss:$36 sps:$4 sm:$0xff]  }
 0x584   :  { %3990 = vmatpush1.bf16.msra.mxu1 %v6282_v31  ;;  %4065 = vmatpush1.bf16.msra.mxu0 %v6285_v13  ;;  %v6374_v31 = vld [vmem:[#allocation15 + $0x2e4] ss:$36 sps:$4 sm:$0xff]   ;;  %v6377_v13 = vld [vmem:[#allocation15 + $0x2ec] ss:$36 sps:$4 sm:$0xff]  }
 0x585   :  { %3991 = vmatprep.subr.bf16.mxu1 %v6290_v43  ;;  %4066 = vmatprep.subr.bf16.mxu0 %v6293_v32  ;;  %v6372_v43 = vld [vmem:[#allocation15 + $0x2e0] ss:$36 sps:$4 sm:$0xff]   ;;  %v6375_v32 = vld [vmem:[#allocation15 + $0x2e8] ss:$36 sps:$4 sm:$0xff]  }
 0x588   :  { %3992 = vmatpush1.bf16.msra.mxu1 %v6288_v29  ;;  %4067 = vmatpush1.bf16.msra.mxu0 %v6291_v22  ;;  %v6380_v29 = vld [vmem:[#allocation15 + $0x32c] ss:$36 sps:$4 sm:$0xff]   ;;  %v6383_v22 = vld [vmem:[#allocation15 + $0x334] ss:$36 sps:$4 sm:$0xff]  }
 0x589   :  { %3993 = vmatprep.subr.bf16.mxu1 %v6296_v37  ;;  %4068 = vmatprep.subr.bf16.mxu0 %v6299_v3  ;;  %v6378_v37 = vld [vmem:[#allocation15 + $0x328] ss:$36 sps:$4 sm:$0xff]   ;;  %v6381_v3 = vld [vmem:[#allocation15 + $0x330] ss:$36 sps:$4 sm:$0xff]  }
 0x58c   :  { %3994 = vmatpush1.bf16.msra.mxu1 %v6294_v47  ;;  %4069 = vmatpush1.bf16.msra.mxu0 %v6297_v53  ;;  %v6386_v47 = vld [vmem:[#allocation15 + $0x374] ss:$36 sps:$4 sm:$0xff]   ;;  %v6389_v53 = vld [vmem:[#allocation15 + $0x37c] ss:$36 sps:$4 sm:$0xff]  }
 0x58d   :  { %3995 = vmatprep.subr.bf16.mxu1 %v6302_v61  ;;  %4070 = vmatprep.subr.bf16.mxu0 %v6305_v51  ;;  %v6384_v61 = vld [vmem:[#allocation15 + $0x370] ss:$36 sps:$4 sm:$0xff]   ;;  %v6387_v51 = vld [vmem:[#allocation15 + $0x378] ss:$36 sps:$4 sm:$0xff]  }
 0x590   :  { %3996 = vmatpush1.bf16.msra.mxu1 %v6300_v40  ;;  %4071 = vmatpush1.bf16.msra.mxu0 %v6303_v46  ;;  %v6392_v40 = vld [vmem:[#allocation15 + $0x3bc] ss:$36 sps:$4 sm:$0xff]   ;;  %v6395_v46 = vld [vmem:[#allocation15 + $0x3c4] ss:$36 sps:$4 sm:$0xff]  }
 0x591   :  { %3997 = vmatprep.subr.bf16.mxu1 %v6308_v19  ;;  %4072 = vmatprep.subr.bf16.mxu0 %v6311_v36  ;;  %v6390_v19 = vld [vmem:[#allocation15 + $0x3b8] ss:$36 sps:$4 sm:$0xff]   ;;  %v6393_v36 = vld [vmem:[#allocation15 + $0x3c0] ss:$36 sps:$4 sm:$0xff]  }
 0x594   :  { %3998 = vmatpush1.bf16.msra.mxu1 %v6306_v52  ;;  %4073 = vmatpush1.bf16.msra.mxu0 %v6309_v25  ;;  %v6398_v52 = vld [vmem:[#allocation15 + $0x404] ss:$36 sps:$4 sm:$0xff]   ;;  %v6401_v25 = vld [vmem:[#allocation15 + $0x40c] ss:$36 sps:$4 sm:$0xff]  }
 0x595   :  { %4115 = vmatprep.subr.bf16.mxu1 %v6314_v33  ;;  %4186 = vmatprep.subr.bf16.mxu0 %v6317_v35  ;;  %v6396_v33 = vld [vmem:[#allocation15 + $0x400] ss:$36 sps:$4 sm:$0xff]   ;;  %v6399_v35 = vld [vmem:[#allocation15 + $0x408] ss:$36 sps:$4 sm:$0xff]  }
 0x597   :  { %4000 = vmatmul.mubr.bf16.vlgmr.msra.gmra.mrb[72].mxu1 %v6726_v0  ;;  %4075 = vmatmul.mubr.bf16.vlgmr.msra.gmra.mrb[80].mxu0 %v6726_v0 }
 0x598   :  { %4116 = vmatpush1.bf16.msra.mxu1 %v6312_v45  ;;  %4187 = vmatpush1.bf16.msra.mxu0 %v6315_v14  ;;  %v6404_v45 = vld [vmem:[#allocation15 + $0x44c] ss:$36 sps:$4 sm:$0xff]   ;;  %v6407_v14 = vld [vmem:[#allocation15 + $0x454] ss:$36 sps:$4 sm:$0xff]  }
 0x599   :  { %4117 = vmatprep.subr.bf16.mxu1 %v6320_v41  ;;  %4188 = vmatprep.subr.bf16.mxu0 %v6323_v16  ;;  %v6402_v41 = vld [vmem:[#allocation15 + $0x448] ss:$36 sps:$4 sm:$0xff]   ;;  %v6405_v16 = vld [vmem:[#allocation15 + $0x450] ss:$36 sps:$4 sm:$0xff]  }
 0x59c   :  { %4118 = vmatpush1.bf16.msra.mxu1 %v6318_v38  ;;  %4189 = vmatpush1.bf16.msra.mxu0 %v6321_v15  ;;  %v6408_v38 = vld [vmem:[#allocation15 + $0x260] ss:$36 sps:$4 sm:$0xff]  }
 0x59d   :  { %4119 = vmatprep.subr.bf16.mxu1 %v6326_v60  ;;  %4190 = vmatprep.subr.bf16.mxu0 %v6329_v21 }
 0x5a0   :  { %4120 = vmatpush1.bf16.msra.mxu1 %v6324_v63  ;;  %4191 = vmatpush1.bf16.msra.mxu0 %v6327_v59 }
 0x5a1   :  { %4121 = vmatprep.subr.bf16.mxu1 %v6332_v2  ;;  %4192 = vmatprep.subr.bf16.mxu0 %v6335_v39 }
 0x5a4   :  { %4122 = vmatpush1.bf16.msra.mxu1 %v6330_v56  ;;  %4193 = vmatpush1.bf16.msra.mxu0 %v6333_v28 }
 0x5a5   :  { %4123 = vmatprep.subr.bf16.mxu1 %v6338_v9  ;;  %4194 = vmatprep.subr.bf16.mxu0 %v6341_v24 }
 0x5a8   :  { %4124 = vmatpush1.bf16.msra.mxu1 %v6336_v20  ;;  %4195 = vmatpush1.bf16.msra.mxu0 %v6339_v30 }
 0x5a9   :  { %4125 = vmatprep.subr.bf16.mxu1 %v6344_v11  ;;  %4196 = vmatprep.subr.bf16.mxu0 %v6347_v48 }
 0x5ac   :  { %4126 = vmatpush1.bf16.msra.mxu1 %v6342_v17  ;;  %4197 = vmatpush1.bf16.msra.mxu0 %v6345_v4 }
 0x5ad   :  { %4127 = vmatprep.subr.bf16.mxu1 %v6350_v27  ;;  %4198 = vmatprep.subr.bf16.mxu0 %v6353_v57 }
 0x5b0   :  { %4128 = vmatpush1.bf16.msra.mxu1 %v6348_v12  ;;  %4199 = vmatpush1.bf16.msra.mxu0 %v6351_v55 }
 0x5b1   :  { %4129 = vmatprep.subr.bf16.mxu1 %v6356_v6  ;;  %4200 = vmatprep.subr.bf16.mxu0 %v6359_v44 }
 0x5b4   :  { %4130 = vmatpush1.bf16.msra.mxu1 %v6354_v5  ;;  %4201 = vmatpush1.bf16.msra.mxu0 %v6357_v58 }
 0x5b5   :  { %4131 = vmatprep.subr.bf16.mxu1 %v6362_v34  ;;  %4202 = vmatprep.subr.bf16.mxu0 %v6365_v42  ;;  %v6409_v42 = vld [vmem:[#allocation15 + $0x20] ss:$36 sps:$4 sm:$0xff]  }
 0x5b8   :  { %4132 = vmatpush1.bf16.msra.mxu1 %v6360_v62  ;;  %4203 = vmatpush1.bf16.msra.mxu0 %v6363_v18 }
 0x5b9   :  { %4133 = vmatprep.subr.bf16.mxu1 %v6368_v10  ;;  %4204 = vmatprep.subr.bf16.mxu0 %v6371_v49  ;;  %v6410_v10 = vld [vmem:[#allocation15 + $0x2a8] ss:$36 sps:$4 sm:$0xff]   ;;  %v6413_v49 = vld [vmem:[#allocation15 + $0xb0] ss:$36 sps:$4 sm:$0xff]  }
 0x5bc   :  { %4134 = vmatpush1.bf16.msra.mxu1 %v6366_v26  ;;  %4205 = vmatpush1.bf16.msra.mxu0 %v6369_v23  ;;  %v6411_v26 = vld [vmem:[#allocation15 + $0x68] ss:$36 sps:$4 sm:$0xff]   ;;  %v6412_v23 = vld [vmem:[#allocation15 + $0x2f0] ss:$36 sps:$4 sm:$0xff]  }
 0x5bd   :  { %4135 = vmatprep.subr.bf16.mxu1 %v6374_v31  ;;  %4206 = vmatprep.subr.bf16.mxu0 %v6377_v13  ;;  %v6414_v31 = vld [vmem:[#allocation15 + $0x338] ss:$36 sps:$4 sm:$0xff]  }
 0x5be   :  { %v6415_v13 = vld [vmem:[#allocation15 + $0xf8] ss:$36 sps:$4 sm:$0xff]  }
 0x5c0   :  { %4136 = vmatpush1.bf16.msra.mxu1 %v6372_v43  ;;  %4207 = vmatpush1.bf16.msra.mxu0 %v6375_v32  ;;  %v6416_v43 = vld [vmem:[#allocation15 + $0x380] ss:$36 sps:$4 sm:$0xff]  }
 0x5c1   :  { %4137 = vmatprep.subr.bf16.mxu1 %v6380_v29  ;;  %4208 = vmatprep.subr.bf16.mxu0 %v6383_v22  ;;  %v6417_v32 = vld [vmem:[#allocation15 + $0x140] ss:$36 sps:$4 sm:$0xff]   ;;  %v6418_v29 = vld [vmem:[#allocation15 + $0x3c8] ss:$36 sps:$4 sm:$0xff]  }
 0x5c2   :  { %v6419_v22 = vld [vmem:[#allocation15 + $0x188] ss:$36 sps:$4 sm:$0xff]  }
 0x5c4   :  { %4138 = vmatpush1.bf16.msra.mxu1 %v6378_v37  ;;  %4209 = vmatpush1.bf16.msra.mxu0 %v6381_v3  ;;  %v6420_v37 = vld [vmem:[#allocation15 + $0x410] ss:$36 sps:$4 sm:$0xff]  }
 0x5c5   :  { %4139 = vmatprep.subr.bf16.mxu1 %v6386_v47  ;;  %4210 = vmatprep.subr.bf16.mxu0 %v6389_v53  ;;  %v6421_v3 = vld [vmem:[#allocation15 + $0x1d0] ss:$36 sps:$4 sm:$0xff]   ;;  %v6422_v47 = vld [vmem:[#allocation15 + $0x458] ss:$36 sps:$4 sm:$0xff]  }
 0x5c8   :  { %4140 = vmatpush1.bf16.msra.mxu1 %v6384_v61  ;;  %4211 = vmatpush1.bf16.msra.mxu0 %v6387_v51 }
 0x5c9   :  { %4141 = vmatprep.subr.bf16.mxu1 %v6392_v40  ;;  %4212 = vmatprep.subr.bf16.mxu0 %v6395_v46  ;;  %v6423_v46 = vld [vmem:[#allocation15 + $0x218] ss:$36 sps:$4 sm:$0xff]  }
 0x5cc   :  { %4142 = vmatpush1.bf16.msra.mxu1 %v6390_v19  ;;  %4213 = vmatpush1.bf16.msra.mxu0 %v6393_v36 }
 0x5cd   :  { %4143 = vmatprep.subr.bf16.mxu1 %v6398_v52  ;;  %4214 = vmatprep.subr.bf16.mxu0 %v6401_v25 }
 0x5d0   :  { %4144 = vmatpush1.bf16.msra.mxu1 %v6396_v33  ;;  %4215 = vmatpush1.bf16.msra.mxu0 %v6399_v35  ;;  %v4625_v33 = vld [vmem:[%s8133_s11 + $0x80] sm:$0xff]  ;;  %v4626_v35 = vld [vmem:[%s8133_s11 + $0x88] sm:$0xff] }
 0x5d1   :  { %4145 = vmatprep.subr.bf16.mxu1 %v6404_v45  ;;  %4216 = vmatprep.subr.bf16.mxu0 %v6407_v14  ;;  %v4609_v45 = vld [vmem:[%s8133_s11] sm:$0xff]  ;;  %v5854_v14 = vpack.c.bf16 %v4626_v35, %v4625_v33 }
 0x5d4   :  { %4146 = vmatpush1.bf16.msra.mxu1 %v6402_v41  ;;  %4217 = vmatpush1.bf16.msra.mxu0 %v6405_v16  ;;  %v4610_v41 = vld [vmem:[%s8133_s11 + $0x8] sm:$0xff]  ;;  %v4627_v16 = vld [vmem:[%s8133_s11 + $0x90] sm:$0xff] }
 0x5d5   :  { %5540 = vmatprep.subr.bf16.mxu1 %v6408_v38  ;;  %5855 = vmatprep.subr.bf16.mxu0 %v5854_v14  ;;  %v4628_v38 = vld [vmem:[%s8133_s11 + $0x98] sm:$0xff] }
 0x629   :  { %v2646_v15 = vpop.f32.mrb[64].mxu1  ;;  %v3040_v60 = vpop.f32.mrb[72].mxu0 }
 0x62a   :  { %v3059_v21 = vmax.f32 %v2646_v15, %v3040_v60  ;;  %v2648_v63 = vpop.f32.mrb[65].mxu1  ;;  %v3042_v59 = vpop.f32.mrb[73].mxu0  ;;  %v5858_v15 = vpack.c.bf16 %v4628_v38, %v4627_v16  ;;  %v4611_v60 = vld [vmem:[%s8133_s11 + $0x10] sm:$0xff] }
 0x62b   :  { %v3060_v2 = vmax.f32 %v2648_v63, %v3042_v59  ;;  %v2650_v39 = vpop.f32.mrb[66].mxu1  ;;  %v3044_v56 = vpop.f32.mrb[74].mxu0  ;;  %v4629_v63 = vld [vmem:[%s8133_s11 + $0xa0] sm:$0xff] }
 0x62c   :  { %v3061_v28 = vmax.f32 %v2650_v39, %v3044_v56  ;;  %v2652_v9 = vpop.f32.mrb[67].mxu1  ;;  %v3046_v24 = vpop.f32.mrb[75].mxu0  ;;  %v4613_v39 = vld [vmem:[%s8133_s11 + $0x20] sm:$0xff]  ;;  %v4614_v56 = vld [vmem:[%s8133_s11 + $0x28] sm:$0xff] }
 0x62d   :  { %v3062_v20 = vmax.f32 %v2652_v9, %v3046_v24  ;;  %v4631_v9 = vld [vmem:[%s8133_s11 + $0xb0] sm:$0xff]  ;;  %v4632_v24 = vld [vmem:[%s8133_s11 + $0xb8] sm:$0xff] }
 0x62e   :  { %v7698_v30 = vpack.c.bf16 %v3061_v28, %v3059_v21  ;;  %v4612_v21 = vld [vmem:[%s8133_s11 + $0x18] sm:$0xff] }
 0x62f   :  { %v7700_v11 = vpack.c.bf16 %v3062_v20, %v3060_v2  ;;  %v5860_v59 = vpack.c.bf16 %v4612_v21, %v4611_v60  ;;  %v4630_v2 = vld [vmem:[%s8133_s11 + $0xa8] sm:$0xff]  ;;  %v5864_v20 = vpack.c.bf16 %v4614_v56, %v4613_v39 }
 0x630   :  { %v5862_v28 = vpack.c.bf16 %v4630_v2, %v4629_v63 }
 0x631   :  { %v2656_v48 = vpop.f32.mrb[68].mxu1  ;;  %v3050_v17 = vpop.f32.mrb[76].mxu0  ;;  %4007 = vmatprep.mubr.bf16.mxu1 %v7700_v11  ;;  %4081 = vmatprep.mubr.bf16.mxu0 %v7700_v11 }
 0x632   :  { %v3063_v4 = vmax.f32 %v2656_v48, %v3050_v17  ;;  %v2658_v27 = vpop.f32.mrb[69].mxu1  ;;  %v3052_v12 = vpop.f32.mrb[77].mxu0  ;;  %4008 = vmatmul.mubr.bf16.gmra.mrb[76].mxu1 %v7698_v30  ;;  %4082 = vmatmul.mubr.bf16.gmra.mrb[84].mxu0 %v7698_v30  ;;  %v4616_v48 = vld [vmem:[%s8133_s11 + $0x38] sm:$0xff]  ;;  %v4633_v17 = vld [vmem:[%s8133_s11 + $0xc0] sm:$0xff] }
 0x633   :  { %v3064_v55 = vmax.f32 %v2658_v27, %v3052_v12  ;;  %v2660_v57 = vpop.f32.mrb[70].mxu1  ;;  %v3054_v6 = vpop.f32.mrb[78].mxu0  ;;  %4017 = vmatprep.mubr.bf16.mxu1 %v6726_v0  ;;  %4091 = vmatprep.mubr.bf16.mxu0 %v6726_v0 }
 0x634   :  { %v3065_v5 = vmax.f32 %v2660_v57, %v3054_v6  ;;  %v2662_v58 = vpop.f32.mrb[71].mxu1  ;;  %v3056_v44 = vpop.f32.mrb[79].mxu0  ;;  %v4618_v57 = vld [vmem:[%s8133_s11 + $0x48] sm:$0xff]  ;;  %v4635_v6 = vld [vmem:[%s8133_s11 + $0xd0] sm:$0xff] }
 0x635   :  { %v3066_v34 = vmax.f32 %v2662_v58, %v3056_v44 }
 0x636   :  { %v7708_v62 = vpack.c.bf16 %v3065_v5, %v3063_v4  ;;  %v4634_v4 = vld [vmem:[%s8133_s11 + $0xc8] sm:$0xff]  ;;  %v4636_v5 = vld [vmem:[%s8133_s11 + $0xd8] sm:$0xff] }
 0x637   :  { %v7710_v18 = vpack.c.bf16 %v3066_v34, %v3064_v55  ;;  %v5870_v12 = vpack.c.bf16 %v4634_v4, %v4633_v17  ;;  %v4617_v55 = vld [vmem:[%s8133_s11 + $0x40] sm:$0xff]  ;;  %v5874_v44 = vpack.c.bf16 %v4636_v5, %v4635_v6  ;;  %v4619_v34 = vld [vmem:[%s8133_s11 + $0x50] sm:$0xff] }
 0x638   :  { %v5872_v58 = vpack.c.bf16 %v4618_v57, %v4617_v55 }
 0x63a   :  { %4018 = vmatmul.mubr.bf16.gmra.mrb[80].mxu1 %v6726_v0  ;;  %4092 = vmatmul.mubr.bf16.gmra.mrb[88].mxu0 %v6726_v0 }
 0x63b   :  { %4025 = vmatprep.mubr.bf16.mxu1 %v7710_v18  ;;  %4098 = vmatprep.mubr.bf16.mxu0 %v7710_v18 }
 0x642   :  { %4026 = vmatmul.mubr.bf16.gmra.mrb[84].mxu1 %v7708_v62  ;;  %4099 = vmatmul.mubr.bf16.gmra.mrb[92].mxu0 %v7708_v62 }
 0x643   :  { %4035 = vmatprep.mubr.bf16.mxu1 %v6726_v0  ;;  %4108 = vmatprep.mubr.bf16.mxu0 %v6726_v0 }
 0x64a   :  { %4036 = vmatmul.mubr.bf16.gmra.mrb[88].mxu1 %v6726_v0  ;;  %4109 = vmatmul.mubr.bf16.gmra.mrb[96].mxu0 %v6726_v0 }
 0x64b   :  { %4147 = vmatprep.mubr.bf16.mxu1 %v6726_v0  ;;  %4218 = vmatprep.mubr.bf16.mxu0 %v6726_v0 }
 0x652   :  { %4148 = vmatmul.mubr.bf16.vlgmr.msra.gmra.mrb[92].mxu1 %v6726_v0  ;;  %4219 = vmatmul.mubr.bf16.vlgmr.msra.gmra.mrb[100].mxu0 %v6726_v0 }
 0x653   :  { %4153 = vmatprep.mubr.bf16.mxu1 %v7700_v11  ;;  %4224 = vmatprep.mubr.bf16.mxu0 %v7700_v11 }
 0x654   :  { %5541 = vmatpush3.bf16.msra.mxu1 %v6409_v42  ;;  %v4637_v42 = vld [vmem:[%s8133_s11 + $0xe0] sm:$0xff] }
 0x655   :  { %5542 = vmatprep.subr.bf16.mxu1 %v6410_v10  ;;  %v4638_v10 = vld [vmem:[%s8133_s11 + $0xe8] sm:$0xff] }
 0x658   :  { %5543 = vmatpush3.bf16.msra.mxu1 %v6411_v26  ;;  %v4621_v26 = vld [vmem:[%s8133_s11 + $0x60] sm:$0xff] }
 0x659   :  { %5544 = vmatprep.subr.bf16.mxu1 %v6412_v23  ;;  %v5878_v23 = vpack.c.bf16 %v4638_v10, %v4637_v42 }
 0x65a   :  { %4154 = vmatmul.mubr.bf16.gmra.mrb[96].mxu1 %v7698_v30  ;;  %4225 = vmatmul.mubr.bf16.gmra.mrb[104].mxu0 %v7698_v30 }
 0x65b   :  { %4163 = vmatprep.mubr.bf16.mxu1 %v6726_v0  ;;  %4234 = vmatprep.mubr.bf16.mxu0 %v6726_v0 }
 0x65c   :  { %5545 = vmatpush3.bf16.msra.mxu1 %v6413_v49  ;;  %v4622_v49 = vld [vmem:[%s8133_s11 + $0x68] sm:$0xff] }
 0x65d   :  { %5546 = vmatprep.subr.bf16.mxu1 %v6414_v31  ;;  %v4639_v31 = vld [vmem:[%s8133_s11 + $0xf0] sm:$0xff] }
 0x660   :  { %5547 = vmatpush3.bf16.msra.mxu1 %v6415_v13  ;;  %v4640_v13 = vld [vmem:[%s8133_s11 + $0xf8] sm:$0xff] }
 0x661   :  { %5548 = vmatprep.subr.bf16.mxu1 %v6416_v43  ;;  %v5880_v43 = vpack.c.bf16 %v4622_v49, %v4621_v26 }
 0x662   :  { %4164 = vmatmul.mubr.bf16.gmra.mrb[100].mxu1 %v6726_v0  ;;  %4235 = vmatmul.mubr.bf16.gmra.mrb[108].mxu0 %v6726_v0 }
 0x663   :  { %4169 = vmatprep.mubr.bf16.mxu1 %v7710_v18  ;;  %4242 = vmatprep.mubr.bf16.mxu0 %v7710_v18 }
 0x664   :  { %5549 = vmatpush3.bf16.msra.mxu1 %v6417_v32  ;;  %v5882_v32 = vpack.c.bf16 %v4640_v13, %v4639_v31 }
 0x665   :  { %5550 = vmatprep.subr.bf16.mxu1 %v6418_v29  ;;  %v4623_v29 = vld [vmem:[%s8133_s11 + $0x70] sm:$0xff] }
 0x668   :  { %5551 = vmatpush3.bf16.msra.mxu1 %v6419_v22  ;;  %v4624_v22 = vld [vmem:[%s8133_s11 + $0x78] sm:$0xff] }
 0x669   :  { %5552 = vmatprep.subr.bf16.mxu1 %v6420_v37  ;;  %v5884_v37 = vpack.c.bf16 %v4624_v22, %v4623_v29 }
 0x66a   :  { %4170 = vmatmul.mubr.bf16.gmra.mrb[104].mxu1 %v7708_v62  ;;  %4243 = vmatmul.mubr.bf16.gmra.mrb[112].mxu0 %v7708_v62  ;;  %v4001_v53 = vpop.f32.mrb[72].mxu1  ;;  %v4076_v61 = vpop.f32.mrb[80].mxu0 }
 0x66b   :  { %4179 = vmatprep.mubr.bf16.mxu1 %v6726_v0  ;;  %4252 = vmatprep.mubr.bf16.mxu0 %v6726_v0  ;;  %v4002_v51 = vpop.f32.mrb[73].mxu1  ;;  %v4077_v40 = vpop.f32.mrb[81].mxu0 }
 0x66c   :  { %5553 = vmatpush3.bf16.msra.mxu1 %v6421_v3  ;;  %v7740_v19 = vpop.f32.mrb[74].mxu1  ;;  %v7742_v36 = vpop.f32.mrb[82].mxu0 }
 0x66d   :  { %5554 = vmatprep.subr.bf16.mxu1 %v6422_v47  ;;  %v7744_v52 = vpop.f32.mrb[75].mxu1  ;;  %v4080_v25 = vpop.f32.mrb[83].mxu0 }
 0x670   :  { %5555 = vmatpush3.bf16.msra.mxu1 %v6423_v46 }
 0x672   :  { %4180 = vmatmul.mubr.bf16.gmra.mrb[108].mxu1 %v6726_v0  ;;  %4253 = vmatmul.mubr.bf16.gmra.mrb[116].mxu0 %v6726_v0 }
 0x673   :  { %4293 = vmatprep.mubr.bf16.mxu1 %v6726_v0 }
 0x67a   :  { %4294 = vmatmul.mubr.bf16.vlgmr.msra.gmra.mrb[112].mxu1 %v6726_v0 }
 0x67b   :  { %4299 = vmatprep.mubr.bf16.mxu1 %v7700_v11  ;;  %v4615_v11 = vld [vmem:[%s8133_s11 + $0x30] sm:$0xff] }
 0x67c   :  { %v5868_v27 = vpack.c.bf16 %v4616_v48, %v4615_v11 }
 0x682   :  { %4300 = vmatmul.mubr.bf16.gmra.mrb[116].mxu1 %v7698_v30  ;;  %v5866_v30 = vpack.c.bf16 %v4632_v24, %v4631_v9 }
 0x683   :  { %4307 = vmatprep.mubr.bf16.mxu1 %v6726_v0 }
 0x68a   :  { %4308 = vmatmul.mubr.bf16.gmra.mrb[120].mxu1 %v6726_v0 }
 0x68b   :  { %4314 = vmatprep.mubr.bf16.mxu1 %v7710_v18 }
 0x692   :  { %4315 = vmatmul.mubr.bf16.gmra.mrb[124].mxu1 %v7708_v62  ;;  %v4620_v62 = vld [vmem:[%s8133_s11 + $0x58] sm:$0xff] }
 0x693   :  { %4322 = vmatprep.mubr.bf16.mxu1 %v6726_v0  ;;  %v5876_v18 = vpack.c.bf16 %v4620_v62, %v4619_v34 }
 0x69a   :  { %4323 = vmatmul.mubr.bf16.gmra.mrb[128].mxu1 %v6726_v0  ;;  %v5856_v0 = vpack.c.bf16 %v4610_v41, %v4609_v45 }
 0x69b   :  { %4912 = vmatprep.mubr.f32.mxu1 %v6727_v7 }
 0x69c   :  { %5857 = vmatpush3.bf16.msra.mxu0 %v5856_v0 }
 0x69d   :  { %5859 = vmatprep.subr.bf16.mxu0 %v5858_v15 }
 0x6a0   :  { %5861 = vmatpush3.bf16.msra.mxu0 %v5860_v59 }
 0x6a1   :  { %5863 = vmatprep.subr.bf16.mxu0 %v5862_v28 }
 0x6a4   :  { %5865 = vmatpush3.bf16.msra.mxu0 %v5864_v20 }
 0x6a5   :  { %5867 = vmatprep.subr.bf16.mxu0 %v5866_v30 }
 0x6a8   :  { %5869 = vmatpush3.bf16.msra.mxu0 %v5868_v27 }
 0x6a9   :  { %5871 = vmatprep.subr.bf16.mxu0 %v5870_v12 }
 0x6ac   :  { %5873 = vmatpush3.bf16.msra.mxu0 %v5872_v58 }
 0x6ad   :  { %5875 = vmatprep.subr.bf16.mxu0 %v5874_v44 }
 0x6b0   :  { %5877 = vmatpush3.bf16.msra.mxu0 %v5876_v18 }
 0x6b1   :  { %5879 = vmatprep.subr.bf16.mxu0 %v5878_v23 }
 0x6b4   :  { %5881 = vmatpush3.bf16.msra.mxu0 %v5880_v43 }
 0x6b5   :  { %5883 = vmatprep.subr.bf16.mxu0 %v5882_v32 }
 0x6b8   :  { %5885 = vmatpush3.bf16.msra.mxu0 %v5884_v37 }
 0x6b9   :  { %5886 = vmatprep.subr.bf16.mxu0 %v6729_v1 }
 0x705   :  { %v4009_v3 = vpop.f32.mrb[76].mxu1  ;;  %v7856_v47 = vpop.f32.mrb[84].mxu0 }
 0x706   :  { %v7858_v53 = vpop.f32.mrb[77].mxu1  ;;  %v4085_v61 = vpop.f32.mrb[85].mxu0 }
 0x707   :  { %v4336_v51 = vrot.slane %v4085_v61, 1  ;;  %v4013_v40 = vpop.f32.mrb[78].mxu1  ;;  %v7860_v46 = vpop.f32.mrb[86].mxu0 }
 0x708   :  { %v7862_v25 = vpop.f32.mrb[79].mxu1  ;;  %v4089_v33 = vpop.f32.mrb[87].mxu0 }
 0x709   :  { %v4354_v35 = vadd.f32 %v4336_v51, %v7740_v19  ;;  %v4339_v45 = vrot.slane %v4089_v33, 1 }
 0x70b   :  { %v4340_v14 = vsel %vm1102_vm1, %v4336_v51, %v4339_v45  ;;  %v7866_v41 = vadd.f32 %v4339_v45, %v4013_v40 }
 0x70c   :  { %v7868_v0 = vadd.f32 %v4340_v14, %v4009_v3 }
 0x70d   :  { %v4019_v16 = vpop.f32.mrb[80].mxu1  ;;  %v4093_v38 = vpop.f32.mrb[88].mxu0 }
 0x70e   :  { %v4020_v15 = vpop.f32.mrb[81].mxu1  ;;  %v4094_v60 = vpop.f32.mrb[89].mxu0 }
 0x70f   :  { %v4021_v21 = vpop.f32.mrb[82].mxu1  ;;  %v7870_v63 = vpop.f32.mrb[90].mxu0 }
 0x710   :  { %v7872_v59 = vpop.f32.mrb[83].mxu1  ;;  %v4097_v2 = vpop.f32.mrb[91].mxu0 }
 0x715   :  { %v4027_v39 = vpop.f32.mrb[84].mxu1  ;;  %v7874_v56 = vpop.f32.mrb[92].mxu0 }
 0x716   :  { %v7876_v19 = vpop.f32.mrb[85].mxu1  ;;  %v4102_v28 = vpop.f32.mrb[93].mxu0 }
 0x717   :  { %v4411_v9 = vrot.slane %v4102_v28, 1  ;;  %v4031_v24 = vpop.f32.mrb[86].mxu1  ;;  %v7878_v20 = vpop.f32.mrb[94].mxu0 }
 0x718   :  { %v7880_v30 = vpop.f32.mrb[87].mxu1  ;;  %v4106_v11 = vpop.f32.mrb[95].mxu0 }
 0x719   :  { %v7882_v48 = vadd.f32 %v4411_v9, %v4021_v21  ;;  %v4414_v17 = vrot.slane %v4106_v11, 1 }
 0x71b   :  { %v4415_v4 = vsel %vm1102_vm1, %v4411_v9, %v4414_v17  ;;  %v7885_v27 = vadd.f32 %v4414_v17, %v4031_v24 }
 0x71c   :  { %v7887_v12 = vadd.f32 %v4415_v4, %v4027_v39 }
 0x71d   :  { %v4037_v55 = vpop.f32.mrb[88].mxu1  ;;  %v4110_v57 = vpop.f32.mrb[96].mxu0 }
 0x71e   :  { %v4038_v6 = vpop.f32.mrb[89].mxu1  ;;  %v4111_v5 = vpop.f32.mrb[97].mxu0 }
 0x71f   :  { %v4039_v58 = vpop.f32.mrb[90].mxu1  ;;  %v4112_v44 = vpop.f32.mrb[98].mxu0 }
 0x720   :  { %v4040_v34 = vpop.f32.mrb[91].mxu1  ;;  %v4113_v62 = vpop.f32.mrb[99].mxu0 }
 0x725   :  { %v4149_v18 = vpop.f32.mrb[92].mxu1  ;;  %v4220_v42 = vpop.f32.mrb[100].mxu0 }
 0x726   :  { %v4150_v10 = vpop.f32.mrb[93].mxu1  ;;  %v4221_v26 = vpop.f32.mrb[101].mxu0 }
 0x727   :  { %v4151_v23 = vpop.f32.mrb[94].mxu1  ;;  %v4222_v49 = vpop.f32.mrb[102].mxu0 }
 0x728   :  { %v4152_v31 = vpop.f32.mrb[95].mxu1  ;;  %v4223_v13 = vpop.f32.mrb[103].mxu0 }
 0x72d   :  { %v4155_v43 = vpop.f32.mrb[96].mxu1  ;;  %v4226_v32 = vpop.f32.mrb[104].mxu0 }
 0x72e   :  { %v4337_v29 = vrot.slane %v4155_v43, 1  ;;  %v4372_v22 = vrot.slane %v4226_v32, 2  ;;  %v4157_v37 = vpop.f32.mrb[97].mxu1  ;;  %v4228_v3 = vpop.f32.mrb[105].mxu0 }
 0x72f   :  { %v4338_v61 = vrot.slane %v4157_v37, 1  ;;  %v4373_v51 = vrot.slane %v4228_v3, 2  ;;  %v4159_v40 = vpop.f32.mrb[98].mxu1  ;;  %v4230_v33 = vpop.f32.mrb[106].mxu0 }
 0x730   :  { %v4355_v45 = vadd.f32 %v4337_v29, %v7744_v52  ;;  %v4396_v14 = vadd.f32 %v4372_v22, %v4354_v35  ;;  %v4341_v16 = vrot.slane %v4159_v40, 1  ;;  %v4375_v38 = vrot.slane %v4230_v33, 2  ;;  %v4161_v15 = vpop.f32.mrb[99].mxu1  ;;  %v4232_v60 = vpop.f32.mrb[107].mxu0 }
 0x731   :  { %v7891_v21 = vadd.f32 %v4338_v61, %v7742_v36  ;;  %v4343_v2 = vrot.slane %v4161_v15, 1  ;;  %v4377_v39 = vrot.slane %v4232_v60, 2 }
 0x732   :  { %v4397_v28 = vadd.f32 %v4373_v51, %v4355_v45  ;;  %v4342_v9 = vsel %vm1102_vm1, %v4337_v29, %v4341_v16  ;;  %v4361_v24 = vadd.f32 %v4341_v16, %v7862_v25  ;;  %v4376_v17 = vsel %vm1169_vm2, %v4372_v22, %v4375_v38 }
 0x733   :  { %v4358_v11 = vadd.f32 %v4342_v9, %v7858_v53  ;;  %v4344_v52 = vsel %vm1102_vm1, %v4338_v61, %v4343_v2  ;;  %v7899_v35 = vadd.f32 %v4343_v2, %v7860_v46  ;;  %v4399_v4 = vadd.f32 %v4376_v17, %v7868_v0 }
 0x734   :  { %v7903_v36 = vadd.f32 %v4344_v52, %v7856_v47  ;;  %v4378_v55 = vsel %vm1169_vm2, %v4373_v51, %v4377_v39  ;;  %v4489_v25 = vrot.slane %v4396_v14, 7  ;;  %v4492_v62 = vrot.slane %v4397_v28, 7 }
 0x735   :  { %v4400_v57 = vadd.f32 %v4378_v55, %v4358_v11  ;;  %v4165_v6 = vpop.f32.mrb[100].mxu1  ;;  %v4236_v5 = vpop.f32.mrb[108].mxu0  ;;  %v4490_v58 = vrot.slane %v4399_v4, 7 }
 0x736   :  { %v4381_v53 = vrot.slane %v4236_v5, 2  ;;  %v4166_v44 = vpop.f32.mrb[101].mxu1  ;;  %v4238_v34 = vpop.f32.mrb[109].mxu0 }
 0x737   :  { %v4493_v18 = vrot.slane %v4400_v57, 7  ;;  %v4383_v42 = vrot.slane %v4238_v34, 2  ;;  %v4167_v46 = vpop.f32.mrb[102].mxu1  ;;  %v4240_v10 = vpop.f32.mrb[110].mxu0  ;;  %v7907_v0 = vsel %vm1509_vm3, %v4489_v25, %v4490_v58 }
 0x738   :  { %v4382_v47 = vsel %vm1169_vm2, %v4375_v38, %v4381_v53  ;;  %v4168_v26 = vpop.f32.mrb[103].mxu1  ;;  %v4241_v23 = vpop.f32.mrb[111].mxu0 }
 0x739   :  { %v7911_v49 = vsel %vm1509_vm3, %v4492_v62, %v4493_v18  ;;  %v4402_v31 = vadd.f32 %v4382_v47, %v7866_v41  ;;  %v4384_v13 = vsel %vm1169_vm2, %v4377_v39, %v4383_v42 }
 0x73a   :  { %v4403_v43 = vadd.f32 %v4384_v13, %v4361_v24  ;;  %v4567_v13 = vmul.f32 %v7907_v0, %v7907_v0 }
 0x73b   :  { %v4498_v32 = vrot.slane %v4402_v31, 7 }
 0x73c   :  { %v4500_v29 = vrot.slane %v4403_v43, 7 }
 0x73d   :  { %v7916_v22 = vsel %vm1509_vm3, %v4490_v58, %v4498_v32  ;;  %v4171_v37 = vpop.f32.mrb[104].mxu1  ;;  %v4244_v3 = vpop.f32.mrb[112].mxu0 }
 0x73e   :  { %v7919_v61 = vsel %vm1509_vm3, %v4493_v18, %v4500_v29  ;;  %v4412_v51 = vrot.slane %v4171_v37, 1  ;;  %v4173_v40 = vpop.f32.mrb[105].mxu1  ;;  %v4246_v33 = vpop.f32.mrb[113].mxu0  ;;  %v4447_v45 = vrot.slane %v4244_v3, 2  ;;  %v4540_v37 = vadd.f32 %v7916_v22, %v7907_v0 }
 0x73f   :  { %v4413_v14 = vrot.slane %v4173_v40, 1  ;;  %v4175_v16 = vpop.f32.mrb[106].mxu1  ;;  %v4248_v41 = vpop.f32.mrb[114].mxu0  ;;  %v4448_v15 = vrot.slane %v4246_v33, 2  ;;  %v4571_v43 = vmul.f32 %v7919_v61, %v7919_v61  ;;  %v4568_v33 = vmul.f32 %v7911_v49, %v7911_v49 }
 0x740   :  { %v4430_v38 = vadd.f32 %v4412_v51, %v7872_v59  ;;  %v4416_v60 = vrot.slane %v4175_v16, 1  ;;  %v4177_v2 = vpop.f32.mrb[107].mxu1  ;;  %v4250_v39 = vpop.f32.mrb[115].mxu0  ;;  %v4471_v28 = vadd.f32 %v4447_v45, %v7882_v48  ;;  %v4450_v24 = vrot.slane %v4248_v41, 2 }
 0x741   :  { %v7924_v9 = vadd.f32 %v4413_v14, %v7870_v63  ;;  %v4418_v4 = vrot.slane %v4177_v2, 1  ;;  %v4452_v57 = vrot.slane %v4250_v39, 2 }
 0x742   :  { %v4472_v11 = vadd.f32 %v4448_v15, %v4430_v38  ;;  %v4417_v17 = vsel %vm1102_vm1, %v4412_v51, %v4416_v60  ;;  %v4436_v52 = vadd.f32 %v4416_v60, %v7880_v30  ;;  %v4451_v59 = vsel %vm1169_vm2, %v4447_v45, %v4450_v24 }
 0x743   :  { %v4433_v55 = vadd.f32 %v4417_v17, %v7876_v19  ;;  %v4474_v6 = vadd.f32 %v4451_v59, %v7887_v12  ;;  %v4419_v5 = vsel %vm1102_vm1, %v4413_v14, %v4418_v4  ;;  %v7933_v48 = vadd.f32 %v4418_v4, %v7878_v20 }
 0x744   :  { %v7936_v63 = vadd.f32 %v4419_v5, %v7874_v56  ;;  %v4453_v25 = vsel %vm1169_vm2, %v4448_v15, %v4452_v57  ;;  %v4519_v53 = vrot.slane %v4471_v28, 7  ;;  %v4570_v12 = vmul.f32 %v7916_v22, %v7916_v22 }
 0x745   :  { %v4181_v58 = vpop.f32.mrb[108].mxu1  ;;  %v4254_v30 = vpop.f32.mrb[116].mxu0  ;;  %v4520_v44 = vrot.slane %v4474_v6, 7  ;;  %v4475_v19 = vadd.f32 %v4453_v25, %v4433_v55  ;;  %v4522_v10 = vrot.slane %v4472_v11, 7  ;;  %v4549_v45 = vadd.f32 %v7919_v61, %v7911_v49 }
 0x746   :  { %v4456_v34 = vrot.slane %v4254_v30, 2  ;;  %v4182_v62 = vpop.f32.mrb[109].mxu1  ;;  %v4256_v18 = vpop.f32.mrb[117].mxu0  ;;  %v4579_v16 = vadd.f32 %v4570_v12, %v4567_v13  ;;  %v4588_v15 = vadd.f32 %v4571_v43, %v4568_v33 }
 0x747   :  { %v4458_v42 = vrot.slane %v4256_v18, 2  ;;  %v4183_v46 = vpop.f32.mrb[110].mxu1  ;;  %v4258_v20 = vpop.f32.mrb[118].mxu0  ;;  %v7942_v56 = vsel %vm1509_vm3, %v4519_v53, %v4520_v44  ;;  %v4523_v47 = vrot.slane %v4475_v19, 7 }
 0x748   :  { %v4457_v26 = vsel %vm1169_vm2, %v4450_v24, %v4456_v34  ;;  %v4184_v23 = vpop.f32.mrb[111].mxu1  ;;  %v4259_v31 = vpop.f32.mrb[119].mxu0  ;;  %v4573_v3 = vmul.f32 %v7942_v56, %v7942_v56  ;;  %v4541_v41 = vadd.f32 %v4540_v37, %v7942_v56 }
 0x749   :  { %v4477_v32 = vadd.f32 %v4457_v26, %v7885_v27  ;;  %v4459_v29 = vsel %vm1169_vm2, %v4452_v57, %v4458_v42  ;;  %v7956_v51 = vsel %vm1509_vm3, %v4522_v10, %v4523_v47 }
 0x74a   :  { %v4478_v40 = vadd.f32 %v4459_v29, %v4436_v52  ;;  %v4574_v27 = vmul.f32 %v7956_v51, %v7956_v51  ;;  %v4550_v60 = vadd.f32 %v4549_v45, %v7956_v51  ;;  %v4580_v28 = vadd.f32 %v4579_v16, %v4573_v3 }
 0x74b   :  { %v4528_v14 = vrot.slane %v4477_v32, 7 }
 0x74c   :  { %v4530_v38 = vrot.slane %v4478_v40, 7  ;;  %v4589_v57 = vadd.f32 %v4588_v15, %v4574_v27 }
 0x74d   :  { %v7967_v2 = vsel %vm1509_vm3, %v4520_v44, %v4528_v14  ;;  %v5556_v39 = vpop.f32.mrb[112].mxu1 }
 0x74e   :  { %v4542_v24 = vadd.f32 %v4541_v41, %v7967_v2  ;;  %v4576_v11 = vmul.f32 %v7967_v2, %v7967_v2  ;;  %v7973_v17 = vsel %vm1509_vm3, %v4523_v47, %v4530_v38  ;;  %v5557_v52 = vpop.f32.mrb[113].mxu1  ;;  %v4641_v41 = vld [vmem:[%s8133_s11 + $0x100] sm:$0xff]  ;;  %v4642_v38 = vld [vmem:[%s8133_s11 + $0x108] sm:$0xff] }
 0x74f   :  { %v4577_v4 = vmul.f32 %v7973_v17, %v7973_v17  ;;  %v5559_v55 = vpop.f32.mrb[114].mxu1  ;;  %v4551_v59 = vadd.f32 %v4550_v60, %v7973_v17 }
 0x750   :  { %v4543_v6 = vrot.slane %v4542_v24, 4  ;;  %v4581_v5 = vadd.f32 %v4580_v28, %v4576_v11  ;;  %v5560_v25 = vpop.f32.mrb[115].mxu1 }
 0x751   :  { %v4552_v58 = vrot.slane %v4551_v59, 4  ;;  %v4590_v30 = vadd.f32 %v4589_v57, %v4577_v4  ;;  %v5887_v4 = vpack.c.bf16 %v4642_v38, %v4641_v41 }
 0x752   :  { %v4544_v53 = vadd.f32 %v4543_v6, %v4542_v24  ;;  %v4582_v44 = vrot.slane %v4581_v5, 4  ;;  %v4643_v6 = vld [vmem:[%s8133_s11 + $0x110] sm:$0xff] }
 0x753   :  { %v4553_v19 = vadd.f32 %v4552_v58, %v4551_v59  ;;  %v4591_v34 = vrot.slane %v4590_v30, 4 }
 0x754   :  { %v4545_v62 = vrot.slane %v4544_v53, 2  ;;  %v4583_v18 = vadd.f32 %v4582_v44, %v4581_v5  ;;  %v4644_v5 = vld [vmem:[%s8133_s11 + $0x118] sm:$0xff] }
 0x755   :  { %v5562_v12 = vpop.f32.mrb[116].mxu1  ;;  %v4554_v42 = vrot.slane %v4553_v19, 2  ;;  %v4592_v46 = vadd.f32 %v4591_v34, %v4590_v30 }
 0x756   :  { %v5563_v20 = vpop.f32.mrb[117].mxu1  ;;  %v4546_v10 = vadd.f32 %v4545_v62, %v4544_v53  ;;  %v4584_v47 = vrot.slane %v4583_v18, 2  ;;  %v4645_v62 = vld [vmem:[%s8133_s11 + $0x120] sm:$0xff] }
 0x757   :  { %v5564_v26 = vadd.f32 %v5563_v20, %v5562_v12  ;;  %v5565_v23 = vpop.f32.mrb[118].mxu1  ;;  %v4555_v31 = vadd.f32 %v4554_v42, %v4553_v19  ;;  %v4593_v13 = vrot.slane %v4592_v46, 2  ;;  %v5890_v19 = vpack.c.bf16 %v4644_v5, %v4643_v6 }
 0x758   :  { %v5566_v43 = vpop.f32.mrb[119].mxu1  ;;  %v4585_v32 = vadd.f32 %v4584_v47, %v4583_v18  ;;  %v4547_v33 = vrot.slane %v4546_v10, 1  ;;  %v4646_v18 = vld [vmem:[%s8133_s11 + $0x128] sm:$0xff] }
 0x759   :  { %v4374_v29 = vrot.slane %v5564_v26, 2  ;;  %v5567_v37 = vadd.f32 %v5566_v43, %v5565_v23  ;;  %v4556_v3 = vrot.slane %v4555_v31, 1  ;;  %v4594_v40 = vadd.f32 %v4593_v13, %v4592_v46  ;;  %v4647_v23 = vld [vmem:[%s8133_s11 + $0x130] sm:$0xff] }
 0x75a   :  { %v4586_v45 = vrot.slane %v4585_v32, 1 }
 0x75b   :  { %v4398_v27 = vadd.f32 %v4374_v29, %v7891_v21  ;;  %v4379_v14 = vrot.slane %v5567_v37, 2  ;;  %v4595_v16 = vrot.slane %v4594_v40, 1  ;;  %v4557_v28 = vadd.f32 %v4556_v3, %v4555_v31  ;;  %v4648_v31 = vld [vmem:[%s8133_s11 + $0x138] sm:$0xff] }
 0x75c   :  { %v4587_v15 = vadd.f32 %v4586_v45, %v4585_v32  ;;  %v4548_v21 = vadd.f32 %v4547_v33, %v4546_v10  ;;  %v5893_v10 = vpack.c.bf16 %v4646_v18, %v4645_v62  ;;  %v4650_v33 = vld [vmem:[%s8133_s11 + $0x148] sm:$0xff] }
 0x75d   :  { %v4380_v60 = vsel %vm1169_vm2, %v4374_v29, %v4379_v14  ;;  %v5568_v39 = vpop.f32.mrb[120].mxu1  ;;  %v4596_v24 = vadd.f32 %v4595_v16, %v4594_v40  ;;  %v4495_v25 = vrot.slane %v4398_v27, 7  ;;  %v5896_v29 = vpack.c.bf16 %v4648_v31, %v4647_v23  ;;  %v4649_v40 = vld [vmem:[%s8133_s11 + $0x140] sm:$0xff] }
 0x75e   :  { %v4401_v11 = vadd.f32 %v4380_v60, %v7903_v36  ;;  %v5569_v52 = vpop.f32.mrb[121].mxu1  ;;  %v4606_v36 = vsel %vm1509_vm3, %v4548_v21, %v4587_v15  ;;  %v5899_v41 = vpack.c.bf16 %v4650_v33, %v4649_v40  ;;  %v4651_v15 = vld [vmem:[%s8133_s11 + $0x150] sm:$0xff]  ;;  %v4652_v60 = vld [vmem:[%s8133_s11 + $0x158] sm:$0xff] }
 0x75f   :  { %v5570_v55 = vadd.f32 %v5569_v52, %v5568_v39  ;;  %v5571_v59 = vpop.f32.mrb[122].mxu1  ;;  %v4607_v57 = vsel %vm1509_vm3, %v4557_v28, %v4596_v24  ;;  %v5902_v52 = vpack.c.bf16 %v4652_v60, %v4651_v15  ;;  %v4836_v33 = vld [vmem:[#allocation16 + $0x8] sm:$0xff]  ;;  %v4841_v60 = vld [vmem:[#allocation16 + $0x30] sm:$0xff] }
 0x760   :  { %v4496_v58 = vrot.slane %v4401_v11, 7  ;;  %v5572_v30 = vpop.f32.mrb[123].mxu1  ;;  %4721 = vmatprep.mubr.f32.mxu0 %v4607_v57  ;;  %v4654_v59 = vld [vmem:[%s8133_s11 + $0x168] sm:$0xff] }
 0x761   :  { %v4385_v53 = vrot.slane %v5570_v55, 2  ;;  %4722 = vmatmul.mubr.f32.vlgmr.msra.gmra.mrb[62].mxu0 %v4606_v36  ;;  %v4653_v55 = vld [vmem:[%s8133_s11 + $0x160] sm:$0xff] }
 0x762   :  { %v7996_v44 = vsel %vm1509_vm3, %v4495_v25, %v4496_v58  ;;  %5888 = vmatpush3.bf16.msra.mxu0 %v5887_v4  ;;  %5776 = vmatprep.mubr.msk.f32.mxu0 %vm6728_vm0, %v6727_v7  ;;  %v5905_v30 = vpack.c.bf16 %v4654_v59, %v4653_v55 }
 0x763   :  { %v4386_v34 = vsel %vm1169_vm2, %v4379_v14, %v4385_v53  ;;  %5889 = vmatprep.subr.bf16.mxu0 %v6729_v1  ;;  %v4569_v6 = vmul.f32 %v7996_v44, %v7996_v44 }
 0x764   :  { %v4404_v12 = vadd.f32 %v4386_v34, %v7899_v35 }
 0x765   :  { %v5574_v42 = vpop.f32.mrb[124].mxu1 }
 0x766   :  { %v4502_v46 = vrot.slane %v4404_v12, 7  ;;  %v5575_v20 = vpop.f32.mrb[125].mxu1  ;;  %5891 = vmatpush3.bf16.msra.mxu0 %v5890_v19  ;;  %v4656_v19 = vld [vmem:[%s8133_s11 + $0x178] sm:$0xff] }
 0x767   :  { %v5576_v47 = vadd.f32 %v5575_v20, %v5574_v42  ;;  %v5577_v26 = vpop.f32.mrb[126].mxu1  ;;  %5892 = vmatprep.subr.bf16.mxu0 %v6729_v1 }
 0x768   :  { %v8017_v13 = vsel %vm1509_vm3, %v4496_v58, %v4502_v46  ;;  %v5578_v35 = vpop.f32.mrb[127].mxu1 }
 0x769   :  { %v4449_v43 = vrot.slane %v5576_v47, 2  ;;  %v5579_v32 = vadd.f32 %v5578_v35, %v5577_v26  ;;  %v4572_v21 = vmul.f32 %v8017_v13, %v8017_v13  ;;  %v4558_v5 = vadd.f32 %v8017_v13, %v7996_v44 }
 0x76a   :  { %5894 = vmatpush3.bf16.msra.mxu0 %v5893_v10 }
 0x76b   :  { %v4473_v37 = vadd.f32 %v4449_v43, %v7924_v9  ;;  %v4454_v3 = vrot.slane %v5579_v32, 2  ;;  %5895 = vmatprep.subr.bf16.mxu0 %v6729_v1  ;;  %v4597_v36 = vadd.f32 %v4572_v21, %v4569_v6 }
 0x76d   :  { %v4455_v45 = vsel %vm1169_vm2, %v4449_v43, %v4454_v3  ;;  %v5580_v27 = vpop.f32.mrb[128].mxu1  ;;  %v4525_v39 = vrot.slane %v4473_v37, 7 }
 0x76e   :  { %v4476_v14 = vadd.f32 %v4455_v45, %v7936_v63  ;;  %v5581_v16 = vpop.f32.mrb[129].mxu1  ;;  %5897 = vmatpush3.bf16.msra.mxu0 %v5896_v29  ;;  %v4839_v45 = vld [vmem:[#allocation16 + $0x20] sm:$0xff] }
 0x76f   :  { %v5582_v9 = vadd.f32 %v5581_v16, %v5580_v27  ;;  %v5583_v38 = vpop.f32.mrb[130].mxu1  ;;  %5898 = vmatprep.subr.bf16.mxu0 %v6729_v1  ;;  %v5910_v27 = vpack.c.bf16 %v4839_v45, %v4836_v33  ;;  %v4838_v16 = vld [vmem:[#allocation16 + $0x18] sm:$0xff] }
 0x770   :  { %v4526_v28 = vrot.slane %v4476_v14, 7  ;;  %v5584_v24 = vpop.f32.mrb[131].mxu1  ;;  %v4835_v14 = vld [vmem:[#allocation16] sm:$0xff]  ;;  %v4840_v38 = vld [vmem:[#allocation16 + $0x28] sm:$0xff] }
 0x771   :  { %v4460_v11 = vrot.slane %v5582_v9, 2  ;;  %5911 = vmatprep.subr.bf16.mxu1 %v5910_v27  ;;  %v4837_v9 = vld [vmem:[#allocation16 + $0x10] sm:$0xff] }
 0x772   :  { %v8037_v63 = vsel %vm1509_vm3, %v4525_v39, %v4526_v28  ;;  %5900 = vmatpush3.bf16.msra.mxu0 %v5899_v41  ;;  %v4842_v41 = vld [vmem:[#allocation16 + $0x38] sm:$0xff]  ;;  %v5915_v15 = vpack.c.bf16 %v4840_v38, %v4837_v9  ;;  %v4843_v39 = vld [vmem:[#allocation16 + $0x40] sm:$0xff] }
 0x773   :  { %v4461_v4 = vsel %vm1169_vm2, %v4454_v3, %v4460_v11  ;;  %5901 = vmatprep.subr.bf16.mxu0 %v6729_v1  ;;  %v4575_v25 = vmul.f32 %v8037_v63, %v8037_v63  ;;  %v4559_v53 = vadd.f32 %v4558_v5, %v8037_v63 }
 0x774   :  { %v4479_v57 = vadd.f32 %v4461_v4, %v7933_v48  ;;  %v4655_v48 = vld [vmem:[%s8133_s11 + $0x170] sm:$0xff] }
 0x775   :  { %v4598_v62 = vadd.f32 %v4597_v36, %v4575_v25  ;;  %v5908_v42 = vpack.c.bf16 %v4656_v19, %v4655_v48  ;;  %v4825_v48 = vld [vmem:[#allocation19] sm:$0x1] }
 0x776   :  { %v4532_v58 = vrot.slane %v4479_v57, 7  ;;  %5903 = vmatpush3.bf16.msra.mxu0 %v5902_v52 }
 0x777   :  { %5904 = vmatprep.subr.bf16.mxu0 %v6729_v1 }
 0x778   :  { %v8065_v34 = vsel %vm1509_vm3, %v4526_v28, %v4532_v58 }
 0x779   :  { %v4560_v18 = vadd.f32 %v4559_v53, %v8065_v34  ;;  %v4578_v12 = vmul.f32 %v8065_v34, %v8065_v34 }
 0x77a   :  { %5906 = vmatpush3.bf16.msra.mxu0 %v5905_v30 }
 0x77b   :  { %5907 = vmatprep.subr.bf16.mxu0 %v6729_v1  ;;  %v4561_v46 = vrot.slane %v4560_v18, 4  ;;  %v4599_v20 = vadd.f32 %v4598_v62, %v4578_v12 }
 0x77d   :  { %v4562_v10 = vadd.f32 %v4561_v46, %v4560_v18  ;;  %v4600_v47 = vrot.slane %v4599_v20, 4 }
 0x77e   :  { %5909 = vmatpush3.bf16.msra.mxu0 %v5908_v42 }
 0x77f   :  { %v4563_v26 = vrot.slane %v4562_v10, 2  ;;  %v4601_v23 = vadd.f32 %v4600_v47, %v4599_v20  ;;  %5914 = vmatprep.subr.bf16.mxu0 %v6729_v1  ;;  %v5912_v1 = vpack.c.bf16 %v4838_v16, %v4835_v14 }
 0x781   :  { %v4564_v31 = vadd.f32 %v4563_v26, %v4562_v10  ;;  %v4602_v35 = vrot.slane %v4601_v23, 2  ;;  %5913 = vmatpush1.bf16.msra.mxu1 %v5912_v1 }
 0x782   :  { %4852 = vmatprep.subr.mxu1 %v4842_v41 }
 0x783   :  { %v4565_v43 = vrot.slane %v4564_v31, 1  ;;  %v4603_v32 = vadd.f32 %v4602_v35, %v4601_v23 }
 0x785   :  { %v4604_v29 = vrot.slane %v4603_v32, 1  ;;  %v4566_v37 = vadd.f32 %v4565_v43, %v4564_v31  ;;  %4853 = vmatpush1.msra.mxu1 %v4841_v60 }
 0x787   :  { %v4605_v3 = vadd.f32 %v4604_v29, %v4603_v32 }
 0x789   :  { %v4608_v40 = vsel %vm1509_vm3, %v4566_v37, %v4605_v3 }
 0x78a   :  { %5777 = vmatmul.mubr.f32.vlgmr.msra.gmra.mrb[120].mxu0 %v4608_v40 }
 0x78b   :  { %5785 = vmatprep.mubr.msk.f32.mxu0 %vm6728_vm0, %v6727_v7  ;;  %5916 = vmatpush3.bf16.msra.mxu0 %v5915_v15 }
 0x78c   :  { %5783 = vmatprep.subr.mxu0 %v6727_v7  ;;  %v4804_v7 = vld [vmem:[#allocation18] sm:$0x1] }
 0x78f   :  { %5784 = vmatpush3.msra.mxu0 %v4843_v39 }
 0x834   :  { %v5618_v28 = vpop.f32.mrb[62].mxu0 }
 0x835   :  { %v5619_v24 = vpop.f32.mrb[63].mxu0 }
 0x836   :  { %v5620_v11 = vadd.f32 %v5619_v24, %v5618_v28 }
 0x85d   :  { %v4793_v52 = vpop.f32.mrb[120].mxu0 }
 0x85e   :  { %v4794_v21 = vadd.f32 %v5620_v11, %v4793_v52  ;;  %v5778_v4 = vpop.f32.mrb[121].mxu0 }
 0x860   :  { %v4798_v55 = vmul.f32 0.001953125, %v4794_v21 }
 0x862   :  { %v4799_v59 = vmul.f32 %v4798_v55, %v4798_v55 }
 0x864   :  { %v4801_v57 = vrot.slane %v4799_v59, 7 }
 0x866   :  { %v4803_v6 = vsub.f32 %v4798_v55, %v4801_v57 }
 0x868   :  { %v4805_v5 = vadd.f32 1e-05, %v4803_v6 }
 0x86a   :  { %6426 = vrsqrt.f32 %v4805_v5 }
 0x874   :  { %v6427_v25 = vpop.eup %6426 }
 0x875   :  { %v4814_v58 = vrot.slane %v6427_v25, %v7546_v50 }
 0x877   :  { %v4815_v30 = vcombine.high %v4814_v58, %v4814_v58 }
 0x879   :  { %v4822_v36 = vrot.slane %v4815_v30, %v7546_v50 }
 0x87b   :  { %v4824_v53 = vmul.f32 %v4822_v36, %v4804_v7 }
 0x87d   :  { %v4826_v19 = vmul.f32 %v4824_v53, %v4798_v55 }
 0x87f   :  { %v4827_v62 = vsub.f32 %v4825_v48, %v4826_v19 }
 0x881   :  { %v4832_v18 = vrot.slane %v4827_v62, %v7550_v8 }
 0x883   :  { %v4834_v12 = vsel %vm1509_vm3, %v4824_v53, %v4832_v18 }
 0x884   :  { %5442 = vmatmul.mubr.msk.f32.vlgmr.msra.gmra.mrb[46].mxu1 %vm4844_vm9, %v4834_v12  ;;  %5786 = vmatmul.mubr.msk.f32.vlgmr.msra.gmra.mrb[122].mxu0 %vm4844_vm9, %v4834_v12 }
 0x957   :  { %v4914_v42 = vpop.f32.mrb[46].mxu1  ;;  %v4985_v46 = vpop.f32.mrb[122].mxu0 }
 0x958   :  { %v4992_v20 = vrot.slane %v4914_v42, %v7550_v8  ;;  %v5000_v10 = vrot.slane %v4985_v46, %v7550_v8  ;;  %v4916_v47 = vpop.f32.mrb[47].mxu1  ;;  %v5787_v26 = vpop.f32.mrb[123].mxu0  ;;  %v5016_v50 = vrot.slane %v4914_v42, %v7559_v54  ;;  %v5024_v23 = vrot.slane %v4985_v46, %v7559_v54 }
 0x959   :  { %v4996_v31 = vrot.slane %v4916_v47, %v7550_v8  ;;  %v5020_v35 = vrot.slane %v4916_v47, %v7559_v54 }
 0x95a   :  { %v5001_v43 = vmul.f32 %v4992_v20, %v7907_v0  ;;  %v5004_v32 = vmul.f32 %v4992_v20, %v7916_v22  ;;  %v5007_v29 = vmul.f32 %v4992_v20, %v7942_v56  ;;  %v5010_v37 = vmul.f32 %v4992_v20, %v7967_v2 }
 0x95b   :  { %v5003_v3 = vmul.f32 %v5000_v10, %v7996_v44  ;;  %v5006_v40 = vmul.f32 %v5000_v10, %v8017_v13  ;;  %v5009_v33 = vmul.f32 %v5000_v10, %v8037_v63  ;;  %v5012_v45 = vmul.f32 %v5000_v10, %v8065_v34 }
 0x95c   :  { %v5025_v27 = vadd.f32 %v5016_v50, %v5001_v43  ;;  %v5028_v8 = vadd.f32 %v5016_v50, %v5004_v32  ;;  %v5031_v14 = vadd.f32 %v5016_v50, %v5007_v29  ;;  %v5034_v54 = vadd.f32 %v5016_v50, %v5010_v37 }
 0x95d   :  { %v5027_v16 = vadd.f32 %v5024_v23, %v5003_v3  ;;  %v5030_v0 = vadd.f32 %v5024_v23, %v5006_v40  ;;  %v5033_v1 = vadd.f32 %v5024_v23, %v5009_v33  ;;  %v5036_v22 = vadd.f32 %v5024_v23, %v5012_v45 }
 0x95e   :  { %v5037_v41 = vmax.f32 %v5025_v27, 0.0  ;;  %v5040_v56 = vmax.f32 %v5028_v8, 0.0  ;;  %v5043_v9 = vmax.f32 %v5031_v14, 0.0  ;;  %v5046_v2 = vmax.f32 %v5034_v54, 0.0 }
 0x95f   :  { %v5039_v38 = vmax.f32 %v5027_v16, 0.0  ;;  %v5042_v44 = vmax.f32 %v5030_v0, 0.0  ;;  %v5045_v15 = vmax.f32 %v5033_v1, 0.0  ;;  %v5048_v13 = vmax.f32 %v5036_v22, 0.0 }
 0x960   :  { %v5002_v63 = vmul.f32 %v4996_v31, %v7911_v49  ;;  %v5005_v34 = vmul.f32 %v4996_v31, %v7919_v61  ;;  %v5008_v60 = vmul.f32 %v4996_v31, %v7956_v51  ;;  %v5011_v39 = vmul.f32 %v4996_v31, %v7973_v17 }
 0x961   :  { %v5453_v28 = vpack.c.bf16 %v5039_v38, %v5039_v38  ;;  %v5455_v24 = vpack.c.bf16 %v5042_v44, %v5042_v44  ;;  %v5457_v11 = vpack.c.bf16 %v5045_v15, %v5045_v15  ;;  %v5459_v52 = vpack.c.bf16 %v5048_v13, %v5048_v13 }
 0x962   :  { %v5026_v21 = vadd.f32 %v5020_v35, %v5002_v63  ;;  %v5029_v4 = vadd.f32 %v5020_v35, %v5005_v34  ;;  %v5032_v55 = vadd.f32 %v5020_v35, %v5008_v60  ;;  %v5035_v59 = vadd.f32 %v5020_v35, %v5011_v39 }
 0x963   :  { %5090 = vst [vmem:[%s8137_s15 + $0x8] sm:$0xf] %v5453_v28  ;;  %5092 = vst [vmem:[%s8137_s15 + $0x14] sm:$0xf] %v5455_v24 }
 0x964   :  { %5094 = vst [vmem:[%s8137_s15 + $0x20] sm:$0xf] %v5457_v11  ;;  %5096 = vst [vmem:[%s8137_s15 + $0x2c] sm:$0xf] %v5459_v52  ;;  %v5038_v49 = vmax.f32 %v5026_v21, 0.0  ;;  %v5041_v61 = vmax.f32 %v5029_v4, 0.0 }
 0x965   :  { %v5044_v51 = vmax.f32 %v5032_v55, 0.0  ;;  %v5047_v17 = vmax.f32 %v5035_v59, 0.0 }
 0x966   :  { %v5452_v57 = vpack.c.bf16 %v5038_v49, %v5037_v41  ;;  %v5454_v6 = vpack.c.bf16 %v5041_v61, %v5040_v56 }
 0x967   :  { %v5456_v5 = vpack.c.bf16 %v5044_v51, %v5043_v9  ;;  %v5458_v25 = vpack.c.bf16 %v5047_v17, %v5046_v2 }
 0x968   :  { %5089 = vst [vmem:[%s8137_s15] sm:$0xff] %v5452_v57  ;;  %5091 = vst [vmem:[%s8137_s15 + $0xc] sm:$0xff] %v5454_v6 }
 0x969   :  { %5093 = vst [vmem:[%s8137_s15 + $0x18] sm:$0xff] %v5456_v5  ;;  %5095 = vst [vmem:[%s8137_s15 + $0x24] sm:$0xff] %v5458_v25 }
 0x96a   :  { %5101 = vsyncpa [#allocation3], 1 }
 0x96b   :  { %5102 = vsyncpa [#allocation5], 1 }
 0x96c   :  { %5103 = vsyncpa [#allocation8], 1 }
 0x96d   :  { %5104 = vsyncpa [#allocation11], 1 }
 0x96e   :  { %5105 = vsyncpa [#allocation14], 1 }
 0x96f   :  { %5106 = vsyncpa [#allocation17], 1 }
 0x970   :  { %5107 = vsyncpa [#allocation20], 1 }

// kernel: image_model_forward.3
= control target key start
LH: loop header
LB: loop body
LE: loop exit
PB: predicated region body
PF: predicated region fallthrough
CT: control target
= control target key end

     0   :  { %v807_v28 = vlaneseq  ;;  %v5754_v36 = vmov 1966171168   ;;  %s7041_s0 = inlined_call_operand.vmem [shape: bf16[2,6144], index: 0, kind: input, shape index: {}]   ;;  %s7042_s1 = inlined_call_operand.vmem [shape: bf16[6144,10], index: 1, kind: input, shape index: {}]   ;;  %s7043_s2 = inlined_call_operand.vmem [shape: f32[1,10], index: 2, kind: input, shape index: {}]   ;;  %s7044_s3 = inlined_call_operand.hbm [shape: f32[2,10], index: 3, kind: output, shape index: {}]  }
   0x1   :  { %v5340_v0 = vld [vmem:[%s7042_s1 + $0x40] sm:$0xff]   ;;  %v5344_v4 = vld [vmem:[%s7042_s1 + $0x48] sm:$0xff]   ;;  %v5348_v8 = vld [vmem:[%s7042_s1 + $0x50] sm:$0xff]   ;;  %v805_v37 = vunpack.c.l.s4 %v5754_v36 }
   0x2   :  { %v5341_v1 = vld [vmem:[%s7042_s1 + $0xc0] sm:$0xff]   ;;  %4810 = vmatprep.subr.bf16.mxu0 %v5340_v0  ;;  %v5345_v5 = vld [vmem:[%s7042_s1 + $0xc8] sm:$0xff]   ;;  %v5349_v9 = vld [vmem:[%s7042_s1 + $0xd0] sm:$0xff]   ;;  %v808_v33 = vshrl.u32 %v807_v28, 7 }
   0x3   :  { %v5342_v2 = vld [vmem:[%s7042_s1] sm:$0xff]   ;;  %4832 = vmatprep.subr.bf16.mxu1 %v5341_v1  ;;  %v5346_v6 = vld [vmem:[%s7042_s1 + $0x8] sm:$0xff]   ;;  %v5350_v10 = vld [vmem:[%s7042_s1 + $0x10] sm:$0xff]   ;;  %v806_v40 = vunpack.c.0.s8 %v805_v37 }
   0x4   :  { %v5343_v3 = vld [vmem:[%s7042_s1 + $0x80] sm:$0xff]   ;;  %4811 = vmatpush3.bf16.msra.mxu0 %v5342_v2  ;;  %v5347_v7 = vld [vmem:[%s7042_s1 + $0x88] sm:$0xff]   ;;  %v5351_v11 = vld [vmem:[%s7042_s1 + $0x90] sm:$0xff]  }
   0x5   :  { %4833 = vmatpush3.bf16.msra.mxu1 %v5343_v3  ;;  %4812 = vmatprep.subr.bf16.mxu0 %v5344_v4  ;;  %v5352_v12 = vld [vmem:[%s7042_s1 + $0x58] sm:$0xff]   ;;  %v5356_v16 = vld [vmem:[%s7042_s1 + $0x60] sm:$0xff]   ;;  %v5360_v20 = vld [vmem:[%s7042_s1 + $0x68] sm:$0xff]   ;;  %v5881_v41 = vsub.s32 %v806_v40, %v808_v33 }
   0x6   :  { %4834 = vmatprep.subr.bf16.mxu1 %v5345_v5  ;;  %v5353_v13 = vld [vmem:[%s7042_s1 + $0xd8] sm:$0xff]   ;;  %v5357_v17 = vld [vmem:[%s7042_s1 + $0xe0] sm:$0xff]   ;;  %v5361_v21 = vld [vmem:[%s7042_s1 + $0xe8] sm:$0xff]  }
   0x7   :  { %v5354_v14 = vld [vmem:[%s7042_s1 + $0x18] sm:$0xff]   ;;  %v5358_v18 = vld [vmem:[%s7042_s1 + $0x20] sm:$0xff]   ;;  %v5362_v22 = vld [vmem:[%s7042_s1 + $0x28] sm:$0xff]  }
   0x8   :  { %4813 = vmatpush3.bf16.msra.mxu0 %v5346_v6  ;;  %v5355_v15 = vld [vmem:[%s7042_s1 + $0x98] sm:$0xff]   ;;  %v5359_v19 = vld [vmem:[%s7042_s1 + $0xa0] sm:$0xff]   ;;  %v5363_v23 = vld [vmem:[%s7042_s1 + $0xa8] sm:$0xff]  }
   0x9   :  { %4835 = vmatpush3.bf16.msra.mxu1 %v5347_v7  ;;  %4814 = vmatprep.subr.bf16.mxu0 %v5348_v8  ;;  %v5364_v24 = vld [vmem:[%s7042_s1 + $0x70] sm:$0xff]   ;;  %v5368_v29 = vld [vmem:[%s7042_s1 + $0x78] sm:$0xff]   ;;  %v16_v34 = vld [vmem:[%s7041_s0] sm:$0xff] }
   0xa   :  { %4836 = vmatprep.subr.bf16.mxu1 %v5349_v9  ;;  %v5365_v25 = vld [vmem:[%s7042_s1 + $0xf0] sm:$0xff]   ;;  %v5369_v30 = vld [vmem:[%s7042_s1 + $0xf8] sm:$0xff]   ;;  %v5373_v35 = vld [vmem:[%s7042_s1 + $0x140] sm:$0xff]   ;;  %v803_v39 = vcombine.high %v16_v34, %v16_v34  ;;  %v810_v42 = vrot.slane %v16_v34, %v5881_v41 }
   0xb   :  { %v5366_v26 = vld [vmem:[%s7042_s1 + $0x30] sm:$0xff]   ;;  %v5370_v31 = vld [vmem:[%s7042_s1 + $0x38] sm:$0xff]   ;;  %v5374_v38 = vld [vmem:[%s7042_s1 + $0x1c0] sm:$0xff]  }
   0xc   :  { %4815 = vmatpush3.bf16.msra.mxu0 %v5350_v10  ;;  %v5367_v27 = vld [vmem:[%s7042_s1 + $0xb0] sm:$0xff]   ;;  %v5371_v32 = vld [vmem:[%s7042_s1 + $0xb8] sm:$0xff]   ;;  %v5885_v43 = vrot.slane %v803_v39, %v5881_v41  ;;  %v818_v44 = vcombine.high %v810_v42, %v810_v42  ;;  %v826_v45 = vrot.slane %v810_v42, %v5881_v41  ;;  %v5375_v47 = vld [vmem:[%s7042_s1 + $0x100] sm:$0xff]  }
   0xd   :  { %4837 = vmatpush3.bf16.msra.mxu1 %v5351_v11  ;;  %4816 = vmatprep.subr.bf16.mxu0 %v5352_v12  ;;  %v5376_v49 = vld [vmem:[%s7042_s1 + $0x180] sm:$0xff]   ;;  %v5377_v52 = vld [vmem:[%s7042_s1 + $0x148] sm:$0xff]   ;;  %v5381_v58 = vld [vmem:[%s7042_s1 + $0x150] sm:$0xff]  }
   0xe   :  { %4838 = vmatprep.subr.bf16.mxu1 %v5353_v13  ;;  %v819_v46 = vcombine.high %v5885_v43, %v5885_v43  ;;  %v840_v48 = vrot.slane %v818_v44, %v5881_v41  ;;  %v848_v51 = vcombine.high %v826_v45, %v826_v45  ;;  %v5378_v54 = vld [vmem:[%s7042_s1 + $0x1c8] sm:$0xff]   ;;  %v5382_v59 = vld [vmem:[%s7042_s1 + $0x1d0] sm:$0xff]   ;;  %v5385_v62 = vld [vmem:[%s7042_s1 + $0x158] sm:$0xff]  }
   0xf   :  { %v5379_v55 = vld [vmem:[%s7042_s1 + $0x108] sm:$0xff]   ;;  %v5383_v60 = vld [vmem:[%s7042_s1 + $0x110] sm:$0xff]   ;;  %v5386_v63 = vld [vmem:[%s7042_s1 + $0x1d8] sm:$0xff]  }
  0x10   :  { %4817 = vmatpush3.bf16.msra.mxu0 %v5354_v14  ;;  %v847_v50 = vrot.slane %v819_v46, %v5881_v41  ;;  %3481 = vmatprep.mubr.bf16.mxu0 %v840_v48  ;;  %v850_v53 = vcombine.high %v840_v48, %v840_v48  ;;  %v5380_v57 = vld [vmem:[%s7042_s1 + $0x188] sm:$0xff]   ;;  %v5384_v61 = vld [vmem:[%s7042_s1 + $0x190] sm:$0xff]   ;;  %v5387_v0 = vld [vmem:[%s7042_s1 + $0x118] sm:$0xff]  }
  0x11   :  { %4839 = vmatpush3.bf16.msra.mxu1 %v5355_v15  ;;  %4818 = vmatprep.subr.bf16.mxu0 %v5356_v16  ;;  %v5388_v1 = vld [vmem:[%s7042_s1 + $0x198] sm:$0xff]   ;;  %v5389_v2 = vld [vmem:[%s7042_s1 + $0x160] sm:$0xff]   ;;  %v5393_v6 = vld [vmem:[%s7042_s1 + $0x168] sm:$0xff]  }
  0x12   :  { %4840 = vmatprep.subr.bf16.mxu1 %v5357_v17  ;;  %v851_v56 = vcombine.high %v847_v50, %v847_v50  ;;  %3521 = vmatprep.mubr.bf16.mxu1 %v850_v53  ;;  %v5390_v3 = vld [vmem:[%s7042_s1 + $0x1e0] sm:$0xff]   ;;  %v5394_v7 = vld [vmem:[%s7042_s1 + $0x1e8] sm:$0xff]   ;;  %v5397_v10 = vld [vmem:[%s7042_s1 + $0x170] sm:$0xff]  }
  0x13   :  { %v5391_v4 = vld [vmem:[%s7042_s1 + $0x120] sm:$0xff]   ;;  %v5395_v8 = vld [vmem:[%s7042_s1 + $0x128] sm:$0xff]   ;;  %v5398_v11 = vld [vmem:[%s7042_s1 + $0x1f0] sm:$0xff]  }
  0x14   :  { %4819 = vmatpush3.bf16.msra.mxu0 %v5358_v18  ;;  %v5392_v5 = vld [vmem:[%s7042_s1 + $0x1a0] sm:$0xff]   ;;  %v5396_v9 = vld [vmem:[%s7042_s1 + $0x1a8] sm:$0xff]   ;;  %v5399_v12 = vld [vmem:[%s7042_s1 + $0x130] sm:$0xff]   ;;  %v833_v18 = vrot.slane %v5885_v43, %v5881_v41 }
  0x15   :  { %4841 = vmatpush3.bf16.msra.mxu1 %v5359_v19  ;;  %4820 = vmatprep.subr.bf16.mxu0 %v5360_v20  ;;  %v5400_v13 = vld [vmem:[%s7042_s1 + $0x1b0] sm:$0xff]   ;;  %v5401_v14 = vld [vmem:[%s7042_s1 + $0x178] sm:$0xff]   ;;  %v5405_v19 = vld [vmem:[%s7042_s1 + $0x240] sm:$0xff]  }
  0x16   :  { %4842 = vmatprep.subr.bf16.mxu1 %v5361_v21  ;;  %v5402_v15 = vld [vmem:[%s7042_s1 + $0x1f8] sm:$0xff]   ;;  %v5406_v20 = vld [vmem:[%s7042_s1 + $0x2c0] sm:$0xff]   ;;  %v5413_v28 = vld [vmem:[%s7042_s1 + $0x250] sm:$0xff]  }
  0x17   :  { %v5403_v16 = vld [vmem:[%s7042_s1 + $0x138] sm:$0xff]   ;;  %v5407_v21 = vld [vmem:[%s7042_s1 + $0x200] sm:$0xff]   ;;  %v5425_v40 = vld [vmem:[%s7042_s1 + $0x268] sm:$0xff]  }
  0x18   :  { %4821 = vmatpush3.bf16.msra.mxu0 %v5362_v22  ;;  %v5404_v17 = vld [vmem:[%s7042_s1 + $0x1b8] sm:$0xff]   ;;  %v5408_v22 = vld [vmem:[%s7042_s1 + $0x280] sm:$0xff]   ;;  %v5426_v42 = vld [vmem:[%s7042_s1 + $0x2e8] sm:$0xff]  }
  0x19   :  { %4843 = vmatpush3.bf16.msra.mxu1 %v5363_v23  ;;  %4822 = vmatprep.subr.bf16.mxu0 %v5364_v24  ;;  %v849_v23 = vcombine.high %v833_v18, %v833_v18  ;;  %v5409_v24 = vld [vmem:[%s7042_s1 + $0x248] sm:$0xff]   ;;  %v5418_v33 = vld [vmem:[%s7042_s1 + $0x2d8] sm:$0xff]   ;;  %v5421_v36 = vld [vmem:[%s7042_s1 + $0x260] sm:$0xff]  }
  0x1a   :  { %4844 = vmatprep.subr.bf16.mxu1 %v5365_v25  ;;  %v5410_v25 = vld [vmem:[%s7042_s1 + $0x2c8] sm:$0xff]   ;;  %v5419_v34 = vld [vmem:[%s7042_s1 + $0x218] sm:$0xff]   ;;  %v5422_v37 = vld [vmem:[%s7042_s1 + $0x2e0] sm:$0xff]  }
  0x1b   :  { %v5424_v39 = vld [vmem:[%s7042_s1 + $0x2a0] sm:$0xff]   ;;  %v5427_v43 = vld [vmem:[%s7042_s1 + $0x228] sm:$0xff]  }
  0x1c   :  { %4823 = vmatpush3.bf16.msra.mxu0 %v5366_v26  ;;  %v5411_v26 = vld [vmem:[%s7042_s1 + $0x208] sm:$0xff]  }
  0x1d   :  { %4845 = vmatpush3.bf16.msra.mxu1 %v5367_v27  ;;  %4824 = vmatprep.subr.bf16.mxu0 %v5368_v29  ;;  %v5412_v27 = vld [vmem:[%s7042_s1 + $0x288] sm:$0xff]   ;;  %v5414_v29 = vld [vmem:[%s7042_s1 + $0x2d0] sm:$0xff]  }
  0x1e   :  { %4846 = vmatprep.subr.bf16.mxu1 %v5369_v30  ;;  %v5415_v30 = vld [vmem:[%s7042_s1 + $0x210] sm:$0xff]   ;;  %v5428_v44 = vld [vmem:[%s7042_s1 + $0x2a8] sm:$0xff]  }
  0x1f   :  { %v17_v46 = vld [vmem:[%s7041_s0 + $0x8] sm:$0xff] }
  0x20   :  { %4825 = vmatpush3.bf16.msra.mxu0 %v5370_v31  ;;  %v5416_v31 = vld [vmem:[%s7042_s1 + $0x290] sm:$0xff]   ;;  %v859_v48 = vrot.slane %v17_v46, %v5881_v41 }
  0x21   :  { %4847 = vmatpush3.bf16.msra.mxu1 %v5371_v32  ;;  %4854 = vmatprep.subr.bf16.mxu0 %v5373_v35  ;;  %v5417_v32 = vld [vmem:[%s7042_s1 + $0x258] sm:$0xff]  }
  0x22   :  { %4876 = vmatprep.subr.bf16.mxu1 %v5374_v38  ;;  %v5420_v35 = vld [vmem:[%s7042_s1 + $0x298] sm:$0xff]   ;;  %v5423_v38 = vld [vmem:[%s7042_s1 + $0x220] sm:$0xff]  }
  0x23   :  { %3482 = vmatmul.mubr.bf16.vlgmr.msra.gmra.mrb[0].mxu0 %v826_v45  ;;  %v5429_v45 = vld [vmem:[%s7042_s1 + $0x270] sm:$0xff]  }
  0x24   :  { %4855 = vmatpush3.bf16.msra.mxu0 %v5375_v47  ;;  %3522 = vmatmul.mubr.bf16.vlgmr.msra.gmra.mrb[0].mxu1 %v848_v51  ;;  %v5430_v47 = vld [vmem:[%s7042_s1 + $0x2f0] sm:$0xff]  }
  0x25   :  { %4856 = vmatprep.subr.bf16.mxu0 %v5377_v52  ;;  %4877 = vmatpush3.bf16.msra.mxu1 %v5376_v49  ;;  %v852_v49 = vcombine.high %v17_v46, %v17_v46  ;;  %v5432_v51 = vld [vmem:[%s7042_s1 + $0x2b0] sm:$0xff]   ;;  %v867_v52 = vcombine.high %v859_v48, %v859_v48 }
  0x26   :  { %3561 = vmatprep.mubr.bf16.mxu0 %v847_v50  ;;  %4878 = vmatprep.subr.bf16.mxu1 %v5378_v54  ;;  %v5431_v50 = vld [vmem:[%s7042_s1 + $0x230] sm:$0xff]   ;;  %v5433_v54 = vld [vmem:[%s7042_s1 + $0x278] sm:$0xff]  }
  0x27   :  { %3601 = vmatprep.mubr.bf16.mxu1 %v851_v56  ;;  %v6073_v53 = vrot.slane %v852_v49, %v5881_v41  ;;  %v889_v56 = vrot.slane %v867_v52, %v5881_v41  ;;  %v5480_v46 = vld [vmem:[%s7042_s1 + $0x410] sm:$0xff]   ;;  %v5483_v49 = vld [vmem:[%s7042_s1 + $0x4d8] sm:$0xff]   ;;  %v5486_v52 = vld [vmem:[%s7042_s1 + $0x460] sm:$0xff]  }
  0x28   :  { %4857 = vmatpush3.bf16.msra.mxu0 %v5379_v55  ;;  %v5434_v55 = vld [vmem:[%s7042_s1 + $0x2f8] sm:$0xff]  }
  0x29   :  { %4858 = vmatprep.subr.bf16.mxu0 %v5381_v58  ;;  %4879 = vmatpush3.bf16.msra.mxu1 %v5380_v57  ;;  %v868_v57 = vcombine.high %v6073_v53, %v6073_v53  ;;  %v5435_v58 = vld [vmem:[%s7042_s1 + $0x238] sm:$0xff]  }
  0x2a   :  { %4880 = vmatprep.subr.bf16.mxu1 %v5382_v59  ;;  %v5436_v59 = vld [vmem:[%s7042_s1 + $0x2b8] sm:$0xff]  }
  0x2c   :  { %4859 = vmatpush3.bf16.msra.mxu0 %v5383_v60  ;;  %v899_v60 = vcombine.high %v889_v56, %v889_v56 }
  0x2d   :  { %4860 = vmatprep.subr.bf16.mxu0 %v5385_v62  ;;  %4881 = vmatpush3.bf16.msra.mxu1 %v5384_v61  ;;  %v875_v61 = vrot.slane %v859_v48, %v5881_v41  ;;  %v5437_v62 = vld [vmem:[%s7042_s1 + $0x340] sm:$0xff]   ;;  %v5482_v48 = vld [vmem:[%s7042_s1 + $0x458] sm:$0xff]  }
  0x2e   :  { %4882 = vmatprep.subr.bf16.mxu1 %v5386_v63  ;;  %v5438_v63 = vld [vmem:[%s7042_s1 + $0x3c0] sm:$0xff]  }
  0x30   :  { %4861 = vmatpush3.bf16.msra.mxu0 %v5387_v0  ;;  %v896_v0 = vrot.slane %v868_v57, %v5881_v41  ;;  %v5491_v57 = vld [vmem:[%s7042_s1 + $0x4e8] sm:$0xff]  }
  0x31   :  { %4862 = vmatprep.subr.bf16.mxu0 %v5389_v2  ;;  %4883 = vmatpush3.bf16.msra.mxu1 %v5388_v1  ;;  %v5439_v1 = vld [vmem:[%s7042_s1 + $0x300] sm:$0xff]  }
  0x32   :  { %4884 = vmatprep.subr.bf16.mxu1 %v5390_v3  ;;  %v5440_v2 = vld [vmem:[%s7042_s1 + $0x380] sm:$0xff]   ;;  %v897_v3 = vcombine.high %v875_v61, %v875_v61 }
  0x34   :  { %4863 = vmatpush3.bf16.msra.mxu0 %v5391_v4  ;;  %v5441_v4 = vld [vmem:[%s7042_s1 + $0x348] sm:$0xff]  }
  0x35   :  { %4864 = vmatprep.subr.bf16.mxu0 %v5393_v6  ;;  %4885 = vmatpush3.bf16.msra.mxu1 %v5392_v5  ;;  %v5442_v5 = vld [vmem:[%s7042_s1 + $0x3c8] sm:$0xff]   ;;  %v900_v6 = vcombine.high %v896_v0, %v896_v0 }
  0x36   :  { %4886 = vmatprep.subr.bf16.mxu1 %v5394_v7  ;;  %v5443_v7 = vld [vmem:[%s7042_s1 + $0x308] sm:$0xff]  }
  0x38   :  { %4865 = vmatpush3.bf16.msra.mxu0 %v5395_v8  ;;  %v5444_v8 = vld [vmem:[%s7042_s1 + $0x388] sm:$0xff]  }
  0x39   :  { %4866 = vmatprep.subr.bf16.mxu0 %v5397_v10  ;;  %4887 = vmatpush3.bf16.msra.mxu1 %v5396_v9  ;;  %v5445_v9 = vld [vmem:[%s7042_s1 + $0x350] sm:$0xff]  }
  0x3a   :  { %4888 = vmatprep.subr.bf16.mxu1 %v5398_v11  ;;  %v5446_v10 = vld [vmem:[%s7042_s1 + $0x3d0] sm:$0xff]  }
  0x3b   :  { %v5447_v11 = vld [vmem:[%s7042_s1 + $0x310] sm:$0xff]  }
  0x3c   :  { %4867 = vmatpush3.bf16.msra.mxu0 %v5399_v12  ;;  %v5448_v12 = vld [vmem:[%s7042_s1 + $0x390] sm:$0xff]  }
  0x3d   :  { %4868 = vmatprep.subr.bf16.mxu0 %v5401_v14  ;;  %4889 = vmatpush3.bf16.msra.mxu1 %v5400_v13  ;;  %v5449_v13 = vld [vmem:[%s7042_s1 + $0x358] sm:$0xff]  }
  0x3e   :  { %4890 = vmatprep.subr.bf16.mxu1 %v5402_v15  ;;  %v5450_v14 = vld [vmem:[%s7042_s1 + $0x3d8] sm:$0xff]  }
  0x3f   :  { %v5451_v15 = vld [vmem:[%s7042_s1 + $0x318] sm:$0xff]  }
  0x40   :  { %4869 = vmatpush3.bf16.msra.mxu0 %v5403_v16  ;;  %v5452_v16 = vld [vmem:[%s7042_s1 + $0x398] sm:$0xff]  }
  0x41   :  { %4898 = vmatprep.subr.bf16.mxu0 %v5405_v19  ;;  %4891 = vmatpush3.bf16.msra.mxu1 %v5404_v17  ;;  %v5453_v17 = vld [vmem:[%s7042_s1 + $0x360] sm:$0xff]  }
  0x42   :  { %4920 = vmatprep.subr.bf16.mxu1 %v5406_v20  ;;  %v5455_v19 = vld [vmem:[%s7042_s1 + $0x320] sm:$0xff]  }
  0x43   :  { %3562 = vmatmul.mubr.bf16.vlgmr.msra.gmra.mrb[4].mxu0 %v833_v18  ;;  %v5454_v18 = vld [vmem:[%s7042_s1 + $0x3e0] sm:$0xff]  }
  0x44   :  { %4899 = vmatpush3.bf16.msra.mxu0 %v5407_v21  ;;  %3602 = vmatmul.mubr.bf16.vlgmr.msra.gmra.mrb[4].mxu1 %v849_v23  ;;  %v5456_v20 = vld [vmem:[%s7042_s1 + $0x3a0] sm:$0xff]   ;;  %v5457_v21 = vld [vmem:[%s7042_s1 + $0x368] sm:$0xff]  }
  0x45   :  { %4900 = vmatprep.subr.bf16.mxu0 %v5409_v24  ;;  %4921 = vmatpush3.bf16.msra.mxu1 %v5408_v22  ;;  %v5458_v22 = vld [vmem:[%s7042_s1 + $0x3e8] sm:$0xff]  }
  0x46   :  { %4922 = vmatprep.subr.bf16.mxu1 %v5410_v25  ;;  %3641 = vmatprep.mubr.bf16.mxu0 %v889_v56  ;;  %v5459_v23 = vld [vmem:[%s7042_s1 + $0x328] sm:$0xff]   ;;  %v5461_v25 = vld [vmem:[%s7042_s1 + $0x370] sm:$0xff]  }
  0x47   :  { %3681 = vmatprep.mubr.bf16.mxu1 %v899_v60  ;;  %v5460_v24 = vld [vmem:[%s7042_s1 + $0x3a8] sm:$0xff]   ;;  %v5494_v60 = vld [vmem:[%s7042_s1 + $0x470] sm:$0xff]  }
  0x48   :  { %4901 = vmatpush3.bf16.msra.mxu0 %v5411_v26  ;;  %v5462_v26 = vld [vmem:[%s7042_s1 + $0x3f0] sm:$0xff]   ;;  %v5490_v56 = vld [vmem:[%s7042_s1 + $0x468] sm:$0xff]  }
  0x49   :  { %4902 = vmatprep.subr.bf16.mxu0 %v5413_v28  ;;  %4923 = vmatpush3.bf16.msra.mxu1 %v5412_v27  ;;  %v5463_v27 = vld [vmem:[%s7042_s1 + $0x330] sm:$0xff]  }
  0x4a   :  { %4924 = vmatprep.subr.bf16.mxu1 %v5414_v29  ;;  %v5464_v28 = vld [vmem:[%s7042_s1 + $0x3b0] sm:$0xff]   ;;  %v5465_v29 = vld [vmem:[%s7042_s1 + $0x378] sm:$0xff]  }
  0x4c   :  { %4903 = vmatpush3.bf16.msra.mxu0 %v5415_v30  ;;  %v5466_v30 = vld [vmem:[%s7042_s1 + $0x3f8] sm:$0xff]  }
  0x4d   :  { %4904 = vmatprep.subr.bf16.mxu0 %v5417_v32  ;;  %4925 = vmatpush3.bf16.msra.mxu1 %v5416_v31  ;;  %v5467_v31 = vld [vmem:[%s7042_s1 + $0x338] sm:$0xff]  }
  0x4e   :  { %4926 = vmatprep.subr.bf16.mxu1 %v5418_v33  ;;  %v5468_v32 = vld [vmem:[%s7042_s1 + $0x3b8] sm:$0xff]   ;;  %v882_v33 = vrot.slane %v6073_v53, %v5881_v41  ;;  %v5487_v53 = vld [vmem:[%s7042_s1 + $0x4e0] sm:$0xff]  }
  0x50   :  { %4905 = vmatpush3.bf16.msra.mxu0 %v5419_v34  ;;  %v5470_v34 = vld [vmem:[%s7042_s1 + $0x440] sm:$0xff]  }
  0x51   :  { %4906 = vmatprep.subr.bf16.mxu0 %v5421_v36  ;;  %4927 = vmatpush3.bf16.msra.mxu1 %v5420_v35  ;;  %v5471_v35 = vld [vmem:[%s7042_s1 + $0x4c0] sm:$0xff]  }
  0x52   :  { %4928 = vmatprep.subr.bf16.mxu1 %v5422_v37  ;;  %v5472_v36 = vld [vmem:[%s7042_s1 + $0x400] sm:$0xff]  }
  0x53   :  { %v5473_v37 = vld [vmem:[%s7042_s1 + $0x480] sm:$0xff]  }
  0x54   :  { %4907 = vmatpush3.bf16.msra.mxu0 %v5423_v38  ;;  %v898_v38 = vcombine.high %v882_v33, %v882_v33 }
  0x55   :  { %4908 = vmatprep.subr.bf16.mxu0 %v5425_v40  ;;  %4929 = vmatpush3.bf16.msra.mxu1 %v5424_v39  ;;  %v5474_v39 = vld [vmem:[%s7042_s1 + $0x448] sm:$0xff]  }
  0x56   :  { %4930 = vmatprep.subr.bf16.mxu1 %v5426_v42  ;;  %v5475_v40 = vld [vmem:[%s7042_s1 + $0x4c8] sm:$0xff]  }
  0x57   :  { %v5476_v42 = vld [vmem:[%s7042_s1 + $0x408] sm:$0xff]  }
  0x58   :  { %4909 = vmatpush3.bf16.msra.mxu0 %v5427_v43  ;;  %v5477_v43 = vld [vmem:[%s7042_s1 + $0x488] sm:$0xff]  }
  0x59   :  { %4910 = vmatprep.subr.bf16.mxu0 %v5429_v45  ;;  %4931 = vmatpush3.bf16.msra.mxu1 %v5428_v44  ;;  %v5478_v44 = vld [vmem:[%s7042_s1 + $0x450] sm:$0xff]  }
  0x5a   :  { %4932 = vmatprep.subr.bf16.mxu1 %v5430_v47  ;;  %v5479_v45 = vld [vmem:[%s7042_s1 + $0x4d0] sm:$0xff]  }
  0x5b   :  { %v5481_v47 = vld [vmem:[%s7042_s1 + $0x490] sm:$0xff]  }
  0x5c   :  { %4911 = vmatpush3.bf16.msra.mxu0 %v5431_v50  ;;  %v5484_v50 = vld [vmem:[%s7042_s1 + $0x418] sm:$0xff]  }
  0x5d   :  { %4912 = vmatprep.subr.bf16.mxu0 %v5433_v54  ;;  %4933 = vmatpush3.bf16.msra.mxu1 %v5432_v51  ;;  %v5485_v51 = vld [vmem:[%s7042_s1 + $0x498] sm:$0xff]   ;;  %v5488_v54 = vld [vmem:[%s7042_s1 + $0x420] sm:$0xff]  }
  0x5e   :  { %4934 = vmatprep.subr.bf16.mxu1 %v5434_v55  ;;  %v5489_v55 = vld [vmem:[%s7042_s1 + $0x4a0] sm:$0xff]  }
  0x60   :  { %4913 = vmatpush3.bf16.msra.mxu0 %v5435_v58  ;;  %v5492_v58 = vld [vmem:[%s7042_s1 + $0x428] sm:$0xff]  }
  0x61   :  { %4942 = vmatprep.subr.bf16.mxu0 %v5437_v62  ;;  %4935 = vmatpush3.bf16.msra.mxu1 %v5436_v59  ;;  %v5493_v59 = vld [vmem:[%s7042_s1 + $0x4a8] sm:$0xff]   ;;  %v5495_v62 = vld [vmem:[%s7042_s1 + $0x4f0] sm:$0xff]  }
  0x62   :  { %4964 = vmatprep.subr.bf16.mxu1 %v5438_v63 }
  0x63   :  { %3642 = vmatmul.mubr.bf16.vlgmr.msra.gmra.mrb[8].mxu0 %v875_v61  ;;  %v18_v61 = vld [vmem:[%s7041_s0 + $0x10] sm:$0xff] }
  0x64   :  { %4943 = vmatpush3.bf16.msra.mxu0 %v5439_v1  ;;  %3721 = vmatprep.mubr.bf16.mxu0 %v896_v0  ;;  %v908_v63 = vrot.slane %v18_v61, %v5881_v41  ;;  %v901_v0 = vcombine.high %v18_v61, %v18_v61  ;;  %v5496_v1 = vld [vmem:[%s7042_s1 + $0x430] sm:$0xff]  }
  0x65   :  { %3682 = vmatmul.mubr.bf16.vlgmr.msra.gmra.mrb[8].mxu1 %v897_v3  ;;  %4944 = vmatprep.subr.bf16.mxu0 %v5441_v4  ;;  %v5545_v61 = vld [vmem:[%s7042_s1 + $0x610] sm:$0xff]  }
  0x66   :  { %4965 = vmatpush3.bf16.msra.mxu1 %v5440_v2  ;;  %3761 = vmatprep.mubr.bf16.mxu1 %v900_v6  ;;  %v5497_v2 = vld [vmem:[%s7042_s1 + $0x4b0] sm:$0xff]   ;;  %v916_v3 = vcombine.high %v908_v63, %v908_v63  ;;  %v6279_v4 = vrot.slane %v901_v0, %v5881_v41  ;;  %v5499_v6 = vld [vmem:[%s7042_s1 + $0x4f8] sm:$0xff]  }
  0x67   :  { %4966 = vmatprep.subr.bf16.mxu1 %v5442_v5  ;;  %v5498_v5 = vld [vmem:[%s7042_s1 + $0x478] sm:$0xff]  }
  0x68   :  { %4945 = vmatpush3.bf16.msra.mxu0 %v5443_v7  ;;  %v938_v7 = vrot.slane %v916_v3, %v5881_v41  ;;  %v5548_v0 = vld [vmem:[%s7042_s1 + $0x6d8] sm:$0xff]   ;;  %v5551_v3 = vld [vmem:[%s7042_s1 + $0x660] sm:$0xff]  }
  0x69   :  { %4946 = vmatprep.subr.bf16.mxu0 %v5445_v9  ;;  %v5500_v9 = vld [vmem:[%s7042_s1 + $0x438] sm:$0xff]  }
  0x6a   :  { %4967 = vmatpush3.bf16.msra.mxu1 %v5444_v8  ;;  %v917_v8 = vcombine.high %v6279_v4, %v6279_v4 }
  0x6b   :  { %4968 = vmatprep.subr.bf16.mxu1 %v5446_v10  ;;  %v5501_v10 = vld [vmem:[%s7042_s1 + $0x4b8] sm:$0xff]  }
  0x6c   :  { %4947 = vmatpush3.bf16.msra.mxu0 %v5447_v11  ;;  %v948_v11 = vcombine.high %v938_v7, %v938_v7 }
  0x6d   :  { %4948 = vmatprep.subr.bf16.mxu0 %v5449_v13  ;;  %v5502_v13 = vld [vmem:[%s7042_s1 + $0x540] sm:$0xff]  }
  0x6e   :  { %4969 = vmatpush3.bf16.msra.mxu1 %v5448_v12  ;;  %v924_v12 = vrot.slane %v908_v63, %v5881_v41  ;;  %v5547_v63 = vld [vmem:[%s7042_s1 + $0x658] sm:$0xff]  }
  0x6f   :  { %4970 = vmatprep.subr.bf16.mxu1 %v5450_v14  ;;  %v5503_v14 = vld [vmem:[%s7042_s1 + $0x5c0] sm:$0xff]  }
  0x70   :  { %4949 = vmatpush3.bf16.msra.mxu0 %v5451_v15  ;;  %v945_v15 = vrot.slane %v917_v8, %v5881_v41  ;;  %v5556_v8 = vld [vmem:[%s7042_s1 + $0x6e8] sm:$0xff]  }
  0x71   :  { %4950 = vmatprep.subr.bf16.mxu0 %v5453_v17  ;;  %v5505_v17 = vld [vmem:[%s7042_s1 + $0x580] sm:$0xff]  }
  0x72   :  { %4971 = vmatpush3.bf16.msra.mxu1 %v5452_v16  ;;  %v5504_v16 = vld [vmem:[%s7042_s1 + $0x500] sm:$0xff]  }
  0x73   :  { %4972 = vmatprep.subr.bf16.mxu1 %v5454_v18  ;;  %v946_v18 = vcombine.high %v924_v12, %v924_v12 }
  0x74   :  { %4951 = vmatpush3.bf16.msra.mxu0 %v5455_v19  ;;  %v5506_v19 = vld [vmem:[%s7042_s1 + $0x548] sm:$0xff]  }
  0x75   :  { %4952 = vmatprep.subr.bf16.mxu0 %v5457_v21  ;;  %v949_v21 = vcombine.high %v945_v15, %v945_v15 }
  0x76   :  { %4973 = vmatpush3.bf16.msra.mxu1 %v5456_v20  ;;  %v5507_v20 = vld [vmem:[%s7042_s1 + $0x5c8] sm:$0xff]  }
  0x77   :  { %4974 = vmatprep.subr.bf16.mxu1 %v5458_v22  ;;  %v5508_v22 = vld [vmem:[%s7042_s1 + $0x508] sm:$0xff]  }
  0x78   :  { %4953 = vmatpush3.bf16.msra.mxu0 %v5459_v23  ;;  %v5509_v23 = vld [vmem:[%s7042_s1 + $0x588] sm:$0xff]  }
  0x79   :  { %4954 = vmatprep.subr.bf16.mxu0 %v5461_v25  ;;  %v5511_v25 = vld [vmem:[%s7042_s1 + $0x5d0] sm:$0xff]  }
  0x7a   :  { %4975 = vmatpush3.bf16.msra.mxu1 %v5460_v24  ;;  %v5510_v24 = vld [vmem:[%s7042_s1 + $0x550] sm:$0xff]  }
  0x7b   :  { %4976 = vmatprep.subr.bf16.mxu1 %v5462_v26  ;;  %v5512_v26 = vld [vmem:[%s7042_s1 + $0x510] sm:$0xff]  }
  0x7c   :  { %4955 = vmatpush3.bf16.msra.mxu0 %v5463_v27  ;;  %v5513_v27 = vld [vmem:[%s7042_s1 + $0x590] sm:$0xff]  }
  0x7d   :  { %4956 = vmatprep.subr.bf16.mxu0 %v5465_v29  ;;  %v5515_v29 = vld [vmem:[%s7042_s1 + $0x5d8] sm:$0xff]  }
  0x7e   :  { %4977 = vmatpush3.bf16.msra.mxu1 %v5464_v28  ;;  %v5514_v28 = vld [vmem:[%s7042_s1 + $0x558] sm:$0xff]  }
  0x7f   :  { %4978 = vmatprep.subr.bf16.mxu1 %v5466_v30  ;;  %v5516_v30 = vld [vmem:[%s7042_s1 + $0x518] sm:$0xff]  }
  0x80   :  { %4957 = vmatpush3.bf16.msra.mxu0 %v5467_v31  ;;  %v5517_v31 = vld [vmem:[%s7042_s1 + $0x598] sm:$0xff]  }
  0x81   :  { %4986 = vmatprep.subr.bf16.mxu0 %v5470_v34  ;;  %v5520_v34 = vld [vmem:[%s7042_s1 + $0x520] sm:$0xff]  }
  0x82   :  { %4979 = vmatpush3.bf16.msra.mxu1 %v5468_v32  ;;  %v5518_v32 = vld [vmem:[%s7042_s1 + $0x560] sm:$0xff]  }
  0x83   :  { %3722 = vmatmul.mubr.bf16.vlgmr.msra.gmra.mrb[12].mxu0 %v882_v33  ;;  %5008 = vmatprep.subr.bf16.mxu1 %v5471_v35  ;;  %v5519_v33 = vld [vmem:[%s7042_s1 + $0x5e0] sm:$0xff]  }
  0x84   :  { %4987 = vmatpush3.bf16.msra.mxu0 %v5472_v36  ;;  %3801 = vmatprep.mubr.bf16.mxu0 %v938_v7  ;;  %v5521_v35 = vld [vmem:[%s7042_s1 + $0x5a0] sm:$0xff]   ;;  %v5522_v36 = vld [vmem:[%s7042_s1 + $0x568] sm:$0xff]  }
  0x85   :  { %3762 = vmatmul.mubr.bf16.vlgmr.msra.gmra.mrb[12].mxu1 %v898_v38  ;;  %4988 = vmatprep.subr.bf16.mxu0 %v5474_v39  ;;  %v5524_v38 = vld [vmem:[%s7042_s1 + $0x528] sm:$0xff]  }
  0x86   :  { %5009 = vmatpush3.bf16.msra.mxu1 %v5473_v37  ;;  %3841 = vmatprep.mubr.bf16.mxu1 %v948_v11  ;;  %v5523_v37 = vld [vmem:[%s7042_s1 + $0x5e8] sm:$0xff]   ;;  %v5559_v11 = vld [vmem:[%s7042_s1 + $0x670] sm:$0xff]  }
  0x87   :  { %5010 = vmatprep.subr.bf16.mxu1 %v5475_v40  ;;  %v5525_v39 = vld [vmem:[%s7042_s1 + $0x5a8] sm:$0xff]   ;;  %v5526_v40 = vld [vmem:[%s7042_s1 + $0x570] sm:$0xff]  }
  0x88   :  { %4989 = vmatpush3.bf16.msra.mxu0 %v5476_v42  ;;  %v5527_v42 = vld [vmem:[%s7042_s1 + $0x5f0] sm:$0xff]   ;;  %v5555_v7 = vld [vmem:[%s7042_s1 + $0x668] sm:$0xff]  }
  0x89   :  { %4990 = vmatprep.subr.bf16.mxu0 %v5478_v44  ;;  %v5529_v44 = vld [vmem:[%s7042_s1 + $0x5b0] sm:$0xff]  }
  0x8a   :  { %5011 = vmatpush3.bf16.msra.mxu1 %v5477_v43  ;;  %v5528_v43 = vld [vmem:[%s7042_s1 + $0x530] sm:$0xff]  }
  0x8b   :  { %5012 = vmatprep.subr.bf16.mxu1 %v5479_v45  ;;  %v5530_v45 = vld [vmem:[%s7042_s1 + $0x578] sm:$0xff]  }
  0x8c   :  { %4991 = vmatpush3.bf16.msra.mxu0 %v5480_v46  ;;  %v5531_v46 = vld [vmem:[%s7042_s1 + $0x5f8] sm:$0xff]  }
  0x8d   :  { %4992 = vmatprep.subr.bf16.mxu0 %v5482_v48  ;;  %v5533_v48 = vld [vmem:[%s7042_s1 + $0x5b8] sm:$0xff]  }
  0x8e   :  { %5013 = vmatpush3.bf16.msra.mxu1 %v5481_v47  ;;  %v5532_v47 = vld [vmem:[%s7042_s1 + $0x538] sm:$0xff]  }
  0x8f   :  { %5014 = vmatprep.subr.bf16.mxu1 %v5483_v49  ;;  %v931_v49 = vrot.slane %v6279_v4, %v5881_v41  ;;  %v5552_v4 = vld [vmem:[%s7042_s1 + $0x6e0] sm:$0xff]  }
  0x90   :  { %4993 = vmatpush3.bf16.msra.mxu0 %v5484_v50  ;;  %v5535_v50 = vld [vmem:[%s7042_s1 + $0x640] sm:$0xff]  }
  0x91   :  { %4994 = vmatprep.subr.bf16.mxu0 %v5486_v52  ;;  %v5537_v52 = vld [vmem:[%s7042_s1 + $0x600] sm:$0xff]  }
  0x92   :  { %5015 = vmatpush3.bf16.msra.mxu1 %v5485_v51  ;;  %v5536_v51 = vld [vmem:[%s7042_s1 + $0x6c0] sm:$0xff]  }
  0x93   :  { %5016 = vmatprep.subr.bf16.mxu1 %v5487_v53  ;;  %v5538_v53 = vld [vmem:[%s7042_s1 + $0x680] sm:$0xff]  }
  0x94   :  { %4995 = vmatpush3.bf16.msra.mxu0 %v5488_v54  ;;  %v947_v54 = vcombine.high %v931_v49, %v931_v49 }
  0x95   :  { %4996 = vmatprep.subr.bf16.mxu0 %v5490_v56  ;;  %v5540_v56 = vld [vmem:[%s7042_s1 + $0x6c8] sm:$0xff]  }
  0x96   :  { %5017 = vmatpush3.bf16.msra.mxu1 %v5489_v55  ;;  %v5539_v55 = vld [vmem:[%s7042_s1 + $0x648] sm:$0xff]  }
  0x97   :  { %5018 = vmatprep.subr.bf16.mxu1 %v5491_v57  ;;  %v5541_v57 = vld [vmem:[%s7042_s1 + $0x608] sm:$0xff]  }
  0x98   :  { %4997 = vmatpush3.bf16.msra.mxu0 %v5492_v58  ;;  %v5542_v58 = vld [vmem:[%s7042_s1 + $0x688] sm:$0xff]  }
  0x99   :  { %4998 = vmatprep.subr.bf16.mxu0 %v5494_v60  ;;  %v5544_v60 = vld [vmem:[%s7042_s1 + $0x6d0] sm:$0xff]  }
  0x9a   :  { %5019 = vmatpush3.bf16.msra.mxu1 %v5493_v59  ;;  %v5543_v59 = vld [vmem:[%s7042_s1 + $0x650] sm:$0xff]  }
  0x9b   :  { %5020 = vmatprep.subr.bf16.mxu1 %v5495_v62  ;;  %v5546_v62 = vld [vmem:[%s7042_s1 + $0x690] sm:$0xff]  }
  0x9c   :  { %4999 = vmatpush3.bf16.msra.mxu0 %v5496_v1  ;;  %v5549_v1 = vld [vmem:[%s7042_s1 + $0x618] sm:$0xff]  }
  0x9d   :  { %5000 = vmatprep.subr.bf16.mxu0 %v5498_v5  ;;  %v5553_v5 = vld [vmem:[%s7042_s1 + $0x620] sm:$0xff]  }
  0x9e   :  { %5021 = vmatpush3.bf16.msra.mxu1 %v5497_v2  ;;  %v5550_v2 = vld [vmem:[%s7042_s1 + $0x698] sm:$0xff]  }
  0x9f   :  { %5022 = vmatprep.subr.bf16.mxu1 %v5499_v6  ;;  %v5554_v6 = vld [vmem:[%s7042_s1 + $0x6a0] sm:$0xff]  }
  0xa0   :  { %5001 = vmatpush3.bf16.msra.mxu0 %v5500_v9  ;;  %v5557_v9 = vld [vmem:[%s7042_s1 + $0x628] sm:$0xff]  }
  0xa1   :  { %5030 = vmatprep.subr.bf16.mxu0 %v5502_v13  ;;  %v5560_v13 = vld [vmem:[%s7042_s1 + $0x6f0] sm:$0xff]  }
  0xa2   :  { %5023 = vmatpush3.bf16.msra.mxu1 %v5501_v10  ;;  %v5558_v10 = vld [vmem:[%s7042_s1 + $0x6a8] sm:$0xff]  }
  0xa3   :  { %3802 = vmatmul.mubr.bf16.vlgmr.msra.gmra.mrb[16].mxu0 %v924_v12  ;;  %5052 = vmatprep.subr.bf16.mxu1 %v5503_v14  ;;  %v19_v12 = vld [vmem:[%s7041_s0 + $0x18] sm:$0xff] }
  0xa4   :  { %5031 = vmatpush3.bf16.msra.mxu0 %v5504_v16  ;;  %3881 = vmatprep.mubr.bf16.mxu0 %v945_v15  ;;  %v957_v14 = vrot.slane %v19_v12, %v5881_v41  ;;  %v950_v15 = vcombine.high %v19_v12, %v19_v12  ;;  %v5561_v16 = vld [vmem:[%s7042_s1 + $0x630] sm:$0xff]   ;;  %v5598_v12 = vld [vmem:[%s7042_s1 + $0x7b8] sm:$0xff]  }
  0xa5   :  { %3842 = vmatmul.mubr.bf16.vlgmr.msra.gmra.mrb[16].mxu1 %v946_v18  ;;  %5032 = vmatprep.subr.bf16.mxu0 %v5506_v19 }
  0xa6   :  { %5053 = vmatpush3.bf16.msra.mxu1 %v5505_v17  ;;  %3921 = vmatprep.mubr.bf16.mxu1 %v949_v21  ;;  %v5563_v17 = vld [vmem:[%s7042_s1 + $0x678] sm:$0xff]   ;;  %v965_v18 = vcombine.high %v957_v14, %v957_v14  ;;  %v6485_v19 = vrot.slane %v950_v15, %v5881_v41  ;;  %v5601_v15 = vld [vmem:[%s7042_s1 + $0x8c0] sm:$0xff]  }
  0xa7   :  { %5054 = vmatprep.subr.bf16.mxu1 %v5507_v20  ;;  %v5562_v20 = vld [vmem:[%s7042_s1 + $0x6b0] sm:$0xff]   ;;  %v5564_v21 = vld [vmem:[%s7042_s1 + $0x6f8] sm:$0xff]  }
  0xa8   :  { %5033 = vmatpush3.bf16.msra.mxu0 %v5508_v22  ;;  %v987_v22 = vrot.slane %v965_v18, %v5881_v41 }
  0xa9   :  { %5034 = vmatprep.subr.bf16.mxu0 %v5510_v24  ;;  %v5565_v24 = vld [vmem:[%s7042_s1 + $0x638] sm:$0xff]  }
  0xaa   :  { %5055 = vmatpush3.bf16.msra.mxu1 %v5509_v23  ;;  %v966_v23 = vcombine.high %v6485_v19, %v6485_v19 }
  0xab   :  { %5056 = vmatprep.subr.bf16.mxu1 %v5511_v25  ;;  %v997_v25 = vcombine.high %v987_v22, %v987_v22 }
  0xac   :  { %5035 = vmatpush3.bf16.msra.mxu0 %v5512_v26  ;;  %v973_v26 = vrot.slane %v957_v14, %v5881_v41  ;;  %v5600_v14 = vld [vmem:[%s7042_s1 + $0x840] sm:$0xff]  }
  0xad   :  { %5036 = vmatprep.subr.bf16.mxu0 %v5514_v28  ;;  %v5566_v28 = vld [vmem:[%s7042_s1 + $0x6b8] sm:$0xff]  }
  0xae   :  { %5057 = vmatpush3.bf16.msra.mxu1 %v5513_v27  ;;  %v5567_v27 = vld [vmem:[%s7042_s1 + $0x740] sm:$0xff]  }
  0xaf   :  { %5058 = vmatprep.subr.bf16.mxu1 %v5515_v29  ;;  %v994_v29 = vrot.slane %v966_v23, %v5881_v41  ;;  %v5608_v23 = vld [vmem:[%s7042_s1 + $0x850] sm:$0xff]  }
  0xb0   :  { %5037 = vmatpush3.bf16.msra.mxu0 %v5516_v30  ;;  %v5568_v30 = vld [vmem:[%s7042_s1 + $0x7c0] sm:$0xff]  }
  0xb1   :  { %5038 = vmatprep.subr.bf16.mxu0 %v5518_v32  ;;  %v995_v32 = vcombine.high %v973_v26, %v973_v26 }
  0xb2   :  { %5059 = vmatpush3.bf16.msra.mxu1 %v5517_v31  ;;  %v5569_v31 = vld [vmem:[%s7042_s1 + $0x700] sm:$0xff]  }
  0xb3   :  { %5060 = vmatprep.subr.bf16.mxu1 %v5519_v33  ;;  %v5571_v33 = vld [vmem:[%s7042_s1 + $0x748] sm:$0xff]  }
  0xb4   :  { %5039 = vmatpush3.bf16.msra.mxu0 %v5520_v34  ;;  %v5570_v34 = vld [vmem:[%s7042_s1 + $0x780] sm:$0xff]  }
  0xb5   :  { %5040 = vmatprep.subr.bf16.mxu0 %v5522_v36  ;;  %v5572_v36 = vld [vmem:[%s7042_s1 + $0x7c8] sm:$0xff]  }
  0xb6   :  { %5061 = vmatpush3.bf16.msra.mxu1 %v5521_v35  ;;  %v998_v35 = vcombine.high %v994_v29, %v994_v29 }
  0xb7   :  { %5062 = vmatprep.subr.bf16.mxu1 %v5523_v37  ;;  %v5573_v37 = vld [vmem:[%s7042_s1 + $0x708] sm:$0xff]  }
  0xb8   :  { %5041 = vmatpush3.bf16.msra.mxu0 %v5524_v38  ;;  %v5575_v38 = vld [vmem:[%s7042_s1 + $0x750] sm:$0xff]  }
  0xb9   :  { %5042 = vmatprep.subr.bf16.mxu0 %v5526_v40  ;;  %v5576_v40 = vld [vmem:[%s7042_s1 + $0x7d0] sm:$0xff]  }
  0xba   :  { %5063 = vmatpush3.bf16.msra.mxu1 %v5525_v39  ;;  %v5574_v39 = vld [vmem:[%s7042_s1 + $0x788] sm:$0xff]  }
  0xbb   :  { %5064 = vmatprep.subr.bf16.mxu1 %v5527_v42  ;;  %v5577_v42 = vld [vmem:[%s7042_s1 + $0x710] sm:$0xff]  }
  0xbc   :  { %5043 = vmatpush3.bf16.msra.mxu0 %v5528_v43  ;;  %v5579_v43 = vld [vmem:[%s7042_s1 + $0x758] sm:$0xff]  }
  0xbd   :  { %5044 = vmatprep.subr.bf16.mxu0 %v5530_v45  ;;  %v5580_v45 = vld [vmem:[%s7042_s1 + $0x7d8] sm:$0xff]  }
  0xbe   :  { %5065 = vmatpush3.bf16.msra.mxu1 %v5529_v44  ;;  %v5578_v44 = vld [vmem:[%s7042_s1 + $0x790] sm:$0xff]  }
  0xbf   :  { %5066 = vmatprep.subr.bf16.mxu1 %v5531_v46  ;;  %v5581_v46 = vld [vmem:[%s7042_s1 + $0x718] sm:$0xff]  }
  0xc0   :  { %5045 = vmatpush3.bf16.msra.mxu0 %v5532_v47  ;;  %v5582_v47 = vld [vmem:[%s7042_s1 + $0x798] sm:$0xff]  }
  0xc1   :  { %5074 = vmatprep.subr.bf16.mxu0 %v5535_v50  ;;  %v5585_v50 = vld [vmem:[%s7042_s1 + $0x720] sm:$0xff]  }
  0xc2   :  { %5067 = vmatpush3.bf16.msra.mxu1 %v5533_v48  ;;  %v5583_v48 = vld [vmem:[%s7042_s1 + $0x760] sm:$0xff]  }
  0xc3   :  { %3882 = vmatmul.mubr.bf16.vlgmr.msra.gmra.mrb[20].mxu0 %v931_v49  ;;  %5096 = vmatprep.subr.bf16.mxu1 %v5536_v51  ;;  %v5584_v49 = vld [vmem:[%s7042_s1 + $0x7e0] sm:$0xff]  }
  0xc4   :  { %5075 = vmatpush3.bf16.msra.mxu0 %v5537_v52  ;;  %3961 = vmatprep.mubr.bf16.mxu0 %v987_v22  ;;  %v5586_v51 = vld [vmem:[%s7042_s1 + $0x7a0] sm:$0xff]   ;;  %v5587_v52 = vld [vmem:[%s7042_s1 + $0x768] sm:$0xff]  }
  0xc5   :  { %3922 = vmatmul.mubr.bf16.vlgmr.msra.gmra.mrb[20].mxu1 %v947_v54  ;;  %5076 = vmatprep.subr.bf16.mxu0 %v5539_v55  ;;  %v5589_v54 = vld [vmem:[%s7042_s1 + $0x728] sm:$0xff]  }
  0xc6   :  { %5097 = vmatpush3.bf16.msra.mxu1 %v5538_v53  ;;  %4001 = vmatprep.mubr.bf16.mxu1 %v997_v25  ;;  %v5588_v53 = vld [vmem:[%s7042_s1 + $0x7e8] sm:$0xff]   ;;  %v5610_v25 = vld [vmem:[%s7042_s1 + $0x810] sm:$0xff]  }
  0xc7   :  { %5098 = vmatprep.subr.bf16.mxu1 %v5540_v56  ;;  %v5590_v55 = vld [vmem:[%s7042_s1 + $0x7a8] sm:$0xff]   ;;  %v4425_v56 = vld [vmem:[%s7043_s2] ss:$0 sm:$0xff] }
  0xc8   :  { %5077 = vmatpush3.bf16.msra.mxu0 %v5541_v57  ;;  %v5591_v57 = vld [vmem:[%s7042_s1 + $0x770] sm:$0xff]   ;;  %v5607_v22 = vld [vmem:[%s7042_s1 + $0x888] sm:$0xff]  }
  0xc9   :  { %5078 = vmatprep.subr.bf16.mxu0 %v5543_v59  ;;  %v5592_v59 = vld [vmem:[%s7042_s1 + $0x7f0] sm:$0xff]  }
  0xca   :  { %5099 = vmatpush3.bf16.msra.mxu1 %v5542_v58 }
  0xcb   :  { %5100 = vmatprep.subr.bf16.mxu1 %v5544_v60 }
  0xcc   :  { %5079 = vmatpush3.bf16.msra.mxu0 %v5545_v61  ;;  %v5593_v61 = vld [vmem:[%s7042_s1 + $0x730] sm:$0xff]  }
  0xcd   :  { %5080 = vmatprep.subr.bf16.mxu0 %v5547_v63 }
  0xce   :  { %5101 = vmatpush3.bf16.msra.mxu1 %v5546_v62 }
  0xcf   :  { %5102 = vmatprep.subr.bf16.mxu1 %v5548_v0 }
  0xd0   :  { %5081 = vmatpush3.bf16.msra.mxu0 %v5549_v1  ;;  %v5594_v1 = vld [vmem:[%s7042_s1 + $0x7b0] sm:$0xff]  }
  0xd1   :  { %5082 = vmatprep.subr.bf16.mxu0 %v5551_v3 }
  0xd2   :  { %5103 = vmatpush3.bf16.msra.mxu1 %v5550_v2  ;;  %v5595_v2 = vld [vmem:[%s7042_s1 + $0x778] sm:$0xff]  }
  0xd3   :  { %5104 = vmatprep.subr.bf16.mxu1 %v5552_v4 }
  0xd4   :  { %5083 = vmatpush3.bf16.msra.mxu0 %v5553_v5 }
  0xd5   :  { %5084 = vmatprep.subr.bf16.mxu0 %v5555_v7 }
  0xd6   :  { %5105 = vmatpush3.bf16.msra.mxu1 %v5554_v6 }
  0xd7   :  { %5106 = vmatprep.subr.bf16.mxu1 %v5556_v8  ;;  %v5596_v8 = vld [vmem:[%s7042_s1 + $0x7f8] sm:$0xff]  }
  0xd8   :  { %5085 = vmatpush3.bf16.msra.mxu0 %v5557_v9 }
  0xd9   :  { %5086 = vmatprep.subr.bf16.mxu0 %v5559_v11 }
  0xda   :  { %5107 = vmatpush3.bf16.msra.mxu1 %v5558_v10  ;;  %v5597_v10 = vld [vmem:[%s7042_s1 + $0x738] sm:$0xff]  }
  0xdb   :  { %5108 = vmatprep.subr.bf16.mxu1 %v5560_v13  ;;  %v980_v13 = vrot.slane %v6485_v19, %v5881_v41  ;;  %v5604_v19 = vld [vmem:[%s7042_s1 + $0x848] sm:$0xff]  }
  0xdc   :  { %5087 = vmatpush3.bf16.msra.mxu0 %v5561_v16  ;;  %v5602_v16 = vld [vmem:[%s7042_s1 + $0x800] sm:$0xff]  }
  0xdd   :  { %5088 = vmatprep.subr.bf16.mxu0 %v5563_v17  ;;  %v5603_v17 = vld [vmem:[%s7042_s1 + $0x880] sm:$0xff]   ;;  %v996_v18 = vcombine.high %v980_v13, %v980_v13 }
  0xde   :  { %5109 = vmatpush3.bf16.msra.mxu1 %v5562_v20  ;;  %v5605_v20 = vld [vmem:[%s7042_s1 + $0x8c8] sm:$0xff]  }
  0xdf   :  { %5110 = vmatprep.subr.bf16.mxu1 %v5564_v21  ;;  %v5606_v21 = vld [vmem:[%s7042_s1 + $0x808] sm:$0xff]  }
  0xe0   :  { %5089 = vmatpush3.bf16.msra.mxu0 %v5565_v24  ;;  %v5609_v24 = vld [vmem:[%s7042_s1 + $0x8d0] sm:$0xff]  }
  0xe1   :  { %5118 = vmatprep.subr.bf16.mxu0 %v5567_v27  ;;  %v5612_v27 = vld [vmem:[%s7042_s1 + $0x858] sm:$0xff]  }
  0xe2   :  { %5111 = vmatpush3.bf16.msra.mxu1 %v5566_v28  ;;  %v5613_v28 = vld [vmem:[%s7042_s1 + $0x8d8] sm:$0xff]  }
  0xe3   :  { %3962 = vmatmul.mubr.bf16.vlgmr.msra.gmra.mrb[24].mxu0 %v973_v26  ;;  %5140 = vmatprep.subr.bf16.mxu1 %v5568_v30  ;;  %v5611_v26 = vld [vmem:[%s7042_s1 + $0x890] sm:$0xff]   ;;  %v5615_v30 = vld [vmem:[%s7042_s1 + $0x898] sm:$0xff]  }
  0xe4   :  { %5119 = vmatpush3.bf16.msra.mxu0 %v5569_v31  ;;  %4041 = vmatprep.mubr.bf16.mxu0 %v994_v29  ;;  %v5614_v29 = vld [vmem:[%s7042_s1 + $0x818] sm:$0xff]   ;;  %v5616_v31 = vld [vmem:[%s7042_s1 + $0x860] sm:$0xff]  }
  0xe5   :  { %4002 = vmatmul.mubr.bf16.vlgmr.msra.gmra.mrb[24].mxu1 %v995_v32  ;;  %5120 = vmatprep.subr.bf16.mxu0 %v5571_v33  ;;  %v5617_v32 = vld [vmem:[%s7042_s1 + $0x8e0] sm:$0xff]  }
  0xe6   :  { %5141 = vmatpush3.bf16.msra.mxu1 %v5570_v34  ;;  %4081 = vmatprep.mubr.bf16.mxu1 %v998_v35  ;;  %v5618_v33 = vld [vmem:[%s7042_s1 + $0x820] sm:$0xff]   ;;  %v5620_v35 = vld [vmem:[%s7042_s1 + $0x868] sm:$0xff]  }
  0xe7   :  { %5142 = vmatprep.subr.bf16.mxu1 %v5572_v36  ;;  %v5619_v34 = vld [vmem:[%s7042_s1 + $0x8a0] sm:$0xff]   ;;  %v5621_v36 = vld [vmem:[%s7042_s1 + $0x8e8] sm:$0xff]  }
  0xe8   :  { %5121 = vmatpush3.bf16.msra.mxu0 %v5573_v37  ;;  %v5622_v37 = vld [vmem:[%s7042_s1 + $0x828] sm:$0xff]  }
  0xe9   :  { %5122 = vmatprep.subr.bf16.mxu0 %v5575_v38  ;;  %v5623_v38 = vld [vmem:[%s7042_s1 + $0x8a8] sm:$0xff]  }
  0xea   :  { %5143 = vmatpush3.bf16.msra.mxu1 %v5574_v39  ;;  %v5624_v39 = vld [vmem:[%s7042_s1 + $0x870] sm:$0xff]  }
  0xeb   :  { %5144 = vmatprep.subr.bf16.mxu1 %v5576_v40  ;;  %v5625_v40 = vld [vmem:[%s7042_s1 + $0x8f0] sm:$0xff]  }
  0xec   :  { %5123 = vmatpush3.bf16.msra.mxu0 %v5577_v42 }
  0xed   :  { %5124 = vmatprep.subr.bf16.mxu0 %v5579_v43  ;;  %v5626_v43 = vld [vmem:[%s7042_s1 + $0x830] sm:$0xff]  }
  0xee   :  { %5145 = vmatpush3.bf16.msra.mxu1 %v5578_v44 }
  0xef   :  { %5146 = vmatprep.subr.bf16.mxu1 %v5580_v45  ;;  %v20_v45 = vld [vmem:[%s7041_s0 + $0x20] sm:$0xff] }
  0xf0   :  { %5125 = vmatpush3.bf16.msra.mxu0 %v5581_v46 }
  0xf1   :  { %5126 = vmatprep.subr.bf16.mxu0 %v5583_v48 }
  0xf2   :  { %5147 = vmatpush3.bf16.msra.mxu1 %v5582_v47 }
  0xf3   :  { %5148 = vmatprep.subr.bf16.mxu1 %v5584_v49  ;;  %v5627_v49 = vld [vmem:[%s7042_s1 + $0x8b0] sm:$0xff]  }
  0xf4   :  { %5127 = vmatpush3.bf16.msra.mxu0 %v5585_v50  ;;  %v5628_v50 = vld [vmem:[%s7042_s1 + $0x878] sm:$0xff]  }
  0xf5   :  { %5128 = vmatprep.subr.bf16.mxu0 %v5587_v52  ;;  %v999_v52 = vcombine.high %v20_v45, %v20_v45 }
  0xf6   :  { %5149 = vmatpush3.bf16.msra.mxu1 %v5586_v51  ;;  %v4826_v58 = vpop.f32.mrb[0].mxu0  ;;  %v1006_v51 = vrot.slane %v20_v45, %v5881_v41 }
  0xf7   :  { %v4827_v60 = vpop.f32.mrb[1].mxu0  ;;  %5150 = vmatprep.subr.bf16.mxu1 %v5588_v53  ;;  %v4848_v62 = vpop.f32.mrb[0].mxu1 }
  0xf8   :  { %v4828_v63 = vadd.f32 %v4827_v60, %v4826_v58  ;;  %v4829_v0 = vpop.f32.mrb[2].mxu0  ;;  %5129 = vmatpush3.bf16.msra.mxu0 %v5589_v54  ;;  %v4849_v3 = vpop.f32.mrb[1].mxu1  ;;  %v5629_v58 = vld [vmem:[%s7042_s1 + $0x8f8] sm:$0xff]  }
  0xf9   :  { %v4830_v4 = vpop.f32.mrb[3].mxu0  ;;  %5130 = vmatprep.subr.bf16.mxu0 %v5591_v57  ;;  %v4850_v6 = vadd.f32 %v4849_v3, %v4848_v62  ;;  %v4851_v7 = vpop.f32.mrb[2].mxu1  ;;  %v6706_v62 = vrot.slane %v999_v52, %v5881_v41  ;;  %v5631_v0 = vld [vmem:[%s7042_s1 + $0x8b8] sm:$0xff]   ;;  %v5632_v3 = vld [vmem:[%s7042_s1 + $0x940] sm:$0xff]  }
  0xfa   :  { %v3484_v5 = vadd.f32 %v4828_v63, %v4425_v56  ;;  %5151 = vmatpush3.bf16.msra.mxu1 %v5590_v55  ;;  %v4852_v9 = vpop.f32.mrb[3].mxu1  ;;  %v5634_v7 = vld [vmem:[%s7042_s1 + $0x900] sm:$0xff]   ;;  %v5663_v52 = vld [vmem:[%s7042_s1 + $0x9b8] sm:$0xff]  }
  0xfb   :  { %5152 = vmatprep.subr.bf16.mxu1 %v5592_v59  ;;  %v1014_v59 = vcombine.high %v1006_v51, %v1006_v51  ;;  %v1015_v4 = vcombine.high %v6706_v62, %v6706_v62  ;;  %v5635_v9 = vld [vmem:[%s7042_s1 + $0x980] sm:$0xff]  }
  0xfc   :  { %v6600_v11 = vadd.f32 %v4850_v6, %v3484_v5  ;;  %5131 = vmatpush3.bf16.msra.mxu0 %v5593_v61  ;;  %v5630_v61 = vld [vmem:[%s7042_s1 + $0x838] sm:$0xff]   ;;  %v5633_v6 = vld [vmem:[%s7042_s1 + $0x9c0] sm:$0xff]  }
  0xfd   :  { %5132 = vmatprep.subr.bf16.mxu0 %v5595_v2  ;;  %v1022_v2 = vrot.slane %v1006_v51, %v5881_v41 }
  0xfe   :  { %5153 = vmatpush3.bf16.msra.mxu1 %v5594_v1  ;;  %v1036_v1 = vrot.slane %v1014_v59, %v5881_v41  ;;  %v5669_v59 = vld [vmem:[%s7042_s1 + $0xa48] sm:$0xff]  }
  0xff   :  { %5154 = vmatprep.subr.bf16.mxu1 %v5596_v8  ;;  %v1043_v8 = vrot.slane %v1015_v4, %v5881_v41  ;;  %v5678_v4 = vld [vmem:[%s7042_s1 + $0xad8] sm:$0xff]  }
 0x100   :  { %5133 = vmatpush3.bf16.msra.mxu0 %v5597_v10  ;;  %v1046_v5 = vcombine.high %v1036_v1, %v1036_v1  ;;  %v1044_v10 = vcombine.high %v1022_v2, %v1022_v2 }
 0x101   :  { %5162 = vmatprep.subr.bf16.mxu0 %v5600_v14  ;;  %v5638_v14 = vld [vmem:[%s7042_s1 + $0x908] sm:$0xff]  }
 0x102   :  { %5155 = vmatpush3.bf16.msra.mxu1 %v5598_v12  ;;  %v5637_v12 = vld [vmem:[%s7042_s1 + $0x9c8] sm:$0xff]  }
 0x103   :  { %4042 = vmatmul.mubr.bf16.vlgmr.msra.gmra.mrb[28].mxu0 %v980_v13  ;;  %5184 = vmatprep.subr.bf16.mxu1 %v5601_v15  ;;  %v1047_v13 = vcombine.high %v1043_v8, %v1043_v8  ;;  %v5639_v15 = vld [vmem:[%s7042_s1 + $0x988] sm:$0xff]  }
 0x104   :  { %5163 = vmatpush3.bf16.msra.mxu0 %v5602_v16  ;;  %4121 = vmatprep.mubr.bf16.mxu0 %v1036_v1  ;;  %v5640_v16 = vld [vmem:[%s7042_s1 + $0x950] sm:$0xff]  }
 0x105   :  { %4082 = vmatmul.mubr.bf16.vlgmr.msra.gmra.mrb[28].mxu1 %v996_v18  ;;  %5164 = vmatprep.subr.bf16.mxu0 %v5604_v19  ;;  %v5642_v18 = vld [vmem:[%s7042_s1 + $0x910] sm:$0xff]  }
 0x106   :  { %5185 = vmatpush3.bf16.msra.mxu1 %v5603_v17  ;;  %4161 = vmatprep.mubr.bf16.mxu1 %v1046_v5  ;;  %v5641_v17 = vld [vmem:[%s7042_s1 + $0x9d0] sm:$0xff]   ;;  %v5679_v5 = vld [vmem:[%s7042_s1 + $0xa18] sm:$0xff]  }
 0x107   :  { %5186 = vmatprep.subr.bf16.mxu1 %v5605_v20  ;;  %v5643_v19 = vld [vmem:[%s7042_s1 + $0x990] sm:$0xff]   ;;  %v5644_v20 = vld [vmem:[%s7042_s1 + $0x958] sm:$0xff]  }
 0x108   :  { %5165 = vmatpush3.bf16.msra.mxu0 %v5606_v21  ;;  %v5645_v21 = vld [vmem:[%s7042_s1 + $0x9d8] sm:$0xff]   ;;  %v5675_v1 = vld [vmem:[%s7042_s1 + $0xa10] sm:$0xff]  }
 0x109   :  { %5166 = vmatprep.subr.bf16.mxu0 %v5608_v23  ;;  %v5647_v23 = vld [vmem:[%s7042_s1 + $0x998] sm:$0xff]  }
 0x10a   :  { %5187 = vmatpush3.bf16.msra.mxu1 %v5607_v22  ;;  %v5646_v22 = vld [vmem:[%s7042_s1 + $0x918] sm:$0xff]  }
 0x10b   :  { %5188 = vmatprep.subr.bf16.mxu1 %v5609_v24  ;;  %v5648_v24 = vld [vmem:[%s7042_s1 + $0x960] sm:$0xff]  }
 0x10c   :  { %5167 = vmatpush3.bf16.msra.mxu0 %v5610_v25  ;;  %v5649_v25 = vld [vmem:[%s7042_s1 + $0x9e0] sm:$0xff]  }
 0x10d   :  { %5168 = vmatprep.subr.bf16.mxu0 %v5612_v27  ;;  %v5651_v27 = vld [vmem:[%s7042_s1 + $0x9a0] sm:$0xff]  }
 0x10e   :  { %5189 = vmatpush3.bf16.msra.mxu1 %v5611_v26  ;;  %v5650_v26 = vld [vmem:[%s7042_s1 + $0x920] sm:$0xff]  }
 0x10f   :  { %5190 = vmatprep.subr.bf16.mxu1 %v5613_v28  ;;  %v5652_v28 = vld [vmem:[%s7042_s1 + $0x968] sm:$0xff]  }
 0x110   :  { %5169 = vmatpush3.bf16.msra.mxu0 %v5614_v29  ;;  %v5653_v29 = vld [vmem:[%s7042_s1 + $0x9e8] sm:$0xff]  }
 0x111   :  { %5170 = vmatprep.subr.bf16.mxu0 %v5616_v31  ;;  %v5655_v31 = vld [vmem:[%s7042_s1 + $0x9a8] sm:$0xff]  }
 0x112   :  { %5191 = vmatpush3.bf16.msra.mxu1 %v5615_v30  ;;  %v5654_v30 = vld [vmem:[%s7042_s1 + $0x928] sm:$0xff]  }
 0x113   :  { %5192 = vmatprep.subr.bf16.mxu1 %v5617_v32  ;;  %v5656_v32 = vld [vmem:[%s7042_s1 + $0x970] sm:$0xff]  }
 0x114   :  { %5171 = vmatpush3.bf16.msra.mxu0 %v5618_v33 }
 0x115   :  { %5172 = vmatprep.subr.bf16.mxu0 %v5620_v35 }
 0x116   :  { %5193 = vmatpush3.bf16.msra.mxu1 %v5619_v34  ;;  %v4870_v42 = vpop.f32.mrb[4].mxu0  ;;  %v5657_v34 = vld [vmem:[%s7042_s1 + $0x9f0] sm:$0xff]  }
 0x117   :  { %v4871_v44 = vpop.f32.mrb[5].mxu0  ;;  %5194 = vmatprep.subr.bf16.mxu1 %v5621_v36  ;;  %v4892_v46 = vpop.f32.mrb[4].mxu1  ;;  %v5658_v36 = vld [vmem:[%s7042_s1 + $0x930] sm:$0xff]  }
 0x118   :  { %v4872_v47 = vadd.f32 %v4871_v44, %v4870_v42  ;;  %v4873_v48 = vpop.f32.mrb[6].mxu0  ;;  %5173 = vmatpush3.bf16.msra.mxu0 %v5622_v37  ;;  %v4893_v53 = vpop.f32.mrb[5].mxu1  ;;  %v5660_v42 = vld [vmem:[%s7042_s1 + $0x978] sm:$0xff]  }
 0x119   :  { %v4874_v54 = vpop.f32.mrb[7].mxu0  ;;  %5174 = vmatprep.subr.bf16.mxu0 %v5624_v39  ;;  %v4894_v56 = vadd.f32 %v4893_v53, %v4892_v46  ;;  %v4895_v57 = vpop.f32.mrb[6].mxu1  ;;  %v5661_v48 = vld [vmem:[%s7042_s1 + $0x9f8] sm:$0xff]   ;;  %v1029_v53 = vrot.slane %v6706_v62, %v5881_v41  ;;  %v5672_v62 = vld [vmem:[%s7042_s1 + $0xa88] sm:$0xff]  }
 0x11a   :  { %v3564_v55 = vadd.f32 %v4872_v47, %v6600_v11  ;;  %5195 = vmatpush3.bf16.msra.mxu1 %v5623_v38  ;;  %v4896_v60 = vpop.f32.mrb[7].mxu1  ;;  %v5636_v11 = vld [vmem:[%s7042_s1 + $0x948] sm:$0xff]   ;;  %v5665_v54 = vld [vmem:[%s7042_s1 + $0xa40] sm:$0xff]  }
 0x11b   :  { %5196 = vmatprep.subr.bf16.mxu1 %v5625_v40  ;;  %v5659_v40 = vld [vmem:[%s7042_s1 + $0x9b0] sm:$0xff]   ;;  %v5668_v57 = vld [vmem:[%s7042_s1 + $0xa80] sm:$0xff]   ;;  %v5670_v60 = vld [vmem:[%s7042_s1 + $0xac8] sm:$0xff]  }
 0x11c   :  { %v6708_v63 = vadd.f32 %v4894_v56, %v3564_v55  ;;  %5175 = vmatpush3.bf16.msra.mxu0 %v5626_v43  ;;  %v5666_v55 = vld [vmem:[%s7042_s1 + $0xac0] sm:$0xff]  }
 0x11d   :  { %5176 = vmatprep.subr.bf16.mxu0 %v5628_v50  ;;  %v5662_v50 = vld [vmem:[%s7042_s1 + $0x938] sm:$0xff]   ;;  %v5667_v56 = vld [vmem:[%s7042_s1 + $0xa00] sm:$0xff]  }
 0x11e   :  { %5197 = vmatpush3.bf16.msra.mxu1 %v5627_v49 }
 0x11f   :  { %5198 = vmatprep.subr.bf16.mxu1 %v5629_v58  ;;  %v1045_v58 = vcombine.high %v1029_v53, %v1029_v53 }
 0x120   :  { %5177 = vmatpush3.bf16.msra.mxu0 %v5630_v61  ;;  %v5671_v61 = vld [vmem:[%s7042_s1 + $0xa08] sm:$0xff]  }
 0x121   :  { %5206 = vmatprep.subr.bf16.mxu0 %v5632_v3  ;;  %v5677_v3 = vld [vmem:[%s7042_s1 + $0xa58] sm:$0xff]  }
 0x122   :  { %5199 = vmatpush3.bf16.msra.mxu1 %v5631_v0  ;;  %v5674_v0 = vld [vmem:[%s7042_s1 + $0xad0] sm:$0xff]  }
 0x123   :  { %4122 = vmatmul.mubr.bf16.vlgmr.msra.gmra.mrb[32].mxu0 %v1022_v2  ;;  %5228 = vmatprep.subr.bf16.mxu1 %v5633_v6  ;;  %v5676_v2 = vld [vmem:[%s7042_s1 + $0xa90] sm:$0xff]   ;;  %v5680_v6 = vld [vmem:[%s7042_s1 + $0xa98] sm:$0xff]  }
 0x124   :  { %5207 = vmatpush3.bf16.msra.mxu0 %v5634_v7  ;;  %4201 = vmatprep.mubr.bf16.mxu0 %v1043_v8  ;;  %v5681_v7 = vld [vmem:[%s7042_s1 + $0xa60] sm:$0xff]  }
 0x125   :  { %4162 = vmatmul.mubr.bf16.vlgmr.msra.gmra.mrb[32].mxu1 %v1044_v10  ;;  %5208 = vmatprep.subr.bf16.mxu0 %v5636_v11  ;;  %v5682_v8 = vld [vmem:[%s7042_s1 + $0xae0] sm:$0xff]   ;;  %v5685_v11 = vld [vmem:[%s7042_s1 + $0xa68] sm:$0xff]  }
 0x126   :  { %5229 = vmatpush3.bf16.msra.mxu1 %v5635_v9  ;;  %4241 = vmatprep.mubr.bf16.mxu1 %v1047_v13  ;;  %v5683_v9 = vld [vmem:[%s7042_s1 + $0xa20] sm:$0xff]   ;;  %v5687_v13 = vld [vmem:[%s7042_s1 + $0xa28] sm:$0xff]  }
 0x127   :  { %5230 = vmatprep.subr.bf16.mxu1 %v5637_v12  ;;  %v5684_v10 = vld [vmem:[%s7042_s1 + $0xaa0] sm:$0xff]   ;;  %v5686_v12 = vld [vmem:[%s7042_s1 + $0xae8] sm:$0xff]  }
 0x128   :  { %5209 = vmatpush3.bf16.msra.mxu0 %v5638_v14  ;;  %v5688_v14 = vld [vmem:[%s7042_s1 + $0xaa8] sm:$0xff]  }
 0x129   :  { %5210 = vmatprep.subr.bf16.mxu0 %v5640_v16 }
 0x12a   :  { %5231 = vmatpush3.bf16.msra.mxu1 %v5639_v15  ;;  %v5689_v15 = vld [vmem:[%s7042_s1 + $0xa70] sm:$0xff]  }
 0x12b   :  { %5232 = vmatprep.subr.bf16.mxu1 %v5641_v17  ;;  %v5690_v17 = vld [vmem:[%s7042_s1 + $0xaf0] sm:$0xff]  }
 0x12c   :  { %5211 = vmatpush3.bf16.msra.mxu0 %v5642_v18 }
 0x12d   :  { %5212 = vmatprep.subr.bf16.mxu0 %v5644_v20 }
 0x12e   :  { %5233 = vmatpush3.bf16.msra.mxu1 %v5643_v19  ;;  %v5691_v19 = vld [vmem:[%s7042_s1 + $0xa30] sm:$0xff]  }
 0x12f   :  { %5234 = vmatprep.subr.bf16.mxu1 %v5645_v21 }
 0x130   :  { %5213 = vmatpush3.bf16.msra.mxu0 %v5646_v22 }
 0x131   :  { %5214 = vmatprep.subr.bf16.mxu0 %v5648_v24  ;;  %v21_v24 = vld [vmem:[%s7041_s0 + $0x28] sm:$0xff] }
 0x132   :  { %5235 = vmatpush3.bf16.msra.mxu1 %v5647_v23  ;;  %v5693_v23 = vld [vmem:[%s7042_s1 + $0xa78] sm:$0xff]  }
 0x133   :  { %5236 = vmatprep.subr.bf16.mxu1 %v5649_v25 }
 0x134   :  { %5215 = vmatpush3.bf16.msra.mxu0 %v5650_v26 }
 0x135   :  { %5216 = vmatprep.subr.bf16.mxu0 %v5652_v28  ;;  %v1048_v28 = vcombine.high %v21_v24, %v21_v24 }
 0x136   :  { %5237 = vmatpush3.bf16.msra.mxu1 %v5651_v27  ;;  %v4914_v33 = vpop.f32.mrb[8].mxu0  ;;  %v1055_v27 = vrot.slane %v21_v24, %v5881_v41 }
 0x137   :  { %v4915_v35 = vpop.f32.mrb[9].mxu0  ;;  %5238 = vmatprep.subr.bf16.mxu1 %v5653_v29 }
 0x138   :  { %v4936_v37 = vpop.f32.mrb[8].mxu1  ;;  %v4916_v38 = vadd.f32 %v4915_v35, %v4914_v33  ;;  %v4917_v39 = vpop.f32.mrb[10].mxu0  ;;  %5217 = vmatpush3.bf16.msra.mxu0 %v5654_v30  ;;  %v1063_v35 = vcombine.high %v1055_v27, %v1055_v27 }
 0x139   :  { %v4937_v43 = vpop.f32.mrb[9].mxu1  ;;  %v4918_v44 = vpop.f32.mrb[11].mxu0  ;;  %5218 = vmatprep.subr.bf16.mxu0 %v5656_v32  ;;  %v5692_v32 = vld [vmem:[%s7042_s1 + $0xab0] sm:$0xff]  }
 0x13a   :  { %v3644_v45 = vadd.f32 %v4916_v38, %v6708_v63  ;;  %v4938_v46 = vadd.f32 %v4937_v43, %v4936_v37  ;;  %v4939_v47 = vpop.f32.mrb[10].mxu1  ;;  %5239 = vmatpush3.bf16.msra.mxu1 %v5655_v31  ;;  %v5673_v63 = vld [vmem:[%s7042_s1 + $0xa50] sm:$0xff]   ;;  %v5695_v38 = vld [vmem:[%s7042_s1 + $0xa38] sm:$0xff]   ;;  %v1085_v39 = vrot.slane %v1063_v35, %v5881_v41 }
 0x13b   :  { %v4940_v49 = vpop.f32.mrb[11].mxu1  ;;  %5240 = vmatprep.subr.bf16.mxu1 %v5657_v34  ;;  %v5694_v34 = vld [vmem:[%s7042_s1 + $0xaf8] sm:$0xff]  }
 0x13c   :  { %v6812_v51 = vadd.f32 %v4938_v46, %v3644_v45  ;;  %5219 = vmatpush3.bf16.msra.mxu0 %v5658_v36  ;;  %v6915_v36 = vrot.slane %v1048_v28, %v5881_v41  ;;  %v5696_v44 = vld [vmem:[%s7042_s1 + $0xab8] sm:$0xff]   ;;  %v1095_v45 = vcombine.high %v1085_v39, %v1085_v39  ;;  %v5698_v46 = vld [vmem:[%s7042_s1 + $0xbc0] sm:$0xff]  }
 0x13d   :  { %5220 = vmatprep.subr.bf16.mxu0 %v5660_v42  ;;  %v5697_v42 = vld [vmem:[%s7042_s1 + $0xb40] sm:$0xff]  }
 0x13e   :  { %5241 = vmatpush3.bf16.msra.mxu1 %v5659_v40  ;;  %v1071_v40 = vrot.slane %v1055_v27, %v5881_v41  ;;  %v1064_v43 = vcombine.high %v6915_v36, %v6915_v36 }
 0x13f   :  { %5242 = vmatprep.subr.bf16.mxu1 %v5661_v48  ;;  %v5699_v48 = vld [vmem:[%s7042_s1 + $0xb00] sm:$0xff]  }
 0x140   :  { %5221 = vmatpush3.bf16.msra.mxu0 %v5662_v50  ;;  %v1092_v47 = vrot.slane %v1064_v43, %v5881_v41  ;;  %v1093_v49 = vcombine.high %v1071_v40, %v1071_v40  ;;  %v5701_v50 = vld [vmem:[%s7042_s1 + $0xb48] sm:$0xff]  }
 0x141   :  { %5250 = vmatprep.subr.bf16.mxu0 %v5665_v54  ;;  %v5703_v54 = vld [vmem:[%s7042_s1 + $0xb08] sm:$0xff]  }
 0x142   :  { %5243 = vmatpush3.bf16.msra.mxu1 %v5663_v52  ;;  %v1096_v52 = vcombine.high %v1092_v47, %v1092_v47 }
 0x143   :  { %4202 = vmatmul.mubr.bf16.vlgmr.msra.gmra.mrb[36].mxu0 %v1029_v53  ;;  %5272 = vmatprep.subr.bf16.mxu1 %v5666_v55  ;;  %v5702_v53 = vld [vmem:[%s7042_s1 + $0xbc8] sm:$0xff]   ;;  %v5705_v55 = vld [vmem:[%s7042_s1 + $0xb50] sm:$0xff]  }
 0x144   :  { %5251 = vmatpush3.bf16.msra.mxu0 %v5667_v56  ;;  %4281 = vmatprep.mubr.bf16.mxu0 %v1085_v39  ;;  %v5704_v56 = vld [vmem:[%s7042_s1 + $0xb88] sm:$0xff]  }
 0x145   :  { %4242 = vmatmul.mubr.bf16.vlgmr.msra.gmra.mrb[36].mxu1 %v1045_v58  ;;  %5252 = vmatprep.subr.bf16.mxu0 %v5669_v59  ;;  %v5707_v58 = vld [vmem:[%s7042_s1 + $0xb10] sm:$0xff]   ;;  %v5709_v59 = vld [vmem:[%s7042_s1 + $0xb58] sm:$0xff]  }
 0x146   :  { %5273 = vmatpush3.bf16.msra.mxu1 %v5668_v57  ;;  %4321 = vmatprep.mubr.bf16.mxu1 %v1095_v45  ;;  %v5706_v57 = vld [vmem:[%s7042_s1 + $0xbd0] sm:$0xff]  }
 0x147   :  { %5274 = vmatprep.subr.bf16.mxu1 %v5670_v60  ;;  %v5708_v60 = vld [vmem:[%s7042_s1 + $0xb90] sm:$0xff]  }
 0x148   :  { %5253 = vmatpush3.bf16.msra.mxu0 %v5671_v61  ;;  %v5710_v61 = vld [vmem:[%s7042_s1 + $0xbd8] sm:$0xff]  }
 0x149   :  { %5254 = vmatprep.subr.bf16.mxu0 %v5673_v63  ;;  %v5713_v63 = vld [vmem:[%s7042_s1 + $0xb60] sm:$0xff]  }
 0x14a   :  { %5275 = vmatpush3.bf16.msra.mxu1 %v5672_v62  ;;  %v5711_v62 = vld [vmem:[%s7042_s1 + $0xb18] sm:$0xff]  }
 0x14b   :  { %5276 = vmatprep.subr.bf16.mxu1 %v5674_v0  ;;  %v5712_v0 = vld [vmem:[%s7042_s1 + $0xb98] sm:$0xff]  }
 0x14c   :  { %5255 = vmatpush3.bf16.msra.mxu0 %v5675_v1  ;;  %v5714_v1 = vld [vmem:[%s7042_s1 + $0xbe0] sm:$0xff]  }
 0x14d   :  { %5256 = vmatprep.subr.bf16.mxu0 %v5677_v3  ;;  %v5717_v3 = vld [vmem:[%s7042_s1 + $0xb68] sm:$0xff]  }
 0x14e   :  { %5277 = vmatpush3.bf16.msra.mxu1 %v5676_v2  ;;  %v5715_v2 = vld [vmem:[%s7042_s1 + $0xb20] sm:$0xff]  }
 0x14f   :  { %5278 = vmatprep.subr.bf16.mxu1 %v5678_v4  ;;  %v5716_v4 = vld [vmem:[%s7042_s1 + $0xba0] sm:$0xff]  }
 0x150   :  { %5257 = vmatpush3.bf16.msra.mxu0 %v5679_v5  ;;  %v5718_v5 = vld [vmem:[%s7042_s1 + $0xbe8] sm:$0xff]  }
 0x151   :  { %5258 = vmatprep.subr.bf16.mxu0 %v5681_v7  ;;  %v5721_v7 = vld [vmem:[%s7042_s1 + $0xb70] sm:$0xff]  }
 0x152   :  { %5279 = vmatpush3.bf16.msra.mxu1 %v5680_v6  ;;  %v5719_v6 = vld [vmem:[%s7042_s1 + $0xb28] sm:$0xff]  }
 0x153   :  { %5280 = vmatprep.subr.bf16.mxu1 %v5682_v8 }
 0x154   :  { %5259 = vmatpush3.bf16.msra.mxu0 %v5683_v9  ;;  %v5720_v9 = vld [vmem:[%s7042_s1 + $0xba8] sm:$0xff]  }
 0x155   :  { %5260 = vmatprep.subr.bf16.mxu0 %v5685_v11  ;;  %v5722_v11 = vld [vmem:[%s7042_s1 + $0xbf0] sm:$0xff]  }
 0x156   :  { %5281 = vmatpush3.bf16.msra.mxu1 %v5684_v10  ;;  %v4958_v16 = vpop.f32.mrb[12].mxu0 }
 0x157   :  { %v4959_v18 = vpop.f32.mrb[13].mxu0  ;;  %5282 = vmatprep.subr.bf16.mxu1 %v5686_v12 }
 0x158   :  { %v4980_v20 = vpop.f32.mrb[12].mxu1  ;;  %v4960_v21 = vadd.f32 %v4959_v18, %v4958_v16  ;;  %v4961_v22 = vpop.f32.mrb[14].mxu0  ;;  %5261 = vmatpush3.bf16.msra.mxu0 %v5687_v13  ;;  %v5725_v18 = vld [vmem:[%s7042_s1 + $0xb78] sm:$0xff]  }
 0x159   :  { %v4981_v25 = vpop.f32.mrb[13].mxu1  ;;  %v4962_v26 = vpop.f32.mrb[15].mxu0  ;;  %5262 = vmatprep.subr.bf16.mxu0 %v5689_v15  ;;  %v5723_v15 = vld [vmem:[%s7042_s1 + $0xb30] sm:$0xff]  }
 0x15a   :  { %v3724_v29 = vadd.f32 %v4960_v21, %v6812_v51  ;;  %v4982_v30 = vadd.f32 %v4981_v25, %v4980_v20  ;;  %v4983_v31 = vpop.f32.mrb[14].mxu1  ;;  %5283 = vmatpush3.bf16.msra.mxu1 %v5688_v14  ;;  %v5700_v51 = vld [vmem:[%s7042_s1 + $0xb80] sm:$0xff]  }
 0x15b   :  { %v4984_v33 = vpop.f32.mrb[15].mxu1  ;;  %5284 = vmatprep.subr.bf16.mxu1 %v5690_v17 }
 0x15c   :  { %v6917_v37 = vadd.f32 %v4982_v30, %v3724_v29  ;;  %5263 = vmatpush3.bf16.msra.mxu0 %v5691_v19 }
 0x15d   :  { %5264 = vmatprep.subr.bf16.mxu0 %v5693_v23 }
 0x15e   :  { %5285 = vmatpush3.bf16.msra.mxu1 %v5692_v32 }
 0x15f   :  { %5286 = vmatprep.subr.bf16.mxu1 %v5694_v34 }
 0x160   :  { %5265 = vmatpush3.bf16.msra.mxu0 %v5695_v38 }
 0x161   :  { %5294 = vmatprep.subr.bf16.mxu0 %v5697_v42 }
 0x162   :  { %5287 = vmatpush3.bf16.msra.mxu1 %v5696_v44 }
 0x163   :  { %4282 = vmatmul.mubr.bf16.vlgmr.msra.gmra.mrb[40].mxu0 %v1071_v40  ;;  %5316 = vmatprep.subr.bf16.mxu1 %v5698_v46 }
 0x164   :  { %5295 = vmatpush3.bf16.msra.mxu0 %v5699_v48  ;;  %4361 = vmatprep.mubr.bf16.mxu0 %v1092_v47 }
 0x165   :  { %4322 = vmatmul.mubr.bf16.vlgmr.msra.gmra.mrb[40].mxu1 %v1093_v49  ;;  %5296 = vmatprep.subr.bf16.mxu0 %v5701_v50 }
 0x166   :  { %5317 = vmatpush3.bf16.msra.mxu1 %v5700_v51  ;;  %4401 = vmatprep.mubr.bf16.mxu1 %v1096_v52 }
 0x167   :  { %5318 = vmatprep.subr.bf16.mxu1 %v5702_v53 }
 0x168   :  { %5297 = vmatpush3.bf16.msra.mxu0 %v5703_v54 }
 0x169   :  { %5298 = vmatprep.subr.bf16.mxu0 %v5705_v55 }
 0x16a   :  { %5319 = vmatpush3.bf16.msra.mxu1 %v5704_v56 }
 0x16b   :  { %5320 = vmatprep.subr.bf16.mxu1 %v5706_v57 }
 0x16c   :  { %5299 = vmatpush3.bf16.msra.mxu0 %v5707_v58 }
 0x16d   :  { %5300 = vmatprep.subr.bf16.mxu0 %v5709_v59 }
 0x16e   :  { %5321 = vmatpush3.bf16.msra.mxu1 %v5708_v60 }
 0x16f   :  { %5322 = vmatprep.subr.bf16.mxu1 %v5710_v61 }
 0x170   :  { %5301 = vmatpush3.bf16.msra.mxu0 %v5711_v62 }
 0x171   :  { %5302 = vmatprep.subr.bf16.mxu0 %v5713_v63 }
 0x172   :  { %5323 = vmatpush3.bf16.msra.mxu1 %v5712_v0 }
 0x173   :  { %5324 = vmatprep.subr.bf16.mxu1 %v5714_v1 }
 0x174   :  { %5303 = vmatpush3.bf16.msra.mxu0 %v5715_v2 }
 0x175   :  { %5304 = vmatprep.subr.bf16.mxu0 %v5717_v3 }
 0x176   :  { %5325 = vmatpush3.bf16.msra.mxu1 %v5716_v4  ;;  %v5002_v8 = vpop.f32.mrb[16].mxu0 }
 0x177   :  { %v5003_v10 = vpop.f32.mrb[17].mxu0  ;;  %5326 = vmatprep.subr.bf16.mxu1 %v5718_v5 }
 0x178   :  { %v5024_v12 = vpop.f32.mrb[16].mxu1  ;;  %v5004_v13 = vadd.f32 %v5003_v10, %v5002_v8  ;;  %v5005_v14 = vpop.f32.mrb[18].mxu0  ;;  %5305 = vmatpush3.bf16.msra.mxu0 %v5719_v6 }
 0x179   :  { %v5025_v16 = vpop.f32.mrb[17].mxu1  ;;  %v5006_v17 = vpop.f32.mrb[19].mxu0  ;;  %5306 = vmatprep.subr.bf16.mxu0 %v5721_v7 }
 0x17a   :  { %8 = vsyncpa [#allocation3], 0  ;;  %v3804_v19 = vadd.f32 %v5004_v13, %v6917_v37  ;;  %v5026_v20 = vadd.f32 %v5025_v16, %v5024_v12  ;;  %v5027_v21 = vpop.f32.mrb[18].mxu1  ;;  %5327 = vmatpush3.bf16.msra.mxu1 %v5720_v9  ;;  %v5724_v22 = vld [vmem:[%s7042_s1 + $0xbb0] sm:$0xff]   ;;  %v5726_v24 = vld [vmem:[%s7042_s1 + $0xbf8] sm:$0xff]   ;;  %v1078_v27 = vrot.slane %v6915_v36, %v5881_v41  ;;  %vm4409_vm0 = vcmask 74752  }
 0x17b   :  { %v5028_v23 = vpop.f32.mrb[19].mxu1  ;;  %5328 = vmatprep.subr.bf16.mxu1 %v5722_v11  ;;  %v5727_v26 = vld [vmem:[%s7042_s1 + $0xb38] sm:$0xff]  }
 0x17c   :  { %v3844_v25 = vadd.f32 %v5026_v20, %v3804_v19  ;;  %5307 = vmatpush3.bf16.msra.mxu0 %v5723_v15  ;;  %v5728_v28 = vld [vmem:[%s7042_s1 + $0xbb8] sm:$0xff]   ;;  %v1094_v29 = vcombine.high %v1078_v27, %v1078_v27  ;;  %s5755_s1 = smov [#allocation2]  }
 0x17d   :  { %5308 = vmatprep.subr.bf16.mxu0 %v5725_v18  ;;  %s4417_s25 = sshll.u32 %s5755_s1, 4  ;;  %s4418_s25 = int_to_ptr.vmem [resolvable:$true] %s4417_s25 }
 0x17e   :  { %5329 = vmatpush3.bf16.msra.mxu1 %v5724_v22  ;;  %s5730_s26 = scalar_lea.vmem %s4418_s25, 32  ;;  %p5735_p1 = scmp.lt.s32.totalorder %s4418_s25, %s4418_s25 }
 0x17f   :  { %5330 = vmatprep.subr.bf16.mxu1 %v5726_v24  ;;  %p5731_p0 = scmp.ne.s32.totalorder %s4418_s25, %s5730_s26  ;;  %p5736_p2 = scmp.lt.s32.totalorder %s5730_s26, %s5730_s26 }
 0x180   :  { %5309 = vmatpush3.bf16.msra.mxu0 %v5727_v26 }
 0x181   :  { %p5737_p3 = por %p5736_p2, %p5735_p1 }
 0x182   :  { %5331 = vmatpush3.bf16.msra.mxu1 %v5728_v28 }
 0x183   :  { %4362 = vmatmul.mubr.bf16.vlgmr.msra.gmra.mrb[44].mxu0 %v1078_v27  ;;  %p5738_p4 = pnand %p5737_p3, %p5731_p0 }
 0x185   :  { %4402 = vmatmul.mubr.bf16.vlgmr.msra.gmra.mrb[44].mxu1 %v1094_v29 }
 0x196   :  { %v5046_v30 = vpop.f32.mrb[20].mxu0 }
 0x197   :  { %v5047_v31 = vpop.f32.mrb[21].mxu0 }
 0x198   :  { %v5068_v32 = vpop.f32.mrb[20].mxu1  ;;  %v5048_v33 = vadd.f32 %v5047_v31, %v5046_v30  ;;  %v5049_v34 = vpop.f32.mrb[22].mxu0 }
 0x199   :  { %v5069_v35 = vpop.f32.mrb[21].mxu1  ;;  %v5050_v37 = vpop.f32.mrb[23].mxu0 }
 0x19a   :  { %v3884_v38 = vadd.f32 %v5048_v33, %v3844_v25  ;;  %v5070_v41 = vadd.f32 %v5069_v35, %v5068_v32  ;;  %v5071_v36 = vpop.f32.mrb[22].mxu1 }
 0x19b   :  { %v5072_v39 = vpop.f32.mrb[23].mxu1 }
 0x19c   :  { %v3924_v40 = vadd.f32 %v5070_v41, %v3884_v38 }
 0x1b6   :  { %v5090_v42 = vpop.f32.mrb[24].mxu0 }
 0x1b7   :  { %v5091_v43 = vpop.f32.mrb[25].mxu0 }
 0x1b8   :  { %v5112_v44 = vpop.f32.mrb[24].mxu1  ;;  %v5092_v45 = vadd.f32 %v5091_v43, %v5090_v42  ;;  %v5093_v46 = vpop.f32.mrb[26].mxu0 }
 0x1b9   :  { %v5113_v47 = vpop.f32.mrb[25].mxu1  ;;  %v5094_v48 = vpop.f32.mrb[27].mxu0 }
 0x1ba   :  { %v3964_v49 = vadd.f32 %v5092_v45, %v3924_v40  ;;  %v5114_v50 = vadd.f32 %v5113_v47, %v5112_v44  ;;  %v5115_v51 = vpop.f32.mrb[26].mxu1 }
 0x1bb   :  { %v5116_v52 = vpop.f32.mrb[27].mxu1 }
 0x1bc   :  { %v4004_v53 = vadd.f32 %v5114_v50, %v3964_v49 }
 0x1d6   :  { %v5134_v54 = vpop.f32.mrb[28].mxu0 }
 0x1d7   :  { %v5135_v55 = vpop.f32.mrb[29].mxu0 }
 0x1d8   :  { %v5156_v56 = vpop.f32.mrb[28].mxu1  ;;  %v5136_v57 = vadd.f32 %v5135_v55, %v5134_v54  ;;  %v5137_v58 = vpop.f32.mrb[30].mxu0 }
 0x1d9   :  { %v5157_v59 = vpop.f32.mrb[29].mxu1  ;;  %v5138_v60 = vpop.f32.mrb[31].mxu0 }
 0x1da   :  { %v4044_v61 = vadd.f32 %v5136_v57, %v4004_v53  ;;  %v5158_v62 = vadd.f32 %v5157_v59, %v5156_v56  ;;  %v5159_v63 = vpop.f32.mrb[30].mxu1 }
 0x1db   :  { %v5160_v0 = vpop.f32.mrb[31].mxu1 }
 0x1dc   :  { %v4084_v1 = vadd.f32 %v5158_v62, %v4044_v61 }
 0x1f6   :  { %v5178_v2 = vpop.f32.mrb[32].mxu0 }
 0x1f7   :  { %v5179_v3 = vpop.f32.mrb[33].mxu0 }
 0x1f8   :  { %v5200_v4 = vpop.f32.mrb[32].mxu1  ;;  %v5180_v5 = vadd.f32 %v5179_v3, %v5178_v2  ;;  %v5181_v6 = vpop.f32.mrb[34].mxu0 }
 0x1f9   :  { %v5201_v7 = vpop.f32.mrb[33].mxu1  ;;  %v5182_v8 = vpop.f32.mrb[35].mxu0 }
 0x1fa   :  { %v4124_v9 = vadd.f32 %v5180_v5, %v4084_v1  ;;  %v5202_v10 = vadd.f32 %v5201_v7, %v5200_v4  ;;  %v5203_v11 = vpop.f32.mrb[34].mxu1 }
 0x1fb   :  { %v5204_v12 = vpop.f32.mrb[35].mxu1 }
 0x1fc   :  { %v4164_v13 = vadd.f32 %v5202_v10, %v4124_v9 }
 0x216   :  { %v5222_v14 = vpop.f32.mrb[36].mxu0 }
 0x217   :  { %v5223_v15 = vpop.f32.mrb[37].mxu0 }
 0x218   :  { %v5244_v16 = vpop.f32.mrb[36].mxu1  ;;  %v5224_v17 = vadd.f32 %v5223_v15, %v5222_v14  ;;  %v5225_v18 = vpop.f32.mrb[38].mxu0 }
 0x219   :  { %v5245_v19 = vpop.f32.mrb[37].mxu1  ;;  %v5226_v20 = vpop.f32.mrb[39].mxu0 }
 0x21a   :  { %v4204_v21 = vadd.f32 %v5224_v17, %v4164_v13  ;;  %v5246_v22 = vadd.f32 %v5245_v19, %v5244_v16  ;;  %v5247_v23 = vpop.f32.mrb[38].mxu1 }
 0x21b   :  { %v5248_v24 = vpop.f32.mrb[39].mxu1 }
 0x21c   :  { %v4244_v25 = vadd.f32 %v5246_v22, %v4204_v21 }
 0x236   :  { %v5266_v26 = vpop.f32.mrb[40].mxu0 }
 0x237   :  { %v5267_v27 = vpop.f32.mrb[41].mxu0 }
 0x238   :  { %v5288_v28 = vpop.f32.mrb[40].mxu1  ;;  %v5268_v29 = vadd.f32 %v5267_v27, %v5266_v26  ;;  %v5269_v30 = vpop.f32.mrb[42].mxu0 }
 0x239   :  { %v5289_v31 = vpop.f32.mrb[41].mxu1  ;;  %v5270_v32 = vpop.f32.mrb[43].mxu0 }
 0x23a   :  { %v4284_v33 = vadd.f32 %v5268_v29, %v4244_v25  ;;  %v5290_v34 = vadd.f32 %v5289_v31, %v5288_v28  ;;  %v5291_v35 = vpop.f32.mrb[42].mxu1 }
 0x23b   :  { %v5292_v37 = vpop.f32.mrb[43].mxu1 }
 0x23c   :  { %v4324_v38 = vadd.f32 %v5290_v34, %v4284_v33 }
 0x256   :  { %v5310_v41 = vpop.f32.mrb[44].mxu0 }
 0x257   :  { %v5311_v36 = vpop.f32.mrb[45].mxu0 }
 0x258   :  { %v5332_v39 = vpop.f32.mrb[44].mxu1  ;;  %v5312_v40 = vadd.f32 %v5311_v36, %v5310_v41  ;;  %v5313_v42 = vpop.f32.mrb[46].mxu0 }
 0x259   :  { %v5333_v43 = vpop.f32.mrb[45].mxu1  ;;  %v5314_v44 = vpop.f32.mrb[47].mxu0 }
 0x25a   :  { %v4364_v45 = vadd.f32 %v5312_v40, %v4324_v38  ;;  %v5334_v46 = vadd.f32 %v5333_v43, %v5332_v39  ;;  %v5335_v47 = vpop.f32.mrb[46].mxu1 }
 0x25b   :  { %v5336_v48 = vpop.f32.mrb[47].mxu1 }
 0x25c   :  { %v4404_v49 = vadd.f32 %v5334_v46, %v4364_v45 }
 0x25e   :  { %4410 = vst.msk [vmem:[#allocation2] sm:$0x3] %vm4409_vm0, %v4404_v49 }
 0x25f   :  { %5741 = shalt.err (!%p5738_p4)
}
 0x260   :  { %s5742_s29 = scalar_lea.hbm %s7044_s3, 32 }
 0x261   :  { %p5743_p5 = scmp.ne.s32.totalorder %s7044_s3, %s5742_s29  ;;  %p5746_p6 = scmp.lt.u32.totalorder %s5742_s29, %s7044_s3 }
 0x263   :  { %p5748_p7 = pnand %p5746_p6, %p5743_p5 }
 0x265   :  { %5751 = shalt.err (!%p5748_p7)
}
 0x266   :  { %4420 = dma.vmem_to_hbm [thread:$0]  %s4418_s25, 32, %s7044_s3, [#allocation3]  }
 0x267   :  { %5752 = dma.done.wait [#allocation3], 32  }
 0x268   :  { %5753 = vsyncadd [#allocation3], 4294967264 }
 0x269   :  { %4424 = vsyncpa [#allocation3], 1 }

</bundles_post_ra>
